<compile_context>
chip_gen: v7x
topology: tpu7x:2x2x1
jax: 0.10.0
libtpu: 0.0.40
codegen_flags: <defaults>
</compile_context>

<pallas_src>
import jax
import jax.numpy as jnp
from jax.experimental import pallas as pl
from jax.experimental.pallas import tpu as pltpu

IN_DIM = 28 * 28          # 784
HID_DIM = 256
OUT_DIM = 10
OUT_COLS = 128            # lane-dense padded fc2 output width
TILE_N = 1024             # max rows per grid step


def _round_up(a, b):
    return ((a + b - 1) // b) * b


def mlp_kernel(x_ref, w1_ref, b1_ref, w2_ref, b2_ref, o_ref):
    # In-kernel f32 -> bf16 cast of the x tile (VPU has slack; saves a full
    # HBM pass in the wrapper).
    xb = x_ref[...].astype(jnp.bfloat16)
    # fc1: (tile, 784) bf16 @ (784, 256) bf16 -> f32 accumulate on the MXU.
    h = jnp.dot(xb, w1_ref[...], preferred_element_type=jnp.float32)
    # bn1 / dropout1 are nn.Identity() with default flags -> no-op.
    h = jnp.maximum(h + b1_ref[...], 0.0)                 # bias + ReLU in f32
    # fc2: (tile, 256) bf16 @ (256, 128) bf16 -> f32 accumulate.
    # (columns 10..127 of w2/b2 are zero padding for a lane-dense store)
    out = jnp.dot(h.astype(jnp.bfloat16), w2_ref[...],
                  preferred_element_type=jnp.float32)
    o_ref[...] = (out + b2_ref[...]).astype(o_ref.dtype)  # bf16 store


def simple_nn_forward(x, w1, b1, w2, b2, *, tile_n=TILE_N):
    """x: (N, 1, 28, 28) or (N, 784) float32 -> (N, 10) float32."""
    n = x.shape[0]
    x2d = x.reshape(n, IN_DIM)                            # x.view(-1, 784), no copy

    # Adaptive tile: big enough to amortize grid-step overhead, small enough
    # that the grid has >= 2 steps when N allows it (v7x dual-TC sharding).
    tile_n = max(8, min(tile_n, _round_up(pl.cdiv(n, 2), 256)))
    n_tiles = pl.cdiv(n, tile_n)                          # partial last block is masked

    # Weight prep (tiny, one-time): bf16 streams + lane-dense fc2 padding.
    w1b = w1.astype(jnp.bfloat16)
    w2p = jnp.zeros((HID_DIM, OUT_COLS), jnp.bfloat16).at[:, :OUT_DIM].set(
        w2.astype(jnp.bfloat16))
    b1_2d = b1.reshape(1, HID_DIM).astype(jnp.float32)
    b2p = jnp.zeros((1, OUT_COLS), jnp.float32).at[:, :OUT_DIM].set(
        b2.astype(jnp.float32))

    cost = pl.CostEstimate(
        flops=2 * n_tiles * tile_n * (IN_DIM * HID_DIM + HID_DIM * OUT_COLS),
        transcendentals=0,
        bytes_accessed=(x2d.size * 4 + w1b.size * 2 + b1_2d.size * 4
                        + w2p.size * 2 + b2p.size * 4
                        + n * OUT_COLS * 2),
    )

    out = pl.pallas_call(
        mlp_kernel,
        out_shape=jax.ShapeDtypeStruct((n, OUT_COLS), jnp.bfloat16),
        grid=(n_tiles,),
        in_specs=[
            # x: one f32 batch tile per grid step (pipelined/double-buffered)
            pl.BlockSpec((tile_n, IN_DIM), lambda i: (i, 0)),
            # weights & biases: constant index_map -> DMA'd once, VMEM-resident
            pl.BlockSpec((IN_DIM, HID_DIM), lambda i: (0, 0)),
            pl.BlockSpec((1, HID_DIM), lambda i: (0, 0)),
            pl.BlockSpec((HID_DIM, OUT_COLS), lambda i: (0, 0)),
            pl.BlockSpec((1, OUT_COLS), lambda i: (0, 0)),
        ],
        out_specs=pl.BlockSpec((tile_n, OUT_COLS), lambda i: (i, 0)),
        compiler_params=pltpu.CompilerParams(
            dimension_semantics=("parallel",)),
        cost_estimate=cost,
    )(x2d, w1b, b1_2d, w2p, b2p)

    # Strip lane padding; return f32 to match the module's output dtype
    # (values are bf16-quantized logits, fine for classification).
    return out[:, :OUT_DIM].astype(jnp.float32)


def init_params(key):
    """Deterministic PyTorch-style init: U(-1/sqrt(fan_in), 1/sqrt(fan_in))."""
    k1, k2, k3, k4 = jax.random.split(key, 4)
    lim1 = 1.0 / jnp.sqrt(784.0)
    lim2 = 1.0 / jnp.sqrt(256.0)
    w1 = jax.random.uniform(k1, (IN_DIM, HID_DIM), jnp.float32, -lim1, lim1)
    b1 = jax.random.uniform(k2, (HID_DIM,), jnp.float32, -lim1, lim1)
    w2 = jax.random.uniform(k3, (HID_DIM, OUT_DIM), jnp.float32, -lim2, lim2)
    b2 = jax.random.uniform(k4, (OUT_DIM,), jnp.float32, -lim2, lim2)
    return w1, b1, w2, b2


if __name__ == "__main__":
    key = jax.random.PRNGKey(0)
    kx, kp = jax.random.split(key)
    n = 2
    x = jax.random.normal(kx, (n, 1, 28, 28), jnp.float32)  # batch=2 MNIST-like
    w1, b1, w2, b2 = init_params(kp)

    out = jax.block_until_ready(simple_nn_forward(x, w1, b1, w2, b2))
    assert out.shape == (n, OUT_DIM)
    assert out.dtype == jnp.float32

    # Reference mirroring the kernel's bf16-input / f32-accumulate / bf16-store
    # precision (loose tolerance covers accumulation-order differences).
    x2d = x.reshape(n, IN_DIM)
    h_ref = jnp.maximum(
        jnp.dot(x2d.astype(jnp.bfloat16), w1.astype(jnp.bfloat16),
                preferred_element_type=jnp.float32) + b1, 0.0)
    ref = jnp.dot(h_ref.astype(jnp.bfloat16), w2.astype(jnp.bfloat16),
                  preferred_element_type=jnp.float32) + b2
    ref = ref.astype(jnp.bfloat16).astype(jnp.float32)
    assert jnp.allclose(out, ref, atol=1e-2, rtol=1e-2)

    # Sanity vs full-f32 math (bf16 streams introduce small quantization error).
    ref_f32 = jnp.maximum(x2d @ w1 + b1, 0.0) @ w2 + b2
    assert jnp.allclose(out, ref_f32, atol=5e-2, rtol=5e-2)

    print("KERNEL_OK")
</pallas_src>

<mosaic_0001>
module attributes {stable_mosaic.version = 11 : i64} {
  func.func @mlp_kernel(%arg0: i32, %arg1: memref<256x784xf32, #tpu.memory_space<vmem>>, %arg2: memref<784x256xbf16, #tpu.memory_space<vmem>>, %arg3: memref<1x256xf32, #tpu.memory_space<vmem>>, %arg4: memref<256x128xbf16, #tpu.memory_space<vmem>>, %arg5: memref<1x128xf32, #tpu.memory_space<vmem>>, %arg6: memref<256x128xbf16, #tpu.memory_space<vmem>>) attributes {dimension_semantics = [#tpu.dimension_semantics<parallel>], iteration_bounds = array<i64: 1>, scalar_prefetch = 0 : i64, scratch_operands = 0 : i64, tpu.core_type = #tpu.core_type<tc>, window_params = [{transform_indices = @transform_0, window_bounds = array<i64: 256, 784>}, {pipeline_mode = #tpu.pipeline_mode<synchronous>, transform_indices = @transform_1, window_bounds = array<i64: 784, 256>}, {pipeline_mode = #tpu.pipeline_mode<synchronous>, transform_indices = @transform_2, window_bounds = array<i64: 1, 256>}, {pipeline_mode = #tpu.pipeline_mode<synchronous>, transform_indices = @transform_3, window_bounds = array<i64: 256, 128>}, {pipeline_mode = #tpu.pipeline_mode<synchronous>, transform_indices = @transform_4, window_bounds = array<i64: 1, 128>}, {transform_indices = @transform_5, window_bounds = array<i64: 256, 128>}]} {
    %c0 = arith.constant 0 : index
    %c0_0 = arith.constant 0 : index
    %0 = vector.load %arg1[%c0, %c0_0] : memref<256x784xf32, #tpu.memory_space<vmem>>, vector<256x784xf32>
    %1 = arith.truncf %0 : vector<256x784xf32> to vector<256x784xbf16>
    %c0_1 = arith.constant 0 : index
    %c0_2 = arith.constant 0 : index
    %2 = vector.load %arg2[%c0_1, %c0_2] : memref<784x256xbf16, #tpu.memory_space<vmem>>, vector<784x256xbf16>
    %cst = arith.constant dense<0.000000e+00> : vector<256x256xf32>
    %3 = tpu.matmul %1, %2, %cst {dimension_numbers = #tpu.dot_dimension_numbers<[1], [0], [0], [1], [0, 0, 1, 1], [], []>} : vector<256x784xbf16>, vector<784x256xbf16>, vector<256x256xf32> -> vector<256x256xf32>
    %c0_3 = arith.constant 0 : index
    %c0_4 = arith.constant 0 : index
    %4 = vector.load %arg3[%c0_3, %c0_4] : memref<1x256xf32, #tpu.memory_space<vmem>>, vector<1x256xf32>
    %5 = vector.broadcast %4 : vector<1x256xf32> to vector<256x256xf32>
    %6 = arith.addf %3, %5 : vector<256x256xf32>
    %cst_5 = arith.constant 0.000000e+00 : f32
    %7 = vector.broadcast %cst_5 : f32 to vector<256x256xf32>
    %8 = arith.maximumf %6, %7 : vector<256x256xf32>
    %9 = arith.truncf %8 : vector<256x256xf32> to vector<256x256xbf16>
    %c0_6 = arith.constant 0 : index
    %c0_7 = arith.constant 0 : index
    %10 = vector.load %arg4[%c0_6, %c0_7] : memref<256x128xbf16, #tpu.memory_space<vmem>>, vector<256x128xbf16>
    %cst_8 = arith.constant dense<0.000000e+00> : vector<256x128xf32>
    %11 = tpu.matmul %9, %10, %cst_8 {dimension_numbers = #tpu.dot_dimension_numbers<[1], [0], [0], [1], [0, 0, 1, 1], [], []>} : vector<256x256xbf16>, vector<256x128xbf16>, vector<256x128xf32> -> vector<256x128xf32>
    %c0_9 = arith.constant 0 : index
    %c0_10 = arith.constant 0 : index
    %12 = vector.load %arg5[%c0_9, %c0_10] : memref<1x128xf32, #tpu.memory_space<vmem>>, vector<1x128xf32>
    %13 = vector.broadcast %12 : vector<1x128xf32> to vector<256x128xf32>
    %14 = arith.addf %11, %13 : vector<256x128xf32>
    %15 = arith.truncf %14 : vector<256x128xf32> to vector<256x128xbf16>
    %c0_11 = arith.constant 0 : index
    %c0_12 = arith.constant 0 : index
    %16 = vector.load %arg6[%c0_11, %c0_12] : memref<256x128xbf16, #tpu.memory_space<vmem>>, vector<256x128xbf16>
    tpu.vector_store %arg6[%c0_11, %c0_12], %15 {strides = array<i32>} : memref<256x128xbf16, #tpu.memory_space<vmem>>, vector<256x128xbf16>,
    return
  }
  func.func @transform_0(%arg0: i32) -> (i32, i32) {
    %c0_i32 = arith.constant 0 : i32
    %c0_i32_0 = arith.constant 0 : i32
    return %arg0, %c0_i32 : i32, i32
  }
  func.func @transform_1(%arg0: i32) -> (i32, i32) {
    %c0_i32 = arith.constant 0 : i32
    %c0_i32_0 = arith.constant 0 : i32
    %c0_i32_1 = arith.constant 0 : i32
    return %c0_i32, %c0_i32_0 : i32, i32
  }
  func.func @transform_2(%arg0: i32) -> (i32, i32) {
    %c0_i32 = arith.constant 0 : i32
    %c0_i32_0 = arith.constant 0 : i32
    %c0_i32_1 = arith.constant 0 : i32
    return %c0_i32, %c0_i32_0 : i32, i32
  }
  func.func @transform_3(%arg0: i32) -> (i32, i32) {
    %c0_i32 = arith.constant 0 : i32
    %c0_i32_0 = arith.constant 0 : i32
    %c0_i32_1 = arith.constant 0 : i32
    return %c0_i32, %c0_i32_0 : i32, i32
  }
  func.func @transform_4(%arg0: i32) -> (i32, i32) {
    %c0_i32 = arith.constant 0 : i32
    %c0_i32_0 = arith.constant 0 : i32
    %c0_i32_1 = arith.constant 0 : i32
    return %c0_i32, %c0_i32_0 : i32, i32
  }
  func.func @transform_5(%arg0: i32) -> (i32, i32) {
    %c0_i32 = arith.constant 0 : i32
    %c0_i32_0 = arith.constant 0 : i32
    return %arg0, %c0_i32 : i32, i32
  }
}

</mosaic_0001>

<bundles_post_ra>
// kernel: tpu_custom_call.1
= control target key start
LH: loop header
LB: loop body
LE: loop exit
PB: predicated region body
PF: predicated region fallthrough
CT: control target
= control target key end

     0   :  { %10 = vsyncpa [#allocation3], 0  ;;  %s8469_s0 = inlined_call_operand.hbm [shape: f32[2,784], index: 0, kind: input, shape index: {}]   ;;  %s8470_s1 = inlined_call_operand.hbm [shape: bf16[784,256], index: 1, kind: input, shape index: {}]   ;;  %s8471_s2 = inlined_call_operand.vmem [shape: f32[1,256], index: 2, kind: input, shape index: {}]   ;;  %s8472_s3 = inlined_call_operand.hbm [shape: bf16[256,128], index: 3, kind: input, shape index: {}]   ;;  %s8473_s4 = inlined_call_operand.vmem [shape: f32[1,128], index: 4, kind: input, shape index: {}]   ;;  %s8474_s5 = inlined_call_operand.hbm [shape: bf16[2,128], index: 5, kind: output, shape index: {}]  }
   0x1   :  { %11 = vsyncpa [#allocation6], 0 }
   0x2   :  { %12 = vsyncpa [#allocation4], 0 }
   0x3   :  { %17 = vsyncadd [#allocation3], 28448  ;;  %s7382_s18 = smov [#allocation5]   ;;  %s7288_s22 = scalar_lea.hbm %s8470_s1, 12544 }
   0x4   :  { %s30_s19 = sshll.u32 %s7382_s18, 4  ;;  %p7289_p0 = scmp.ne.s32.totalorder %s8470_s1, %s7288_s22  ;;  %s31_s19 = int_to_ptr.vmem [resolvable:$true] %s30_s19 }
   0x5   :  { %p7292_p1 = scmp.lt.u32.totalorder %s7288_s22, %s8470_s1 }
   0x7   :  { %p7294_p2 = pnand %p7292_p1, %p7289_p0 }
   0x9   :  { %7297 = shalt.err (!%p7294_p2)
}
   0xa   :  { %s7298_s27 = scalar_lea.vmem %s31_s19, 12544  ;;  %p7303_p4 = scmp.lt.s32.totalorder %s31_s19, %s31_s19 }
   0xb   :  { %p7299_p3 = scmp.ne.s32.totalorder %s31_s19, %s7298_s27  ;;  %p7304_p5 = scmp.lt.s32.totalorder %s7298_s27, %s7298_s27 }
   0xd   :  { %p7305_p6 = por %p7304_p5, %p7303_p4 }
   0xf   :  { %p7306_p7 = pnand %p7305_p6, %p7299_p3 }
  0x11   :  { %7309 = shalt.err (!%p7306_p7)
}
  0x12   :  { %s7383_s28 = smov 128   ;;  %s7384_s29 = smov 8  }
  0x13   :  { %36 = dma.hbm_to_vmem [thread:$0]  %s8470_s1, 12544, %s31_s19, [#allocation6], %s7383_s28, %s7383_s28, %s7384_s29  }
  0x14   :  { %s7385_s7 = smov [#allocation2]   ;;  %s7310_s11 = scalar_lea.hbm %s8469_s0, 224 }
  0x15   :  { %s18_s8 = sshll.u32 %s7385_s7, 4  ;;  %p7311_p8 = scmp.ne.s32.totalorder %s8469_s0, %s7310_s11  ;;  %s19_s8 = int_to_ptr.vmem [resolvable:$true] %s18_s8 }
  0x16   :  { %p7314_p9 = scmp.lt.u32.totalorder %s7310_s11, %s8469_s0 }
  0x18   :  { %p7316_p10 = pnand %p7314_p9, %p7311_p8 }
  0x1a   :  { %7319 = shalt.err (!%p7316_p10)
}
  0x1b   :  { %s7320_s16 = scalar_lea.vmem %s19_s8, 224  ;;  %s7324_s1 = scalar_lea.vmem %s19_s8, 28672 }
  0x1c   :  { %p7321_p11 = scmp.ne.s32.totalorder %s19_s8, %s7320_s16  ;;  %p7325_p12 = scmp.lt.s32.totalorder %s19_s8, %s19_s8 }
  0x1d   :  { %p7326_p13 = scmp.lt.s32.totalorder %s7324_s1, %s7320_s16 }
  0x1f   :  { %p7327_p0 = por %p7326_p13, %p7325_p12 }
  0x21   :  { %p7328_p1 = pnand %p7327_p0, %p7321_p11 }
  0x23   :  { %7331 = shalt.err (!%p7328_p1)
}
  0x24   :  { %s7386_s17 = smov 224   ;;  %s7387_s18 = smov 14  }
  0x25   :  { %24 = dma.hbm_to_vmem [thread:$0]  %s8469_s0, 224, %s19_s8, [#allocation3], %s7386_s17, %s7386_s17, %s7387_s18  }
  0x26   :  { %s7388_s21 = smov [#allocation7]   ;;  %s7332_s25 = scalar_lea.hbm %s8472_s3, 2048 }
  0x27   :  { %s44_s22 = sshll.u32 %s7388_s21, 4  ;;  %p7333_p2 = scmp.ne.s32.totalorder %s8472_s3, %s7332_s25  ;;  %s45_s22 = int_to_ptr.vmem [resolvable:$true] %s44_s22 }
  0x28   :  { %p7336_p3 = scmp.lt.u32.totalorder %s7332_s25, %s8472_s3 }
  0x2a   :  { %p7338_p4 = pnand %p7336_p3, %p7333_p2 }
  0x2c   :  { %7341 = shalt.err (!%p7338_p4)
}
  0x2d   :  { %s7342_s30 = scalar_lea.vmem %s45_s22, 2048  ;;  %p7347_p6 = scmp.lt.s32.totalorder %s45_s22, %s45_s22 }
  0x2e   :  { %p7343_p5 = scmp.ne.s32.totalorder %s45_s22, %s7342_s30  ;;  %p7348_p7 = scmp.lt.s32.totalorder %s7342_s30, %s7342_s30 }
  0x30   :  { %p7349_p8 = por %p7348_p7, %p7347_p6 }
  0x32   :  { %p7350_p9 = pnand %p7349_p8, %p7343_p5 }
  0x34   :  { %7353 = shalt.err (!%p7350_p9)
}
  0x35   :  { %s7389_s0 = smov 64   ;;  %s7390_s6 = smov 4  }
  0x36   :  { %50 = dma.hbm_to_vmem [thread:$0]  %s8472_s3, 2048, %s45_s22, [#allocation6], %s7389_s0, %s7389_s0, %s7390_s6  }
  0x37   :  { %7376 = dma.done.wait [#allocation3], 28672  }
  0x38   :  { %7377 = vsyncadd [#allocation3], 4294938624 }
  0x39   :  { %7378 = dma.done.wait [#allocation6], 14592  }
  0x3a   :  { %7379 = vsyncadd [#allocation6], 4294952704  ;;  %v7463_v0 = vld [vmem:[#allocation5 + $0x104] ss:$8 sps:$4 sm:$0xff]   ;;  %v7465_v1 = vld [vmem:[#allocation5 + $0x100] ss:$8 sps:$4 sm:$0xff]   ;;  %v582_v12 = vlaneseq }
  0x3b   :  { %4025 = vmatprep.subr.bf16.mxu0 %v7463_v0  ;;  %v7468_v2 = vld [vmem:[#allocation5 + $0x114] ss:$8 sps:$4 sm:$0xff]   ;;  %v6717_v3 = vld [vmem:[#allocation5 + $0x110] ss:$8 sps:$4 sm:$0xff]   ;;  %v6718_v4 = vld [vmem:[#allocation5 + $0x124] ss:$8 sps:$4 sm:$0xff]  }
  0x3c   :  { %4026 = vmatpush1.bf16.msra.mxu0 %v7465_v1  ;;  %v6720_v5 = vld [vmem:[#allocation5 + $0x120] ss:$8 sps:$4 sm:$0xff]   ;;  %v6721_v6 = vld [vmem:[#allocation5 + $0x134] ss:$8 sps:$4 sm:$0xff]   ;;  %v6723_v7 = vld [vmem:[#allocation5 + $0x130] ss:$8 sps:$4 sm:$0xff]  }
  0x3d   :  { %4027 = vmatprep.subr.bf16.mxu0 %v7468_v2  ;;  %v6724_v8 = vld [vmem:[#allocation5 + $0x144] ss:$8 sps:$4 sm:$0xff]   ;;  %v6726_v9 = vld [vmem:[#allocation5 + $0x140] ss:$8 sps:$4 sm:$0xff]   ;;  %v7391_v10 = vmov 1983009808  }
  0x3e   :  { %v580_v11 = vunpack.c.l.s4 %v7391_v10  ;;  %v6727_v13 = vld [vmem:[#allocation5 + $0x154] ss:$8 sps:$4 sm:$0xff]   ;;  %v6729_v14 = vld [vmem:[#allocation5 + $0x150] ss:$8 sps:$4 sm:$0xff]   ;;  %v6730_v15 = vld [vmem:[#allocation5 + $0x164] ss:$8 sps:$4 sm:$0xff]  }
  0x3f   :  { %v7472_v17 = vshrl.u32 %v582_v12, 7  ;;  %v6757_v18 = vld [vmem:[#allocation5 + $0x4] ss:$8 sps:$4 sm:$0xff]   ;;  %v6732_v19 = vld [vmem:[#allocation5 + $0x160] ss:$8 sps:$4 sm:$0xff]   ;;  %vm3783_vm0 = vcmask 130048  }
  0x40   :  { %4028 = vmatpush1.bf16.msra.mxu0 %v6717_v3  ;;  %v581_v16 = vunpack.c.0.s8 %v580_v11  ;;  %v6733_v20 = vld [vmem:[#allocation5 + $0x174] ss:$8 sps:$4 sm:$0xff]   ;;  %3832 = vmatprep.subr.bf16.mxu1 %v6757_v18  ;;  %v6761_v21 = vld [vmem:[#allocation5] ss:$8 sps:$4 sm:$0xff]   ;;  %v6735_v23 = vld [vmem:[#allocation5 + $0x170] ss:$8 sps:$4 sm:$0xff]  }
  0x41   :  { %4029 = vmatprep.subr.bf16.mxu0 %v6718_v4  ;;  %3833 = vmatpush1.bf16.msra.mxu1 %v6761_v21  ;;  %v6763_v24 = vld [vmem:[#allocation2 + $0x4] ss:$14 sps:$4 sm:$0xff]   ;;  %v6765_v25 = vld [vmem:[#allocation2 + $0x20] ss:$14 sps:$4 sm:$0xff]   ;;  %v6767_v26 = vld [vmem:[#allocation2 + $0x3c] ss:$14 sps:$4 sm:$0xff]  }
  0x42   :  { %v7475_v22 = vsub.s32 %v581_v16, %v7472_v17  ;;  %v6769_v27 = vld [vmem:[#allocation2 + $0x58] ss:$14 sps:$4 sm:$0xff]   ;;  %v6771_v30 = vld [vmem:[#allocation5 + $0x14] ss:$8 sps:$4 sm:$0xff]   ;;  %v6805_v11 = vld [vmem:[#allocation2 + $0x100] ss:$14 sps:$4 sm:$0xff]  }
  0x43   :  { %v6736_v31 = vld [vmem:[#allocation5 + $0x184] ss:$8 sps:$4 sm:$0xff]   ;;  %3834 = vmatprep.subr.bf16.mxu1 %v6771_v30  ;;  %v6776_v35 = vld [vmem:[#allocation5 + $0x10] ss:$8 sps:$4 sm:$0xff]   ;;  %v6738_v38 = vld [vmem:[#allocation5 + $0x180] ss:$8 sps:$4 sm:$0xff]  }
  0x44   :  { %4030 = vmatpush1.bf16.msra.mxu0 %v6720_v5  ;;  %v7478_v28 = vrot.slane %v6763_v24, %v7475_v22  ;;  %v7481_v29 = vrot.slane %v6765_v25, %v7475_v22  ;;  %v7484_v32 = vrot.slane %v6767_v26, %v7475_v22  ;;  %v7487_v33 = vrot.slane %v6769_v27, %v7475_v22  ;;  %v6777_v37 = vld [vmem:[#allocation5 + $0x24] ss:$8 sps:$4 sm:$0xff]   ;;  %v6739_v39 = vld [vmem:[#allocation5 + $0x194] ss:$8 sps:$4 sm:$0xff]   ;;  %v6782_v40 = vld [vmem:[#allocation5 + $0x20] ss:$8 sps:$4 sm:$0xff]  }
  0x45   :  { %4031 = vmatprep.subr.bf16.mxu0 %v6721_v6  ;;  %3835 = vmatpush1.bf16.msra.mxu1 %v6776_v35  ;;  %v6741_v42 = vld [vmem:[#allocation5 + $0x190] ss:$8 sps:$4 sm:$0xff]   ;;  %v6742_v43 = vld [vmem:[#allocation5 + $0x1a4] ss:$8 sps:$4 sm:$0xff]   ;;  %v6791_v44 = vld [vmem:[#allocation5 + $0x34] ss:$8 sps:$4 sm:$0xff]   ;;  %v890_v27 = vrot.slane %v6805_v11, %v7475_v22 }
  0x46   :  { %v610_v34 = vcombine.high %v7478_v28, %v7481_v29  ;;  %v681_v36 = vcombine.high %v7484_v32, %v7487_v33  ;;  %3836 = vmatprep.subr.bf16.mxu1 %v6777_v37  ;;  %v6744_v45 = vld [vmem:[#allocation5 + $0x1a0] ss:$8 sps:$4 sm:$0xff]   ;;  %v6796_v46 = vld [vmem:[#allocation5 + $0x30] ss:$8 sps:$4 sm:$0xff]   ;;  %v6797_v47 = vld [vmem:[#allocation5 + $0x44] ss:$8 sps:$4 sm:$0xff]  }
  0x47   :  { %v6745_v48 = vld [vmem:[#allocation5 + $0x1b4] ss:$8 sps:$4 sm:$0xff]   ;;  %v6747_v49 = vld [vmem:[#allocation5 + $0x1b0] ss:$8 sps:$4 sm:$0xff]   ;;  %v6802_v50 = vld [vmem:[#allocation5 + $0x40] ss:$8 sps:$4 sm:$0xff]  }
  0x48   :  { %4032 = vmatpush1.bf16.msra.mxu0 %v6723_v7  ;;  %v3074_v41 = vpack.c.bf16 %v681_v36, %v610_v34  ;;  %v6748_v51 = vld [vmem:[#allocation5 + $0x1c4] ss:$8 sps:$4 sm:$0xff]   ;;  %v6811_v52 = vld [vmem:[#allocation5 + $0x54] ss:$8 sps:$4 sm:$0xff]   ;;  %v6750_v53 = vld [vmem:[#allocation5 + $0x1c0] ss:$8 sps:$4 sm:$0xff]  }
  0x49   :  { %4033 = vmatprep.subr.bf16.mxu0 %v6724_v8  ;;  %3837 = vmatpush1.bf16.msra.mxu1 %v6782_v40  ;;  %v6751_v54 = vld [vmem:[#allocation5 + $0x1d4] ss:$8 sps:$4 sm:$0xff]   ;;  %v6816_v55 = vld [vmem:[#allocation5 + $0x50] ss:$8 sps:$4 sm:$0xff]   ;;  %v6817_v56 = vld [vmem:[#allocation5 + $0x64] ss:$8 sps:$4 sm:$0xff]  }
  0x4a   :  { %4057 = vmatprep.mubr.bf16.mxu0 %v3074_v41  ;;  %3838 = vmatprep.subr.bf16.mxu1 %v6791_v44  ;;  %v6753_v57 = vld [vmem:[#allocation5 + $0x1d0] ss:$8 sps:$4 sm:$0xff]   ;;  %v6783_v58 = vld [vmem:[#allocation2 + $0x74] ss:$14 sps:$4 sm:$0xff]   ;;  %v6807_v12 = vld [vmem:[#allocation2 + $0x11c] ss:$14 sps:$4 sm:$0xff]  }
  0x4b   :  { %v6785_v59 = vld [vmem:[#allocation2 + $0x90] ss:$14 sps:$4 sm:$0xff]   ;;  %v6787_v60 = vld [vmem:[#allocation2 + $0xac] ss:$14 sps:$4 sm:$0xff]   ;;  %v6789_v62 = vld [vmem:[#allocation2 + $0xc8] ss:$14 sps:$4 sm:$0xff]   ;;  %v734_v5 = vrot.slane %v6783_v58, %v7475_v22 }
  0x4c   :  { %4034 = vmatpush1.bf16.msra.mxu0 %v6726_v9  ;;  %v6754_v61 = vld [vmem:[#allocation5 + $0x1e4] ss:$8 sps:$4 sm:$0xff]   ;;  %v6822_v63 = vld [vmem:[#allocation5 + $0x60] ss:$8 sps:$4 sm:$0xff]   ;;  %v6759_v4 = vld [vmem:[#allocation5 + $0x1f4] ss:$8 sps:$4 sm:$0xff]   ;;  %v748_v6 = vrot.slane %v6785_v59, %v7475_v22  ;;  %v805_v7 = vrot.slane %v6787_v60, %v7475_v22  ;;  %v819_v8 = vrot.slane %v6789_v62, %v7475_v22 }
  0x4d   :  { %4035 = vmatprep.subr.bf16.mxu0 %v6727_v13  ;;  %3839 = vmatpush1.bf16.msra.mxu1 %v6796_v46  ;;  %v6756_v3 = vld [vmem:[#allocation5 + $0x1e0] ss:$8 sps:$4 sm:$0xff]   ;;  %v6831_v9 = vld [vmem:[#allocation5 + $0x74] ss:$8 sps:$4 sm:$0xff]   ;;  %v6836_v16 = vld [vmem:[#allocation5 + $0x70] ss:$8 sps:$4 sm:$0xff]  }
  0x4e   :  { %3840 = vmatprep.subr.bf16.mxu1 %v6797_v47  ;;  %v6803_v10 = vld [vmem:[#allocation2 + $0xe4] ss:$14 sps:$4 sm:$0xff]   ;;  %v752_v21 = vcombine.high %v734_v5, %v748_v6  ;;  %v6842_v24 = vld [vmem:[#allocation5 + $0x80] ss:$8 sps:$4 sm:$0xff]   ;;  %v751_v35 = vcombine.low %v734_v5, %v748_v6 }
  0x4f   :  { %v6809_v13 = vld [vmem:[#allocation2 + $0x138] ss:$14 sps:$4 sm:$0xff]   ;;  %v876_v26 = vrot.slane %v6803_v10, %v7475_v22  ;;  %v6823_v36 = vld [vmem:[#allocation2 + $0x154] ss:$14 sps:$4 sm:$0xff]   ;;  %v6825_v37 = vld [vmem:[#allocation2 + $0x170] ss:$14 sps:$4 sm:$0xff]  }
  0x50   :  { %4036 = vmatpush1.bf16.msra.mxu0 %v6729_v14  ;;  %v609_v14 = vcombine.low %v7478_v28, %v7481_v29  ;;  %v6837_v18 = vld [vmem:[#allocation5 + $0x84] ss:$8 sps:$4 sm:$0xff]   ;;  %v947_v28 = vrot.slane %v6807_v12, %v7475_v22  ;;  %v961_v29 = vrot.slane %v6809_v13, %v7475_v22  ;;  %v6773_v30 = vld [vmem:[#allocation5 + $0x200] ss:$8 sps:$4 sm:$0xff]   ;;  %v6779_v34 = vld [vmem:[#allocation5 + $0x210] ss:$8 sps:$4 sm:$0xff]  }
  0x51   :  { %4037 = vmatprep.subr.bf16.mxu0 %v6730_v15  ;;  %3841 = vmatpush1.bf16.msra.mxu1 %v6802_v50  ;;  %v680_v15 = vcombine.low %v7484_v32, %v7487_v33  ;;  %v6851_v33 = vld [vmem:[#allocation5 + $0x94] ss:$8 sps:$4 sm:$0xff]   ;;  %v894_v40 = vcombine.high %v876_v26, %v890_v27  ;;  %v6857_v44 = vld [vmem:[#allocation5 + $0xa4] ss:$8 sps:$4 sm:$0xff]   ;;  %v6793_v46 = vld [vmem:[#allocation5 + $0x220] ss:$8 sps:$4 sm:$0xff]   ;;  %v893_v58 = vcombine.low %v876_v26, %v890_v27 }
  0x52   :  { %3842 = vmatprep.subr.bf16.mxu1 %v6811_v52  ;;  %v965_v41 = vcombine.high %v947_v28, %v961_v29  ;;  %v6862_v47 = vld [vmem:[#allocation5 + $0xa0] ss:$8 sps:$4 sm:$0xff]   ;;  %v1032_v52 = vrot.slane %v6825_v37, %v7475_v22  ;;  %v964_v59 = vcombine.low %v947_v28, %v961_v29  ;;  %v6799_v62 = vld [vmem:[#allocation5 + $0x230] ss:$8 sps:$4 sm:$0xff]   ;;  %v6877_v6 = vld [vmem:[#allocation5 + $0xc4] ss:$8 sps:$4 sm:$0xff]  }
  0x53   :  { %v3073_v25 = vpack.c.bf16 %v680_v15, %v609_v14  ;;  %v6849_v60 = vld [vmem:[#allocation2 + $0x218] ss:$14 sps:$4 sm:$0xff]   ;;  %v6891_v27 = vld [vmem:[#allocation5 + $0xd4] ss:$8 sps:$4 sm:$0xff]  }
  0x54   :  { %4038 = vmatpush1.bf16.msra.mxu0 %v6732_v19  ;;  %v6762_v19 = vld [vmem:[#allocation5 + $0x1f0] ss:$8 sps:$4 sm:$0xff]   ;;  %v3088_v50 = vpack.c.bf16 %v965_v41, %v894_v40  ;;  %v1245_v13 = vrot.slane %v6849_v60, %v7475_v22  ;;  %v6882_v14 = vld [vmem:[#allocation5 + $0xc0] ss:$8 sps:$4 sm:$0xff]   ;;  %v6835_v28 = vld [vmem:[#allocation5 + $0x264] ss:$8 sps:$4 sm:$0xff]  }
  0x55   :  { %4039 = vmatprep.subr.bf16.mxu0 %v6733_v20  ;;  %3843 = vmatpush1.bf16.msra.mxu1 %v6816_v55  ;;  %v6775_v20 = vld [vmem:[#allocation5 + $0x204] ss:$8 sps:$4 sm:$0xff]   ;;  %v6876_v5 = vld [vmem:[#allocation5 + $0xb0] ss:$8 sps:$4 sm:$0xff]  }
  0x56   :  { %3844 = vmatprep.subr.bf16.mxu1 %v6817_v56  ;;  %v6843_v55 = vld [vmem:[#allocation2 + $0x1c4] ss:$14 sps:$4 sm:$0xff]   ;;  %v6845_v56 = vld [vmem:[#allocation2 + $0x1e0] ss:$14 sps:$4 sm:$0xff]   ;;  %v6869_v26 = vld [vmem:[#allocation2 + $0x288] ss:$14 sps:$4 sm:$0xff]  }
  0x57   :  { %v1160_v10 = vrot.slane %v6843_v55, %v7475_v22  ;;  %v1174_v11 = vrot.slane %v6845_v56, %v7475_v22  ;;  %v6896_v29 = vld [vmem:[#allocation5 + $0xd0] ss:$8 sps:$4 sm:$0xff]   ;;  %v6918_v60 = vld [vmem:[#allocation2 + $0x1c] ss:$14 sps:$4 sm:$0xff]  }
  0x58   :  { %4040 = vmatpush1.bf16.msra.mxu0 %v6735_v23  ;;  %v823_v23 = vcombine.high %v805_v7, %v819_v8  ;;  %v6883_v40 = vld [vmem:[#allocation2 + $0x2a4] ss:$14 sps:$4 sm:$0xff]   ;;  %v6885_v41 = vld [vmem:[#allocation2 + $0x2c0] ss:$14 sps:$4 sm:$0xff]  }
  0x59   :  { %4041 = vmatprep.subr.bf16.mxu0 %v6736_v31  ;;  %3845 = vmatpush1.bf16.msra.mxu1 %v6822_v63  ;;  %v6781_v31 = vld [vmem:[#allocation5 + $0x214] ss:$8 sps:$4 sm:$0xff]   ;;  %v6815_v63 = vld [vmem:[#allocation5 + $0x244] ss:$8 sps:$4 sm:$0xff]  }
  0x5a   :  { %3846 = vmatprep.subr.bf16.mxu1 %v6831_v9  ;;  %v3081_v32 = vpack.c.bf16 %v823_v23, %v752_v21  ;;  %v6821_v9 = vld [vmem:[#allocation5 + $0x254] ss:$8 sps:$4 sm:$0xff]   ;;  %v1178_v23 = vcombine.high %v1160_v10, %v1174_v11 }
  0x5c   :  { %4042 = vmatpush1.bf16.msra.mxu0 %v6738_v38  ;;  %v6827_v38 = vld [vmem:[#allocation2 + $0x18c] ss:$14 sps:$4 sm:$0xff]  }
  0x5d   :  { %4043 = vmatprep.subr.bf16.mxu0 %v6739_v39  ;;  %3847 = vmatpush1.bf16.msra.mxu1 %v6836_v16  ;;  %v822_v39 = vcombine.low %v805_v7, %v819_v8  ;;  %v3087_v7 = vpack.c.bf16 %v964_v59, %v893_v58  ;;  %v6813_v8 = vld [vmem:[#allocation5 + $0x240] ss:$8 sps:$4 sm:$0xff]   ;;  %v6819_v16 = vld [vmem:[#allocation5 + $0x250] ss:$8 sps:$4 sm:$0xff]  }
  0x5e   :  { %3848 = vmatprep.subr.bf16.mxu1 %v6837_v18  ;;  %v6863_v18 = vld [vmem:[#allocation2 + $0x234] ss:$14 sps:$4 sm:$0xff]  }
  0x5f   :  { %v6917_v58 = vld [vmem:[#allocation2] ss:$14 sps:$4 sm:$0xff]  }
  0x60   :  { %4044 = vmatpush1.bf16.msra.mxu0 %v6741_v42  ;;  %v6829_v42 = vld [vmem:[#allocation2 + $0x1a8] ss:$14 sps:$4 sm:$0xff]  }
  0x61   :  { %4045 = vmatprep.subr.bf16.mxu0 %v6742_v43  ;;  %3849 = vmatpush1.bf16.msra.mxu1 %v6842_v24  ;;  %v6856_v43 = vld [vmem:[#allocation5 + $0x90] ss:$8 sps:$4 sm:$0xff]  }
  0x62   :  { %3850 = vmatprep.subr.bf16.mxu1 %v6851_v33  ;;  %v6897_v33 = vld [vmem:[#allocation5 + $0xe4] ss:$8 sps:$4 sm:$0xff]  }
  0x64   :  { %4046 = vmatpush1.bf16.msra.mxu0 %v6744_v45  ;;  %v6795_v45 = vld [vmem:[#allocation5 + $0x224] ss:$8 sps:$4 sm:$0xff]  }
  0x65   :  { %4047 = vmatprep.subr.bf16.mxu0 %v6745_v48  ;;  %3851 = vmatpush1.bf16.msra.mxu1 %v6856_v43  ;;  %v3080_v48 = vpack.c.bf16 %v822_v39, %v751_v35  ;;  %v6841_v35 = vld [vmem:[#allocation5 + $0x274] ss:$8 sps:$4 sm:$0xff]   ;;  %v6902_v39 = vld [vmem:[#allocation5 + $0xe0] ss:$8 sps:$4 sm:$0xff]   ;;  %v1177_v43 = vcombine.low %v1160_v10, %v1174_v11  ;;  %v599_v10 = vrot.slane %v6918_v60, %v7475_v22  ;;  %v7260_v60 = vld [vmem:[#allocation5 + $0x124] ss:$8 sps:$4 sm:$0xff]  }
  0x66   :  { %3852 = vmatprep.subr.bf16.mxu1 %v6857_v44 }
  0x68   :  { %4048 = vmatpush1.bf16.msra.mxu0 %v6747_v49  ;;  %v6801_v49 = vld [vmem:[#allocation5 + $0x234] ss:$8 sps:$4 sm:$0xff]  }
  0x69   :  { %4049 = vmatprep.subr.bf16.mxu0 %v6748_v51  ;;  %v1018_v51 = vrot.slane %v6823_v36, %v7475_v22  ;;  %3853 = vmatpush1.bf16.msra.mxu1 %v6862_v47  ;;  %v6855_v47 = vld [vmem:[#allocation5 + $0x284] ss:$8 sps:$4 sm:$0xff]  }
  0x6c   :  { %4050 = vmatpush1.bf16.msra.mxu0 %v6750_v53  ;;  %v1089_v53 = vrot.slane %v6827_v38, %v7475_v22  ;;  %v1387_v38 = vrot.slane %v6869_v26, %v7475_v22 }
  0x6d   :  { %4051 = vmatprep.subr.bf16.mxu0 %v6751_v54  ;;  %v1103_v54 = vrot.slane %v6829_v42, %v7475_v22  ;;  %v6887_v42 = vld [vmem:[#allocation2 + $0x2dc] ss:$14 sps:$4 sm:$0xff]  }
  0x6e   :  { %v7533_v55 = vrot.slane %v6887_v42, %v7475_v22  ;;  %v6942_v42 = vld [vmem:[#allocation2 + $0xc4] ss:$14 sps:$4 sm:$0xff]  }
  0x6f   :  { %v1106_v21 = vcombine.low %v1089_v53, %v1103_v54 }
  0x70   :  { %4052 = vmatpush1.bf16.msra.mxu0 %v6753_v57  ;;  %v6847_v57 = vld [vmem:[#allocation2 + $0x1fc] ss:$14 sps:$4 sm:$0xff]  }
  0x71   :  { %4053 = vmatprep.subr.bf16.mxu0 %v6754_v61  ;;  %v6871_v61 = vld [vmem:[#allocation5 + $0xb4] ss:$8 sps:$4 sm:$0xff]   ;;  %v1231_v12 = vrot.slane %v6847_v57, %v7475_v22  ;;  %v6916_v57 = vld [vmem:[#allocation5 + $0xf0] ss:$8 sps:$4 sm:$0xff]  }
  0x72   :  { %3854 = vmatprep.subr.bf16.mxu1 %v6871_v61  ;;  %v6919_v61 = vld [vmem:[#allocation2 + $0x38] ss:$14 sps:$4 sm:$0xff]  }
  0x73   :  { %3855 = vmatpush1.bf16.msra.mxu1 %v6876_v5  ;;  %v1249_v24 = vcombine.high %v1231_v12, %v1245_v13  ;;  %v1248_v44 = vcombine.low %v1231_v12, %v1245_v13  ;;  %v656_v11 = vrot.slane %v6919_v61, %v7475_v22  ;;  %v6901_v61 = vld [vmem:[#allocation5 + $0x2d4] ss:$8 sps:$4 sm:$0xff]  }
  0x74   :  { %4054 = vmatpush1.bf16.msra.mxu0 %v6756_v3  ;;  %v1036_v3 = vcombine.high %v1018_v51, %v1032_v52  ;;  %3856 = vmatprep.subr.bf16.mxu1 %v6877_v6  ;;  %v6903_v6 = vld [vmem:[#allocation2 + $0x314] ss:$14 sps:$4 sm:$0xff]  }
  0x75   :  { %4055 = vmatprep.subr.bf16.mxu0 %v6759_v4  ;;  %v1107_v4 = vcombine.high %v1089_v53, %v1103_v54  ;;  %v7527_v53 = vrot.slane %v6883_v40, %v7475_v22  ;;  %v7530_v54 = vrot.slane %v6885_v41, %v7475_v22  ;;  %v6940_v40 = vld [vmem:[#allocation2 + $0x8c] ss:$14 sps:$4 sm:$0xff]   ;;  %v6941_v41 = vld [vmem:[#allocation2 + $0xa8] ss:$14 sps:$4 sm:$0xff]  }
  0x77   :  { %v3095_v15 = vpack.c.bf16 %v1107_v4, %v1036_v3  ;;  %3857 = vmatpush1.bf16.msra.mxu1 %v6882_v14  ;;  %v585_v3 = vrot.slane %v6917_v58, %v7475_v22  ;;  %v6859_v4 = vld [vmem:[#allocation5 + $0x290] ss:$8 sps:$4 sm:$0xff]   ;;  %v1462_v13 = vcombine.high %v7527_v53, %v7530_v54 }
  0x78   :  { %4056 = vmatpush1.bf16.msra.mxu0 %v6762_v19  ;;  %v6865_v19 = vld [vmem:[#allocation2 + $0x250] ss:$14 sps:$4 sm:$0xff]   ;;  %3858 = vmatprep.subr.bf16.mxu1 %v6891_v27 }
  0x79   :  { %4218 = vmatprep.subr.bf16.mxu0 %v6775_v20  ;;  %v1035_v20 = vcombine.low %v1018_v51, %v1032_v52  ;;  %v7517_v36 = vrot.slane %v6865_v19, %v7475_v22  ;;  %v3101_v51 = vpack.c.bf16 %v1248_v44, %v1177_v43  ;;  %v6853_v52 = vld [vmem:[#allocation5 + $0x280] ss:$8 sps:$4 sm:$0xff]   ;;  %v6875_v19 = vld [vmem:[#allocation5 + $0x2a4] ss:$8 sps:$4 sm:$0xff]   ;;  %v7259_v58 = vld [vmem:[#allocation5 + $0x110] ss:$8 sps:$4 sm:$0xff]  }
  0x7b   :  { %4058 = vmatmul.mubr.bf16.vlgmr.msra.gmra.mrb[0].mxu0 %v3073_v25  ;;  %v6867_v25 = vld [vmem:[#allocation2 + $0x26c] ss:$14 sps:$4 sm:$0xff]   ;;  %3859 = vmatpush1.bf16.msra.mxu1 %v6896_v29 }
  0x7c   :  { %4219 = vmatpush1.bf16.msra.mxu0 %v6773_v30  ;;  %4067 = vmatprep.mubr.bf16.mxu0 %v3081_v32  ;;  %v3094_v30 = vpack.c.bf16 %v1106_v21, %v1035_v20  ;;  %v7514_v32 = vrot.slane %v6863_v18, %v7475_v22  ;;  %v7520_v37 = vrot.slane %v6867_v25, %v7475_v22 }
  0x7d   :  { %4220 = vmatprep.subr.bf16.mxu0 %v6781_v31  ;;  %v3102_v31 = vpack.c.bf16 %v1249_v24, %v1178_v23  ;;  %3860 = vmatprep.subr.bf16.mxu1 %v6897_v33  ;;  %v607_v18 = vcombine.low %v585_v3, %v599_v10  ;;  %v6873_v23 = vld [vmem:[#allocation5 + $0x2a0] ss:$8 sps:$4 sm:$0xff]   ;;  %v6881_v24 = vld [vmem:[#allocation5 + $0x2b4] ss:$8 sps:$4 sm:$0xff]  }
  0x7e   :  { %v1319_v5 = vcombine.low %v7514_v32, %v7517_v36  ;;  %v1390_v12 = vcombine.low %v7520_v37, %v1387_v38  ;;  %v6927_v33 = vld [vmem:[#allocation2 + $0x24] ss:$14 sps:$4 sm:$0xff]  }
  0x7f   :  { %3861 = vmatpush1.bf16.msra.mxu1 %v6902_v39  ;;  %v6879_v39 = vld [vmem:[#allocation5 + $0x2b0] ss:$8 sps:$4 sm:$0xff]  }
  0x80   :  { %4221 = vmatpush1.bf16.msra.mxu0 %v6779_v34  ;;  %v6833_v34 = vld [vmem:[#allocation5 + $0x260] ss:$8 sps:$4 sm:$0xff]  }
  0x81   :  { %4222 = vmatprep.subr.bf16.mxu0 %v6795_v45  ;;  %v6889_v45 = vld [vmem:[#allocation2 + $0x2f8] ss:$14 sps:$4 sm:$0xff]  }
  0x82   :  { %v7536_v56 = vrot.slane %v6889_v45, %v7475_v22 }
  0x83   :  { %4068 = vmatmul.mubr.bf16.gmra.mrb[4].mxu0 %v3080_v48  ;;  %v1320_v48 = vcombine.high %v7514_v32, %v7517_v36  ;;  %v6924_v32 = vld [vmem:[#allocation2 + $0x8] ss:$14 sps:$4 sm:$0xff]   ;;  %v6930_v36 = vld [vmem:[#allocation2 + $0x40] ss:$14 sps:$4 sm:$0xff]  }
  0x84   :  { %4223 = vmatpush1.bf16.msra.mxu0 %v6793_v46  ;;  %4077 = vmatprep.mubr.bf16.mxu0 %v3088_v50  ;;  %v6839_v46 = vld [vmem:[#allocation5 + $0x270] ss:$8 sps:$4 sm:$0xff]   ;;  %v6911_v50 = vld [vmem:[#allocation5 + $0xf4] ss:$8 sps:$4 sm:$0xff]   ;;  %v1533_v14 = vcombine.high %v7533_v55, %v7536_v56 }
  0x85   :  { %4224 = vmatprep.subr.bf16.mxu0 %v6801_v49  ;;  %v1391_v49 = vcombine.high %v7520_v37, %v1387_v38  ;;  %3862 = vmatprep.subr.bf16.mxu1 %v6911_v50  ;;  %v6933_v37 = vld [vmem:[#allocation2 + $0x5c] ss:$14 sps:$4 sm:$0xff]   ;;  %v812_v50 = vrot.slane %v6942_v42, %v7475_v22  ;;  %v6965_v42 = vld [vmem:[#allocation2 + $0x120] ss:$14 sps:$4 sm:$0xff]  }
  0x86   :  { %3863 = vmatpush1.bf16.msra.mxu1 %v6916_v57  ;;  %v3116_v25 = vpack.c.bf16 %v1533_v14, %v1462_v13  ;;  %v6939_v38 = vld [vmem:[#allocation2 + $0x70] ss:$14 sps:$4 sm:$0xff]   ;;  %v6958_v13 = vld [vmem:[#allocation2 + $0x134] ss:$14 sps:$4 sm:$0xff]  }
  0x87   :  { %v3109_v59 = vpack.c.bf16 %v1391_v49, %v1320_v48  ;;  %6409 = vmatprep.subr.bf16.mxu1 %v7463_v0  ;;  %v3108_v0 = vpack.c.bf16 %v1390_v12, %v1319_v5  ;;  %v727_v43 = vrot.slane %v6939_v38, %v7475_v22  ;;  %v6895_v48 = vld [vmem:[#allocation5 + $0x2c4] ss:$8 sps:$4 sm:$0xff]   ;;  %v798_v49 = vrot.slane %v6941_v41, %v7475_v22 }
  0x88   :  { %4225 = vmatpush1.bf16.msra.mxu0 %v6799_v62  ;;  %v6920_v62 = vld [vmem:[#allocation2 + $0x54] ss:$14 sps:$4 sm:$0xff]   ;;  %v6957_v12 = vld [vmem:[#allocation2 + $0x118] ss:$14 sps:$4 sm:$0xff]  }
  0x89   :  { %4226 = vmatprep.subr.bf16.mxu0 %v6815_v63  ;;  %v6861_v63 = vld [vmem:[#allocation5 + $0x294] ss:$8 sps:$4 sm:$0xff]   ;;  %v820_v57 = vcombine.low %v798_v49, %v812_v50 }
  0x8b   :  { %4078 = vmatmul.mubr.bf16.gmra.mrb[8].mxu0 %v3087_v7  ;;  %v6905_v7 = vld [vmem:[#allocation2 + $0x330] ss:$14 sps:$4 sm:$0xff]  }
  0x8c   :  { %4227 = vmatpush1.bf16.msra.mxu0 %v6813_v8  ;;  %4087 = vmatprep.mubr.bf16.mxu0 %v3095_v15  ;;  %v6907_v8 = vld [vmem:[#allocation2 + $0x34c] ss:$14 sps:$4 sm:$0xff]   ;;  %v670_v15 = vrot.slane %v6920_v62, %v7475_v22  ;;  %v7554_v29 = vrot.slane %v6905_v7, %v7475_v22 }
  0x8d   :  { %4228 = vmatprep.subr.bf16.mxu0 %v6821_v9  ;;  %v6909_v9 = vld [vmem:[#allocation2 + $0x368] ss:$14 sps:$4 sm:$0xff]  }
  0x8e   :  { %v679_v20 = vcombine.high %v656_v11, %v670_v15  ;;  %v678_v21 = vcombine.low %v656_v11, %v670_v15  ;;  %v6943_v7 = vld [vmem:[#allocation2 + $0x78] ss:$14 sps:$4 sm:$0xff]   ;;  %v6956_v11 = vld [vmem:[#allocation2 + $0xfc] ss:$14 sps:$4 sm:$0xff]  }
  0x90   :  { %4229 = vmatpush1.bf16.msra.mxu0 %v6819_v16  ;;  %v608_v16 = vcombine.high %v585_v3, %v599_v10  ;;  %v3071_v27 = vpack.c.bf16 %v678_v21, %v607_v18  ;;  %v6955_v3 = vld [vmem:[#allocation2 + $0xe0] ss:$14 sps:$4 sm:$0xff]   ;;  %v883_v18 = vrot.slane %v6956_v11, %v7475_v22  ;;  %v954_v21 = vrot.slane %v6958_v13, %v7475_v22  ;;  %v6975_v13 = vld [vmem:[#allocation2 + $0x158] ss:$14 sps:$4 sm:$0xff]  }
  0x91   :  { %4230 = vmatprep.subr.bf16.mxu0 %v6835_v28  ;;  %v7551_v28 = vrot.slane %v6903_v6, %v7475_v22  ;;  %v6952_v10 = vld [vmem:[#allocation2 + $0xcc] ss:$14 sps:$4 sm:$0xff]  }
  0x92   :  { %v3072_v26 = vpack.c.bf16 %v679_v20, %v608_v16  ;;  %v869_v16 = vrot.slane %v6955_v3, %v7475_v22  ;;  %v940_v20 = vrot.slane %v6957_v12, %v7475_v22 }
  0x93   :  { %4088 = vmatmul.mubr.bf16.gmra.mrb[12].mxu0 %v3094_v30  ;;  %v7557_v30 = vrot.slane %v6907_v8, %v7475_v22  ;;  %v1604_v44 = vcombine.high %v7551_v28, %v7554_v29  ;;  %v1603_v5 = vcombine.low %v7551_v28, %v7554_v29  ;;  %v6946_v8 = vld [vmem:[#allocation2 + $0x94] ss:$14 sps:$4 sm:$0xff]  }
  0x94   :  { %4231 = vmatpush1.bf16.msra.mxu0 %v6833_v34  ;;  %4097 = vmatprep.mubr.bf16.mxu0 %v3102_v31  ;;  %v7560_v31 = vrot.slane %v6909_v9, %v7475_v22  ;;  %v1461_v34 = vcombine.low %v7527_v53, %v7530_v54  ;;  %v7583_v54 = vrot.slane %v6930_v36, %v7475_v22  ;;  %v6949_v9 = vld [vmem:[#allocation2 + $0xb0] ss:$14 sps:$4 sm:$0xff]   ;;  %v6959_v36 = vld [vmem:[#allocation2 + $0xe8] ss:$14 sps:$4 sm:$0xff]  }
  0x95   :  { %4232 = vmatprep.subr.bf16.mxu0 %v6841_v35  ;;  %v1532_v35 = vcombine.low %v7533_v55, %v7536_v56  ;;  %3864 = vmatprep.mubr.bf16.mxu1 %v3072_v26  ;;  %v7586_v55 = vrot.slane %v6933_v37, %v7475_v22  ;;  %v821_v56 = vcombine.high %v798_v49, %v812_v50  ;;  %v6913_v26 = vld [vmem:[#allocation5 + $0x2e0] ss:$8 sps:$4 sm:$0xff]   ;;  %v6962_v37 = vld [vmem:[#allocation2 + $0x104] ss:$14 sps:$4 sm:$0xff]  }
  0x96   :  { %3865 = vmatmul.mubr.bf16.vlgmr.msra.gmra.mrb[0].mxu1 %v3071_v27  ;;  %v1675_v45 = vcombine.high %v7557_v30, %v7560_v31  ;;  %v1674_v6 = vcombine.low %v7557_v30, %v7560_v31  ;;  %v6923_v27 = vld [vmem:[#allocation5 + $0x2f4] ss:$8 sps:$4 sm:$0xff]   ;;  %v963_v29 = vcombine.high %v940_v20, %v954_v21  ;;  %v962_v30 = vcombine.low %v940_v20, %v954_v21  ;;  %v7263_v49 = vld [vmem:[#allocation5 + $0x130] ss:$8 sps:$4 sm:$0xff]  }
  0x97   :  { %6425 = vmatpush1.bf16.msra.mxu1 %v7465_v1  ;;  %v7577_v1 = vrot.slane %v6924_v32, %v7475_v22  ;;  %v715_v15 = vcombine.high %v7583_v54, %v7586_v55  ;;  %v7262_v31 = vld [vmem:[#allocation5 + $0x134] ss:$8 sps:$4 sm:$0xff]   ;;  %v7601_v32 = vrot.slane %v6943_v7, %v7475_v22 }
  0x98   :  { %4233 = vmatpush1.bf16.msra.mxu0 %v6839_v46  ;;  %v741_v46 = vrot.slane %v6940_v40, %v7475_v22  ;;  %6410 = vmatprep.subr.bf16.mxu1 %v7468_v2  ;;  %v6893_v2 = vld [vmem:[#allocation5 + $0x2c0] ss:$8 sps:$4 sm:$0xff]   ;;  %v7266_v7 = vld [vmem:[#allocation5 + $0x154] ss:$8 sps:$4 sm:$0xff]  }
  0x99   :  { %4234 = vmatprep.subr.bf16.mxu0 %v6855_v47  ;;  %v3115_v47 = vpack.c.bf16 %v1532_v35, %v1461_v34  ;;  %v7607_v34 = vrot.slane %v6949_v9, %v7475_v22  ;;  %v7610_v35 = vrot.slane %v6952_v10, %v7475_v22  ;;  %v6987_v10 = vld [vmem:[#allocation2 + $0x1c0] ss:$14 sps:$4 sm:$0xff]  }
  0x9a   :  { %v749_v53 = vcombine.low %v727_v43, %v741_v46  ;;  %v6990_v20 = vld [vmem:[#allocation2 + $0x214] ss:$14 sps:$4 sm:$0xff]  }
  0x9b   :  { %4098 = vmatmul.mubr.bf16.gmra.mrb[16].mxu0 %v3101_v51  ;;  %v7580_v51 = vrot.slane %v6927_v33, %v7475_v22  ;;  %6426 = vmatpush1.bf16.msra.mxu1 %v7259_v58  ;;  %v7604_v33 = vrot.slane %v6946_v8, %v7475_v22  ;;  %v7628_v58 = vrot.slane %v6962_v37, %v7475_v22 }
  0x9c   :  { %4235 = vmatpush1.bf16.msra.mxu0 %v6853_v52  ;;  %4107 = vmatprep.mubr.bf16.mxu0 %v3109_v59  ;;  %v750_v52 = vcombine.high %v727_v43, %v741_v46  ;;  %v3123_v59 = vpack.c.bf16 %v1675_v45, %v1604_v44  ;;  %v6968_v43 = vld [vmem:[#allocation2 + $0x13c] ss:$14 sps:$4 sm:$0xff]   ;;  %v6921_v45 = vld [vmem:[#allocation5 + $0x2f0] ss:$8 sps:$4 sm:$0xff]   ;;  %v856_v12 = vcombine.low %v7607_v34, %v7610_v35 }
  0x9d   :  { %4236 = vmatprep.subr.bf16.mxu0 %v6861_v63  ;;  %6411 = vmatprep.subr.bf16.mxu1 %v7260_v60  ;;  %v3078_v63 = vpack.c.bf16 %v820_v57, %v749_v53  ;;  %v644_v14 = vcombine.high %v7577_v1, %v7580_v51  ;;  %v643_v38 = vcombine.low %v7577_v1, %v7580_v51  ;;  %v6971_v44 = vld [vmem:[#allocation2 + $0x150] ss:$14 sps:$4 sm:$0xff]   ;;  %v6972_v46 = vld [vmem:[#allocation2 + $0x16c] ss:$14 sps:$4 sm:$0xff]  }
  0x9e   :  { %v3079_v62 = vpack.c.bf16 %v821_v56, %v750_v52  ;;  %v1011_v50 = vrot.slane %v6971_v44, %v7475_v22  ;;  %v786_v1 = vcombine.high %v7601_v32, %v7604_v33  ;;  %v857_v51 = vcombine.high %v7607_v34, %v7610_v35  ;;  %v7264_v60 = vld [vmem:[#allocation5 + $0x144] ss:$8 sps:$4 sm:$0xff]  }
  0x9f   :  { %v3076_v28 = vpack.c.bf16 %v715_v15, %v644_v14  ;;  %v1025_v52 = vrot.slane %v6972_v46, %v7475_v22  ;;  %v7625_v57 = vrot.slane %v6959_v36, %v7475_v22  ;;  %v785_v11 = vcombine.low %v7601_v32, %v7604_v33  ;;  %v6978_v14 = vld [vmem:[#allocation2 + $0x174] ss:$14 sps:$4 sm:$0xff]   ;;  %v6981_v15 = vld [vmem:[#allocation2 + $0x190] ss:$14 sps:$4 sm:$0xff]  }
  0xa0   :  { %4237 = vmatpush1.bf16.msra.mxu0 %v6859_v4  ;;  %v6899_v4 = vld [vmem:[#allocation5 + $0x2d0] ss:$8 sps:$4 sm:$0xff]   ;;  %3874 = vmatprep.mubr.bf16.mxu1 %v3079_v62  ;;  %v7634_v62 = vrot.slane %v6968_v43, %v7475_v22  ;;  %v7268_v34 = vld [vmem:[#allocation5 + $0x164] ss:$8 sps:$4 sm:$0xff]   ;;  %v7649_v35 = vrot.slane %v6975_v13, %v7475_v22  ;;  %v7652_v36 = vrot.slane %v6978_v14, %v7475_v22 }
  0xa1   :  { %4238 = vmatprep.subr.bf16.mxu0 %v6875_v19  ;;  %v6915_v19 = vld [vmem:[#allocation5 + $0x2e4] ss:$8 sps:$4 sm:$0xff]   ;;  %3875 = vmatmul.mubr.bf16.gmra.mrb[4].mxu1 %v3078_v63  ;;  %v928_v21 = vcombine.high %v7625_v57, %v7628_v58  ;;  %v7655_v37 = vrot.slane %v6981_v15, %v7475_v22  ;;  %v7013_v15 = vld [vmem:[#allocation2 + $0x270] ss:$14 sps:$4 sm:$0xff]  }
  0xa2   :  { %v7000_v46 = vld [vmem:[#allocation2 + $0x21c] ss:$14 sps:$4 sm:$0xff]   ;;  %v7007_v13 = vld [vmem:[#allocation2 + $0x238] ss:$14 sps:$4 sm:$0xff]   ;;  %v7010_v14 = vld [vmem:[#allocation2 + $0x254] ss:$14 sps:$4 sm:$0xff]  }
  0xa3   :  { %4108 = vmatmul.mubr.bf16.gmra.mrb[20].mxu0 %v3108_v0  ;;  %v892_v0 = vcombine.high %v869_v16, %v883_v18 }
  0xa4   :  { %4239 = vmatpush1.bf16.msra.mxu0 %v6873_v23  ;;  %4117 = vmatprep.mubr.bf16.mxu0 %v3116_v25  ;;  %v891_v23 = vcombine.low %v869_v16, %v883_v18  ;;  %v3122_v25 = vpack.c.bf16 %v1674_v6, %v1603_v5  ;;  %v6936_v5 = vld [vmem:[#allocation5 + $0x300] ss:$8 sps:$4 sm:$0xff]   ;;  %v3083_v6 = vpack.c.bf16 %v857_v51, %v786_v1  ;;  %v6984_v16 = vld [vmem:[#allocation2 + $0x1ac] ss:$14 sps:$4 sm:$0xff]  }
  0xa5   :  { %4240 = vmatprep.subr.bf16.mxu0 %v6881_v24  ;;  %v7261_v24 = vld [vmem:[#allocation5 + $0x120] ss:$8 sps:$4 sm:$0xff]   ;;  %v3086_v40 = vpack.c.bf16 %v963_v29, %v892_v0  ;;  %v7267_v29 = vld [vmem:[#allocation5 + $0x150] ss:$8 sps:$4 sm:$0xff]  }
  0xa6   :  { %6427 = vmatpush1.bf16.msra.mxu1 %v7261_v24  ;;  %v3085_v41 = vpack.c.bf16 %v962_v30, %v891_v23  ;;  %v6988_v18 = vld [vmem:[#allocation2 + $0x1dc] ss:$14 sps:$4 sm:$0xff]   ;;  %v1153_v23 = vrot.slane %v6987_v10, %v7475_v22  ;;  %v3082_v30 = vpack.c.bf16 %v856_v12, %v785_v11  ;;  %v7019_v10 = vld [vmem:[#allocation2 + $0x2a0] ss:$14 sps:$4 sm:$0xff]   ;;  %v1069_v11 = vcombine.low %v7649_v35, %v7652_v36 }
  0xa7   :  { %6412 = vmatprep.subr.bf16.mxu1 %v7262_v31  ;;  %3884 = vmatprep.mubr.bf16.mxu1 %v3086_v40  ;;  %v1167_v24 = vrot.slane %v6988_v18, %v7475_v22  ;;  %v6994_v40 = vld [vmem:[#allocation2 + $0x1e4] ss:$14 sps:$4 sm:$0xff]   ;;  %v7269_v1 = vld [vmem:[#allocation5 + $0x160] ss:$8 sps:$4 sm:$0xff]  }
  0xa8   :  { %4241 = vmatpush1.bf16.msra.mxu0 %v6879_v39  ;;  %v714_v39 = vcombine.low %v7583_v54, %v7586_v55  ;;  %v6938_v54 = vld [vmem:[#allocation5 + $0x304] ss:$8 sps:$4 sm:$0xff]  }
  0xa9   :  { %4242 = vmatprep.subr.bf16.mxu0 %v6895_v48  ;;  %v6974_v48 = vld [vmem:[#allocation2 + $0x1a4] ss:$14 sps:$4 sm:$0xff]   ;;  %3885 = vmatmul.mubr.bf16.gmra.mrb[8].mxu1 %v3085_v41  ;;  %v927_v41 = vcombine.low %v7625_v57, %v7628_v58  ;;  %v7020_v18 = vld [vmem:[#allocation2 + $0x2bc] ss:$14 sps:$4 sm:$0xff]  }
  0xaa   :  { %6428 = vmatpush1.bf16.msra.mxu1 %v7263_v49  ;;  %v3075_v53 = vpack.c.bf16 %v714_v39, %v643_v38  ;;  %v1096_v56 = vrot.slane %v6974_v48, %v7475_v22  ;;  %v7658_v38 = vrot.slane %v6984_v16, %v7475_v22  ;;  %v6991_v39 = vld [vmem:[#allocation2 + $0x1c8] ss:$14 sps:$4 sm:$0xff]   ;;  %v7004_v48 = vld [vmem:[#allocation2 + $0x24c] ss:$14 sps:$4 sm:$0xff]  }
  0xab   :  { %4118 = vmatmul.mubr.bf16.gmra.mrb[24].mxu0 %v3115_v47  ;;  %v6973_v47 = vld [vmem:[#allocation2 + $0x188] ss:$14 sps:$4 sm:$0xff]   ;;  %6413 = vmatprep.subr.bf16.mxu1 %v7264_v60  ;;  %v7016_v16 = vld [vmem:[#allocation2 + $0x28c] ss:$14 sps:$4 sm:$0xff]  }
  0xac   :  { %4243 = vmatpush1.bf16.msra.mxu0 %v6893_v2  ;;  %4127 = vmatprep.mubr.bf16.mxu0 %v3123_v59  ;;  %v1082_v55 = vrot.slane %v6973_v47, %v7475_v22  ;;  %v1034_v2 = vcombine.high %v1011_v50, %v1025_v52  ;;  %v1033_v59 = vcombine.low %v1011_v50, %v1025_v52  ;;  %v7003_v47 = vld [vmem:[#allocation2 + $0x230] ss:$14 sps:$4 sm:$0xff]   ;;  %v7005_v49 = vld [vmem:[#allocation2 + $0x268] ss:$14 sps:$4 sm:$0xff]  }
  0xad   :  { %4244 = vmatprep.subr.bf16.mxu0 %v6901_v61  ;;  %v7631_v61 = vrot.slane %v6965_v42, %v7475_v22  ;;  %v7006_v50 = vld [vmem:[#allocation2 + $0x284] ss:$14 sps:$4 sm:$0xff]   ;;  %v1295_v51 = vrot.slane %v7003_v47, %v7475_v22  ;;  %v1070_v52 = vcombine.high %v7649_v35, %v7652_v36  ;;  %v1140_v12 = vcombine.low %v7655_v37, %v7658_v38  ;;  %v7029_v47 = vld [vmem:[#allocation2 + $0x2e0] ss:$14 sps:$4 sm:$0xff]  }
  0xae   :  { %v1105_v63 = vcombine.high %v1082_v55, %v1096_v56  ;;  %v1104_v3 = vcombine.low %v1082_v55, %v1096_v56  ;;  %v1366_v55 = vrot.slane %v7005_v49, %v7475_v22  ;;  %v1380_v57 = vrot.slane %v7006_v50, %v7475_v22  ;;  %v7270_v58 = vld [vmem:[#allocation5 + $0x174] ss:$8 sps:$4 sm:$0xff]   ;;  %v7276_v36 = vld [vmem:[#allocation5 + $0x1a4] ss:$8 sps:$4 sm:$0xff]  }
  0xaf   :  { %v999_v0 = vcombine.high %v7631_v61, %v7634_v62  ;;  %v998_v42 = vcombine.low %v7631_v61, %v7634_v62  ;;  %v7271_v62 = vld [vmem:[#allocation5 + $0x170] ss:$8 sps:$4 sm:$0xff]  }
  0xb0   :  { %4245 = vmatpush1.bf16.msra.mxu0 %v6899_v4  ;;  %v7265_v4 = vld [vmem:[#allocation5 + $0x140] ss:$8 sps:$4 sm:$0xff]   ;;  %v3093_v8 = vpack.c.bf16 %v1105_v63, %v1034_v2  ;;  %v3092_v9 = vpack.c.bf16 %v1104_v3, %v1033_v59  ;;  %v7673_v2 = vrot.slane %v6991_v39, %v7475_v22  ;;  %v7676_v59 = vrot.slane %v6994_v40, %v7475_v22  ;;  %v7036_v50 = vld [vmem:[#allocation2 + $0x32c] ss:$14 sps:$4 sm:$0xff]  }
  0xb1   :  { %4246 = vmatprep.subr.bf16.mxu0 %v6915_v19  ;;  %6429 = vmatpush1.bf16.msra.mxu1 %v7265_v4  ;;  %v6989_v19 = vld [vmem:[#allocation2 + $0x1f8] ss:$14 sps:$4 sm:$0xff]   ;;  %v3090_v31 = vpack.c.bf16 %v999_v0, %v928_v21  ;;  %v3089_v56 = vpack.c.bf16 %v998_v42, %v927_v41  ;;  %v7682_v3 = vrot.slane %v7000_v46, %v7475_v22  ;;  %v7035_v49 = vld [vmem:[#allocation2 + $0x310] ss:$14 sps:$4 sm:$0xff]  }
  0xb2   :  { %6414 = vmatprep.subr.bf16.mxu1 %v7266_v7  ;;  %3894 = vmatprep.mubr.bf16.mxu1 %v3093_v8  ;;  %v1389_v4 = vcombine.high %v1366_v55, %v1380_v57  ;;  %v7273_v21 = vld [vmem:[#allocation5 + $0x180] ss:$8 sps:$4 sm:$0xff]   ;;  %v1212_v0 = vcombine.high %v7673_v2, %v7676_v59  ;;  %v7703_v39 = vrot.slane %v7013_v15, %v7475_v22  ;;  %v7026_v42 = vld [vmem:[#allocation2 + $0x2c4] ss:$14 sps:$4 sm:$0xff]  }
  0xb3   :  { %4128 = vmatmul.mubr.bf16.gmra.mrb[28].mxu0 %v3122_v25  ;;  %3895 = vmatmul.mubr.bf16.gmra.mrb[12].mxu1 %v3092_v9  ;;  %v1224_v25 = vrot.slane %v6989_v19, %v7475_v22  ;;  %v7021_v19 = vld [vmem:[#allocation2 + $0x2d8] ss:$14 sps:$4 sm:$0xff]   ;;  %v7706_v40 = vrot.slane %v7016_v16, %v7475_v22  ;;  %v7042_v16 = vld [vmem:[#allocation2 + $0x334] ss:$14 sps:$4 sm:$0xff]  }
  0xb4   :  { %4247 = vmatpush1.bf16.msra.mxu0 %v6913_v26  ;;  %4250 = vmatprep.mubr.bf16.mxu0 %v3076_v28  ;;  %v1238_v26 = vrot.slane %v6990_v20, %v7475_v22  ;;  %v1175_v28 = vcombine.low %v1153_v23, %v1167_v24  ;;  %v7022_v20 = vld [vmem:[#allocation2 + $0x2f4] ss:$14 sps:$4 sm:$0xff]   ;;  %v7039_v15 = vld [vmem:[#allocation2 + $0x318] ss:$14 sps:$4 sm:$0xff]  }
  0xb5   :  { %4248 = vmatprep.subr.bf16.mxu0 %v6923_v27  ;;  %v1176_v27 = vcombine.high %v1153_v23, %v1167_v24  ;;  %6430 = vmatpush1.bf16.msra.mxu1 %v7267_v29  ;;  %v1437_v24 = vrot.slane %v7019_v10, %v7475_v22  ;;  %v7023_v41 = vld [vmem:[#allocation2 + $0x2a8] ss:$14 sps:$4 sm:$0xff]  }
  0xb6   :  { %v1247_v32 = vcombine.high %v1224_v25, %v1238_v26  ;;  %v1246_v33 = vcombine.low %v1224_v25, %v1238_v26  ;;  %6415 = vmatprep.subr.bf16.mxu1 %v7268_v34  ;;  %v1451_v25 = vrot.slane %v7020_v18, %v7475_v22  ;;  %v1508_v26 = vrot.slane %v7021_v19, %v7475_v22  ;;  %v7045_v18 = vld [vmem:[#allocation2 + $0x350] ss:$14 sps:$4 sm:$0xff]   ;;  %v7048_v19 = vld [vmem:[#allocation2 + $0x36c] ss:$14 sps:$4 sm:$0xff]  }
  0xb8   :  { %4249 = vmatpush1.bf16.msra.mxu0 %v6921_v45  ;;  %v3100_v43 = vpack.c.bf16 %v1247_v32, %v1176_v27  ;;  %v3099_v44 = vpack.c.bf16 %v1246_v33, %v1175_v28  ;;  %v6997_v45 = vld [vmem:[#allocation2 + $0x200] ss:$14 sps:$4 sm:$0xff]   ;;  %v1522_v27 = vrot.slane %v7022_v20, %v7475_v22  ;;  %v7274_v28 = vld [vmem:[#allocation5 + $0x194] ss:$8 sps:$4 sm:$0xff]   ;;  %v1460_v29 = vcombine.high %v1437_v24, %v1451_v25 }
  0xb9   :  { %4411 = vmatprep.subr.bf16.mxu0 %v6938_v54  ;;  %6431 = vmatpush1.bf16.msra.mxu1 %v7269_v1  ;;  %v1309_v54 = vrot.slane %v7004_v48, %v7475_v22  ;;  %v7679_v63 = vrot.slane %v6997_v45, %v7475_v22  ;;  %v3096_v32 = vpack.c.bf16 %v1140_v12, %v1069_v11  ;;  %v7032_v48 = vld [vmem:[#allocation2 + $0x2fc] ss:$14 sps:$4 sm:$0xff]   ;;  %v7051_v12 = vld [vmem:[#allocation2 + $0x380] ss:$14 sps:$4 sm:$0xff]  }
  0xba   :  { %3904 = vmatprep.mubr.bf16.mxu1 %v3100_v43  ;;  %6416 = vmatprep.subr.bf16.mxu1 %v7270_v58  ;;  %v1531_v34 = vcombine.high %v1508_v26, %v1522_v27  ;;  %v1530_v35 = vcombine.low %v1508_v26, %v1522_v27  ;;  %v1211_v43 = vcombine.low %v7673_v2, %v7676_v59  ;;  %v7037_v1 = vld [vmem:[#allocation2 + $0x348] ss:$14 sps:$4 sm:$0xff]  }
  0xbb   :  { %4251 = vmatmul.mubr.bf16.vlgmr.msra.gmra.mrb[0].mxu0 %v3075_v53  ;;  %v1141_v53 = vcombine.high %v7655_v37, %v7658_v38  ;;  %3905 = vmatmul.mubr.bf16.gmra.mrb[16].mxu1 %v3099_v44  ;;  %v1318_v60 = vcombine.high %v1295_v51, %v1309_v54  ;;  %v1317_v61 = vcombine.low %v1295_v51, %v1309_v54  ;;  %v7038_v51 = vld [vmem:[#allocation2 + $0x364] ss:$14 sps:$4 sm:$0xff]   ;;  %v7053_v20 = vld [vmem:[#allocation2 + $0x39c] ss:$14 sps:$4 sm:$0xff]  }
  0xbc   :  { %4412 = vmatpush1.bf16.msra.mxu0 %v6936_v5  ;;  %4260 = vmatprep.mubr.bf16.mxu0 %v3083_v6  ;;  %v1388_v5 = vcombine.low %v1366_v55, %v1380_v57  ;;  %v7272_v6 = vld [vmem:[#allocation5 + $0x184] ss:$8 sps:$4 sm:$0xff]   ;;  %v1283_v23 = vcombine.high %v7679_v63, %v7682_v3  ;;  %v7697_v37 = vrot.slane %v7007_v13, %v7475_v22  ;;  %v7278_v59 = vld [vmem:[#allocation5 + $0x1b4] ss:$8 sps:$4 sm:$0xff]  }
  0xbd   :  { %6432 = vmatpush1.bf16.msra.mxu1 %v7271_v62  ;;  %v3097_v7 = vpack.c.bf16 %v1141_v53, %v1070_v52  ;;  %v3107_v8 = vpack.c.bf16 %v1389_v4, %v1318_v60  ;;  %v7700_v38 = vrot.slane %v7010_v14, %v7475_v22  ;;  %v1282_v44 = vcombine.low %v7679_v63, %v7682_v3  ;;  %v7277_v52 = vld [vmem:[#allocation5 + $0x1a0] ss:$8 sps:$4 sm:$0xff]   ;;  %v7279_v3 = vld [vmem:[#allocation5 + $0x1b0] ss:$8 sps:$4 sm:$0xff]  }
  0xbe   :  { %6417 = vmatprep.subr.bf16.mxu1 %v7272_v6  ;;  %v3106_v9 = vpack.c.bf16 %v1388_v5, %v1317_v61  ;;  %v3104_v33 = vpack.c.bf16 %v1283_v23, %v1212_v0  ;;  %v3114_v45 = vpack.c.bf16 %v1531_v34, %v1460_v29  ;;  %v1579_v53 = vrot.slane %v7035_v49, %v7475_v22  ;;  %v7057_v0 = vld [vmem:[#allocation2 + $0x3d4] ss:$14 sps:$4 sm:$0xff]  }
  0xbf   :  { %3914 = vmatprep.mubr.bf16.mxu1 %v3107_v8  ;;  %v1354_v54 = vcombine.high %v7697_v37, %v7700_v38  ;;  %v1425_v55 = vcombine.high %v7703_v39, %v7706_v40  ;;  %v1650_v57 = vrot.slane %v7037_v1, %v7475_v22  ;;  %v3103_v58 = vpack.c.bf16 %v1282_v44, %v1211_v43  ;;  %v7280_v8 = vld [vmem:[#allocation5 + $0x1c4] ss:$8 sps:$4 sm:$0xff]   ;;  %v7281_v23 = vld [vmem:[#allocation5 + $0x1c0] ss:$8 sps:$4 sm:$0xff]  }
  0xc0   :  { %v1664_v2 = vrot.slane %v7038_v51, %v7475_v22  ;;  %v7721_v60 = vrot.slane %v7023_v41, %v7475_v22  ;;  %v7724_v61 = vrot.slane %v7026_v42, %v7475_v22  ;;  %v7727_v4 = vrot.slane %v7029_v47, %v7475_v22  ;;  %v7059_v43 = vld [vmem:[#allocation2 + $0x388] ss:$14 sps:$4 sm:$0xff]   ;;  %v7062_v44 = vld [vmem:[#allocation2 + $0x3a4] ss:$14 sps:$4 sm:$0xff]   ;;  %v7065_v49 = vld [vmem:[#allocation2 + $0x3c0] ss:$14 sps:$4 sm:$0xff]  }
  0xc1   :  { %6433 = vmatpush1.bf16.msra.mxu1 %v7273_v21  ;;  %v7730_v5 = vrot.slane %v7032_v48, %v7475_v22  ;;  %v1353_v13 = vcombine.low %v7697_v37, %v7700_v38  ;;  %v1424_v14 = vcombine.low %v7703_v39, %v7706_v40  ;;  %v7055_v21 = vld [vmem:[#allocation2 + $0x3b8] ss:$14 sps:$4 sm:$0xff]   ;;  %v1721_v26 = vrot.slane %v7051_v12, %v7475_v22  ;;  %v7071_v1 = vld [vmem:[#allocation2 + $0x3f0] ss:$14 sps:$4 sm:$0xff]  }
  0xc2   :  { %6418 = vmatprep.subr.bf16.mxu1 %v7274_v28  ;;  %v1673_v6 = vcombine.high %v1650_v57, %v1664_v2  ;;  %v1735_v27 = vrot.slane %v7053_v20, %v7475_v22  ;;  %v1792_v28 = vrot.slane %v7055_v21, %v7475_v22  ;;  %v1806_v29 = vrot.slane %v7057_v0, %v7475_v22  ;;  %v7284_v38 = vld [vmem:[#allocation5 + $0x1e4] ss:$8 sps:$4 sm:$0xff]  }
  0xc3   :  { %4261 = vmatmul.mubr.bf16.gmra.mrb[4].mxu0 %v3082_v30  ;;  %3915 = vmatmul.mubr.bf16.gmra.mrb[20].mxu1 %v3106_v9  ;;  %v1459_v30 = vcombine.low %v1437_v24, %v1451_v25  ;;  %v3111_v9 = vpack.c.bf16 %v1425_v55, %v1354_v54  ;;  %v1496_v24 = vcombine.high %v7721_v60, %v7724_v61  ;;  %v7073_v51 = vld [vmem:[#allocation2 + $0x40c] ss:$14 sps:$4 sm:$0xff]   ;;  %v7285_v54 = vld [vmem:[#allocation5 + $0x1e0] ss:$8 sps:$4 sm:$0xff]  }
  0xc4   :  { %4270 = vmatprep.mubr.bf16.mxu0 %v3090_v31  ;;  %v7275_v31 = vld [vmem:[#allocation5 + $0x190] ss:$8 sps:$4 sm:$0xff]   ;;  %3924 = vmatprep.mubr.bf16.mxu1 %v3114_v45  ;;  %v1567_v25 = vcombine.high %v7727_v4, %v7730_v5  ;;  %v3110_v34 = vpack.c.bf16 %v1424_v14, %v1353_v13  ;;  %v1814_v37 = vcombine.low %v1792_v28, %v1806_v29  ;;  %v7093_v21 = vld [vmem:[#allocation2 + $0x47c] ss:$14 sps:$4 sm:$0xff]  }
  0xc5   :  { %6434 = vmatpush1.bf16.msra.mxu1 %v7275_v31  ;;  %v3113_v46 = vpack.c.bf16 %v1530_v35, %v1459_v30  ;;  %v7282_v30 = vld [vmem:[#allocation5 + $0x1d4] ss:$8 sps:$4 sm:$0xff]   ;;  %v1744_v31 = vcombine.high %v1721_v26, %v1735_v27  ;;  %v7745_v39 = vrot.slane %v7039_v15, %v7475_v22  ;;  %v7748_v40 = vrot.slane %v7042_v16, %v7475_v22  ;;  %v7091_v13 = vld [vmem:[#allocation2 + $0x460] ss:$14 sps:$4 sm:$0xff]   ;;  %v7079_v16 = vld [vmem:[#allocation2 + $0x3f8] ss:$14 sps:$4 sm:$0xff]  }
  0xc6   :  { %6419 = vmatprep.subr.bf16.mxu1 %v7276_v36  ;;  %v3118_v35 = vpack.c.bf16 %v1567_v25, %v1496_v24  ;;  %v1815_v36 = vcombine.high %v1792_v28, %v1806_v29  ;;  %v7751_v41 = vrot.slane %v7045_v18, %v7475_v22  ;;  %v7754_v42 = vrot.slane %v7048_v19, %v7475_v22  ;;  %v7082_v18 = vld [vmem:[#allocation2 + $0x414] ss:$14 sps:$4 sm:$0xff]   ;;  %v7085_v19 = vld [vmem:[#allocation2 + $0x430] ss:$14 sps:$4 sm:$0xff]   ;;  %v7088_v20 = vld [vmem:[#allocation2 + $0x44c] ss:$14 sps:$4 sm:$0xff]  }
  0xc7   :  { %v1495_v45 = vcombine.low %v7721_v60, %v7724_v61  ;;  %v1863_v55 = vrot.slane %v7071_v1, %v7475_v22  ;;  %v7286_v61 = vld [vmem:[#allocation5 + $0x1f4] ss:$8 sps:$4 sm:$0xff]   ;;  %v1637_v14 = vcombine.low %v7745_v39, %v7748_v40  ;;  %v7095_v0 = vld [vmem:[#allocation2 + $0x498] ss:$14 sps:$4 sm:$0xff]  }
  0xc8   :  { %v3128_v47 = vpack.c.bf16 %v1815_v36, %v1744_v31  ;;  %v1708_v15 = vcombine.low %v7751_v41, %v7754_v42  ;;  %v2076_v28 = vrot.slane %v7095_v0, %v7475_v22  ;;  %v1899_v36 = vrot.slane %v7079_v16, %v7475_v22  ;;  %v7117_v1 = vld [vmem:[#allocation2 + $0x524] ss:$14 sps:$4 sm:$0xff]  }
  0xc9   :  { %6435 = vmatpush1.bf16.msra.mxu1 %v7277_v52  ;;  %v7075_v52 = vld [vmem:[#allocation2 + $0x428] ss:$14 sps:$4 sm:$0xff]  }
  0xca   :  { %6420 = vmatprep.subr.bf16.mxu1 %v7278_v59  ;;  %v7137_v16 = vld [vmem:[#allocation2 + $0x594] ss:$14 sps:$4 sm:$0xff]  }
  0xcb   :  { %4271 = vmatmul.mubr.bf16.gmra.mrb[8].mxu0 %v3089_v56  ;;  %v1593_v56 = vrot.slane %v7036_v50, %v7475_v22  ;;  %3925 = vmatmul.mubr.bf16.gmra.mrb[24].mxu1 %v3113_v46  ;;  %v1566_v46 = vcombine.low %v7727_v4, %v7730_v5  ;;  %v7068_v50 = vld [vmem:[#allocation2 + $0x3dc] ss:$14 sps:$4 sm:$0xff]   ;;  %v7287_v5 = vld [vmem:[#allocation5 + $0x1f0] ss:$8 sps:$4 sm:$0xff]  }
  0xcc   :  { %4280 = vmatprep.mubr.bf16.mxu0 %v3097_v7  ;;  %v1672_v7 = vcombine.low %v1650_v57, %v1664_v2  ;;  %v1709_v57 = vcombine.high %v7751_v41, %v7754_v42  ;;  %v1934_v2 = vrot.slane %v7075_v52, %v7475_v22  ;;  %v7102_v41 = vld [vmem:[#allocation2 + $0x484] ss:$14 sps:$4 sm:$0xff]  }
  0xcd   :  { %v1602_v62 = vcombine.high %v1579_v53, %v1593_v56  ;;  %v1601_v63 = vcombine.low %v1579_v53, %v1593_v56  ;;  %6436 = vmatpush1.bf16.msra.mxu1 %v7279_v3  ;;  %v7077_v53 = vld [vmem:[#allocation2 + $0x444] ss:$14 sps:$4 sm:$0xff]   ;;  %v1638_v56 = vcombine.high %v7745_v39, %v7748_v40  ;;  %v3117_v59 = vpack.c.bf16 %v1566_v46, %v1495_v45  ;;  %v7099_v40 = vld [vmem:[#allocation2 + $0x468] ss:$14 sps:$4 sm:$0xff]   ;;  %v7105_v46 = vld [vmem:[#allocation2 + $0x4a0] ss:$14 sps:$4 sm:$0xff]  }
  0xce   :  { %6421 = vmatprep.subr.bf16.mxu1 %v7280_v8  ;;  %v1948_v60 = vrot.slane %v7077_v53, %v7475_v22  ;;  %v1984_v39 = vrot.slane %v7088_v20, %v7475_v22 }
  0xcf   :  { %v3121_v10 = vpack.c.bf16 %v1673_v6, %v1602_v62  ;;  %v3120_v11 = vpack.c.bf16 %v1672_v7, %v1601_v63  ;;  %v7769_v62 = vrot.slane %v7059_v43, %v7475_v22  ;;  %v7772_v63 = vrot.slane %v7062_v44, %v7475_v22 }
  0xd0   :  { %v1828_v6 = vrot.slane %v7065_v49, %v7475_v22  ;;  %v1842_v7 = vrot.slane %v7068_v50, %v7475_v22  ;;  %v1957_v8 = vcombine.high %v1934_v2, %v1948_v60  ;;  %v7113_v49 = vld [vmem:[#allocation2 + $0x4ec] ss:$14 sps:$4 sm:$0xff]   ;;  %v7115_v50 = vld [vmem:[#allocation2 + $0x508] ss:$14 sps:$4 sm:$0xff]  }
  0xd1   :  { %6437 = vmatpush1.bf16.msra.mxu1 %v7281_v23  ;;  %3934 = vmatprep.mubr.bf16.mxu1 %v3121_v10  ;;  %v3125_v10 = vpack.c.bf16 %v1709_v57, %v1638_v56  ;;  %v7097_v23 = vld [vmem:[#allocation2 + $0x4b4] ss:$14 sps:$4 sm:$0xff]   ;;  %v1780_v24 = vcombine.high %v7769_v62, %v7772_v63  ;;  %v1779_v42 = vcombine.low %v7769_v62, %v7772_v63 }
  0xd2   :  { %6422 = vmatprep.subr.bf16.mxu1 %v7282_v30  ;;  %v1851_v25 = vcombine.high %v1828_v6, %v1842_v7  ;;  %v2090_v29 = vrot.slane %v7097_v23, %v7475_v22  ;;  %v1850_v43 = vcombine.low %v1828_v6, %v1842_v7  ;;  %v2232_v57 = vrot.slane %v7117_v1, %v7475_v22  ;;  %v7131_v7 = vld [vmem:[#allocation2 + $0x540] ss:$14 sps:$4 sm:$0xff]  }
  0xd3   :  { %4281 = vmatmul.mubr.bf16.gmra.mrb[12].mxu0 %v3096_v32  ;;  %3935 = vmatmul.mubr.bf16.gmra.mrb[28].mxu1 %v3120_v11  ;;  %v1743_v32 = vcombine.low %v1721_v26, %v1735_v27  ;;  %v2005_v26 = vrot.slane %v7091_v13, %v7475_v22  ;;  %v2019_v27 = vrot.slane %v7093_v21, %v7475_v22  ;;  %v7128_v13 = vld [vmem:[#allocation2 + $0x52c] ss:$14 sps:$4 sm:$0xff]  }
  0xd4   :  { %4290 = vmatprep.mubr.bf16.mxu0 %v3104_v33  ;;  %v7283_v33 = vld [vmem:[#allocation5 + $0x1d0] ss:$8 sps:$4 sm:$0xff]   ;;  %3944 = vmatprep.mubr.bf16.mxu1 %v3128_v47  ;;  %v7108_v47 = vld [vmem:[#allocation2 + $0x4bc] ss:$14 sps:$4 sm:$0xff]   ;;  %v3131_v56 = vpack.c.bf16 %v1850_v43, %v1779_v42  ;;  %v2289_v20 = vrot.slane %v7131_v7, %v7475_v22  ;;  %v2374_v23 = vrot.slane %v7137_v16, %v7475_v22 }
  0xd5   :  { %6438 = vmatpush1.bf16.msra.mxu1 %v7283_v33  ;;  %v3127_v48 = vpack.c.bf16 %v1814_v37, %v1743_v32  ;;  %v2028_v30 = vcombine.high %v2005_v26, %v2019_v27  ;;  %v2027_v31 = vcombine.low %v2005_v26, %v2019_v27  ;;  %v3124_v32 = vpack.c.bf16 %v1708_v15, %v1637_v14  ;;  %v7133_v14 = vld [vmem:[#allocation2 + $0x55c] ss:$14 sps:$4 sm:$0xff]   ;;  %v7135_v15 = vld [vmem:[#allocation2 + $0x578] ss:$14 sps:$4 sm:$0xff]  }
  0xd6   :  { %6423 = vmatprep.subr.bf16.mxu1 %v7284_v38  ;;  %v3132_v33 = vpack.c.bf16 %v1851_v25, %v1780_v24  ;;  %v1913_v37 = vrot.slane %v7082_v18, %v7475_v22  ;;  %v1970_v38 = vrot.slane %v7085_v19, %v7475_v22  ;;  %v2126_v62 = vrot.slane %v7108_v47, %v7475_v22  ;;  %v7151_v42 = vld [vmem:[#allocation2 + $0x5b0] ss:$14 sps:$4 sm:$0xff]   ;;  %v7153_v43 = vld [vmem:[#allocation2 + $0x5cc] ss:$14 sps:$4 sm:$0xff]  }
  0xd7   :  { %v2303_v21 = vrot.slane %v7133_v14, %v7475_v22  ;;  %v2360_v0 = vrot.slane %v7135_v15, %v7475_v22  ;;  %v7173_v7 = vld [vmem:[#allocation2 + $0x63c] ss:$14 sps:$4 sm:$0xff]  }
  0xd8   :  { %v1922_v52 = vcombine.high %v1899_v36, %v1913_v37  ;;  %v1993_v53 = vcombine.high %v1970_v38, %v1984_v39  ;;  %v2587_v14 = vrot.slane %v7173_v7, %v7475_v22 }
  0xd9   :  { %6439 = vmatpush1.bf16.msra.mxu1 %v7285_v54  ;;  %v2161_v54 = vrot.slane %v7113_v49, %v7475_v22  ;;  %v2312_v24 = vcombine.high %v2289_v20, %v2303_v21  ;;  %v2311_v25 = vcombine.low %v2289_v20, %v2303_v21  ;;  %v2445_v49 = vrot.slane %v7153_v43, %v7475_v22 }
  0xda   :  { %6424 = vmatprep.subr.bf16.mxu1 %v7286_v61  ;;  %v2112_v61 = vrot.slane %v7105_v46, %v7475_v22  ;;  %v2431_v46 = vrot.slane %v7151_v42, %v7475_v22 }
  0xdb   :  { %4291 = vmatmul.mubr.bf16.gmra.mrb[16].mxu0 %v3103_v58  ;;  %v1877_v58 = vrot.slane %v7073_v51, %v7475_v22  ;;  %3945 = vmatmul.mubr.bf16.gmra.mrb[32].mxu1 %v3127_v48  ;;  %v7111_v48 = vld [vmem:[#allocation2 + $0x4d0] ss:$14 sps:$4 sm:$0xff]  }
  0xdc   :  { %4300 = vmatprep.mubr.bf16.mxu0 %v3111_v9  ;;  %v1956_v9 = vcombine.low %v1934_v2, %v1948_v60  ;;  %v2147_v51 = vrot.slane %v7111_v48, %v7475_v22  ;;  %v2055_v2 = vrot.slane %v7102_v41, %v7475_v22  ;;  %v2135_v19 = vcombine.high %v2112_v61, %v2126_v62  ;;  %v7148_v41 = vld [vmem:[#allocation2 + $0x59c] ss:$14 sps:$4 sm:$0xff]  }
  0xdd   :  { %v1886_v3 = vcombine.high %v1863_v55, %v1877_v58  ;;  %v1885_v4 = vcombine.low %v1863_v55, %v1877_v58  ;;  %6440 = vmatpush1.bf16.msra.mxu1 %v7287_v5  ;;  %v2218_v55 = vrot.slane %v7115_v50, %v7475_v22  ;;  %v2041_v58 = vrot.slane %v7099_v40, %v7475_v22  ;;  %v7145_v40 = vld [vmem:[#allocation2 + $0x580] ss:$14 sps:$4 sm:$0xff]  }
  0xde   :  { %v2169_v60 = vcombine.low %v2147_v51, %v2161_v54 }
  0xdf   :  { %v3135_v11 = vpack.c.bf16 %v1957_v8, %v1886_v3  ;;  %v3134_v12 = vpack.c.bf16 %v1956_v9, %v1885_v4  ;;  %v2241_v63 = vcombine.high %v2218_v55, %v2232_v57  ;;  %v2240_v3 = vcombine.low %v2218_v55, %v2232_v57 }
  0xe0   :  { %v3139_v4 = vpack.c.bf16 %v1993_v53, %v1922_v52  ;;  %v1921_v8 = vcombine.low %v1899_v36, %v1913_v37  ;;  %v1992_v9 = vcombine.low %v1970_v38, %v1984_v39  ;;  %v2064_v18 = vcombine.high %v2041_v58, %v2055_v2 }
  0xe1   :  { %3954 = vmatprep.mubr.bf16.mxu1 %v3135_v11  ;;  %v3148_v6 = vpack.c.bf16 %v2240_v3, %v2169_v60  ;;  %v7122_v11 = vld [vmem:[#allocation2 + $0x4f4] ss:$14 sps:$4 sm:$0xff]   ;;  %v2063_v36 = vcombine.low %v2041_v58, %v2055_v2  ;;  %v2134_v37 = vcombine.low %v2112_v61, %v2126_v62  ;;  %v2453_v55 = vcombine.low %v2431_v46, %v2445_v49 }
  0xe2   :  { %v3138_v26 = vpack.c.bf16 %v1992_v9, %v1921_v8  ;;  %v3146_v27 = vpack.c.bf16 %v2135_v19, %v2064_v18  ;;  %v2410_v57 = vrot.slane %v7148_v41, %v7475_v22  ;;  %v7162_v3 = vld [vmem:[#allocation2 + $0x5d4] ss:$14 sps:$4 sm:$0xff]  }
  0xe3   :  { %4301 = vmatmul.mubr.bf16.gmra.mrb[20].mxu0 %v3110_v34  ;;  %3955 = vmatmul.mubr.bf16.gmra.mrb[36].mxu1 %v3134_v12  ;;  %v2099_v34 = vcombine.high %v2076_v28, %v2090_v29  ;;  %v7125_v12 = vld [vmem:[#allocation2 + $0x510] ss:$14 sps:$4 sm:$0xff]   ;;  %v3145_v1 = vpack.c.bf16 %v2134_v37, %v2063_v36 }
  0xe4   :  { %4310 = vmatprep.mubr.bf16.mxu0 %v3118_v35  ;;  %v2098_v35 = vcombine.low %v2076_v28, %v2090_v29  ;;  %v2383_v28 = vcombine.high %v2360_v0, %v2374_v23  ;;  %v2382_v29 = vcombine.low %v2360_v0, %v2374_v23 }
  0xe5   :  { %v3142_v44 = vpack.c.bf16 %v2099_v34, %v2028_v30  ;;  %v7139_v34 = vld [vmem:[#allocation2 + $0x548] ss:$14 sps:$4 sm:$0xff]  }
  0xe6   :  { %v3141_v45 = vpack.c.bf16 %v2098_v35, %v2027_v31  ;;  %v2197_v31 = vrot.slane %v7122_v11, %v7475_v22  ;;  %v7142_v35 = vld [vmem:[#allocation2 + $0x564] ss:$14 sps:$4 sm:$0xff]   ;;  %v3156_v38 = vpack.c.bf16 %v2383_v28, %v2312_v24  ;;  %v3155_v39 = vpack.c.bf16 %v2382_v29, %v2311_v25  ;;  %v7179_v28 = vld [vmem:[#allocation2 + $0x628] ss:$14 sps:$4 sm:$0xff]  }
  0xe7   :  { %3964 = vmatprep.mubr.bf16.mxu1 %v3142_v44  ;;  %v7155_v44 = vld [vmem:[#allocation2 + $0x5e8] ss:$14 sps:$4 sm:$0xff]   ;;  %v7813_v52 = vrot.slane %v7139_v34, %v7475_v22  ;;  %v7816_v53 = vrot.slane %v7142_v35, %v7475_v22  ;;  %v2481_v25 = vrot.slane %v7162_v3, %v7475_v22  ;;  %v7182_v29 = vld [vmem:[#allocation2 + $0x644] ss:$14 sps:$4 sm:$0xff]   ;;  %v7837_v41 = vrot.slane %v7179_v28, %v7475_v22 }
  0xe8   :  { %v2502_v50 = vrot.slane %v7155_v44, %v7475_v22  ;;  %v7175_v11 = vld [vmem:[#allocation2 + $0x658] ss:$14 sps:$4 sm:$0xff]   ;;  %v7840_v42 = vrot.slane %v7182_v29, %v7475_v22 }
  0xe9   :  { %v2348_v9 = vcombine.high %v7813_v52, %v7816_v53  ;;  %v2644_v15 = vrot.slane %v7175_v11, %v7475_v22  ;;  %v2347_v34 = vcombine.low %v7813_v52, %v7816_v53  ;;  %v7211_v3 = vld [vmem:[#allocation2 + $0x384] ss:$14 sps:$4 sm:$0xff]  }
  0xea   :  { %v7216_v11 = vld [vmem:[#allocation2 + $0x410] ss:$14 sps:$4 sm:$0xff]  }
  0xeb   :  { %4311 = vmatmul.mubr.bf16.gmra.mrb[24].mxu0 %v3117_v59  ;;  %3965 = vmatmul.mubr.bf16.gmra.mrb[40].mxu1 %v3141_v45  ;;  %v2170_v59 = vcombine.high %v2147_v51, %v2161_v54  ;;  %v7157_v45 = vld [vmem:[#allocation2 + $0x604] ss:$14 sps:$4 sm:$0xff]   ;;  %v2454_v54 = vcombine.high %v2431_v46, %v2445_v49  ;;  %v1884_v28 = vrot.slane %v7216_v11, %v7475_v22 }
  0xec   :  { %4320 = vmatprep.mubr.bf16.mxu0 %v3125_v10  ;;  %v7119_v10 = vld [vmem:[#allocation2 + $0x4d8] ss:$14 sps:$4 sm:$0xff]   ;;  %v2516_v51 = vrot.slane %v7157_v45, %v7475_v22 }
  0xed   :  { %v3149_v5 = vpack.c.bf16 %v2241_v63, %v2170_v59  ;;  %v2183_v30 = vrot.slane %v7119_v10, %v7475_v22  ;;  %v7159_v63 = vld [vmem:[#allocation2 + $0x5b8] ss:$14 sps:$4 sm:$0xff]  }
  0xee   :  { %v2525_v58 = vcombine.high %v2502_v50, %v2516_v51  ;;  %v2524_v2 = vcombine.low %v2502_v50, %v2516_v51  ;;  %v2467_v24 = vrot.slane %v7159_v63, %v7475_v22  ;;  %v7197_v45 = vld [vmem:[#allocation2 + $0x6e4] ss:$14 sps:$4 sm:$0xff]   ;;  %v7208_v63 = vld [vmem:[#allocation2 + $0x6ec] ss:$14 sps:$4 sm:$0xff]  }
  0xef   :  { %3974 = vmatprep.mubr.bf16.mxu1 %v3149_v5  ;;  %v2206_v47 = vcombine.high %v2183_v30, %v2197_v31  ;;  %v2205_v62 = vcombine.low %v2183_v30, %v2197_v31  ;;  %v7168_v5 = vld [vmem:[#allocation2 + $0x60c] ss:$14 sps:$4 sm:$0xff]  }
  0xf0   :  { %v3163_v60 = vpack.c.bf16 %v2525_v58, %v2454_v54  ;;  %v3162_v61 = vpack.c.bf16 %v2524_v2, %v2453_v55  ;;  %v2490_v36 = vcombine.high %v2467_v24, %v2481_v25  ;;  %v2489_v50 = vcombine.low %v2467_v24, %v2481_v25  ;;  %v7199_v2 = vld [vmem:[#allocation2 + $0x698] ss:$14 sps:$4 sm:$0xff]   ;;  %v7220_v24 = vld [vmem:[#allocation2 + $0x480] ss:$14 sps:$4 sm:$0xff]   ;;  %v7221_v25 = vld [vmem:[#allocation2 + $0x49c] ss:$14 sps:$4 sm:$0xff]  }
  0xf1   :  { %v2632_v55 = vcombine.high %v7837_v41, %v7840_v42  ;;  %v7230_v11 = vld [vmem:[#allocation2 + $0x598] ss:$14 sps:$4 sm:$0xff]  }
  0xf3   :  { %4321 = vmatmul.mubr.bf16.gmra.mrb[28].mxu0 %v3124_v32  ;;  %3975 = vmatmul.mubr.bf16.gmra.mrb[44].mxu1 %v3148_v6  ;;  %v2254_v32 = vrot.slane %v7125_v12, %v7475_v22  ;;  %v7171_v6 = vld [vmem:[#allocation2 + $0x620] ss:$14 sps:$4 sm:$0xff]  }
  0xf4   :  { %4330 = vmatprep.mubr.bf16.mxu0 %v3132_v33  ;;  %v2268_v33 = vrot.slane %v7128_v13, %v7475_v22  ;;  %3984 = vmatprep.mubr.bf16.mxu1 %v3156_v38  ;;  %v7177_v12 = vld [vmem:[#allocation2 + $0x674] ss:$14 sps:$4 sm:$0xff]   ;;  %v2573_v13 = vrot.slane %v7171_v6, %v7475_v22  ;;  %v7191_v38 = vld [vmem:[#allocation2 + $0x690] ss:$14 sps:$4 sm:$0xff]  }
  0xf5   :  { %v2658_v16 = vrot.slane %v7177_v12, %v7475_v22  ;;  %v2715_v46 = vrot.slane %v7191_v38, %v7475_v22 }
  0xf6   :  { %v2277_v48 = vcombine.high %v2254_v32, %v2268_v33  ;;  %v2276_v8 = vcombine.low %v2254_v32, %v2268_v33  ;;  %v2596_v18 = vcombine.high %v2573_v13, %v2587_v14  ;;  %v2595_v19 = vcombine.low %v2573_v13, %v2587_v14  ;;  %v7185_v32 = vld [vmem:[#allocation2 + $0x660] ss:$14 sps:$4 sm:$0xff]   ;;  %v7188_v33 = vld [vmem:[#allocation2 + $0x67c] ss:$14 sps:$4 sm:$0xff]  }
  0xf7   :  { %v2667_v0 = vcombine.high %v2644_v15, %v2658_v16  ;;  %v2666_v23 = vcombine.low %v2644_v15, %v2658_v16  ;;  %v7843_v43 = vrot.slane %v7185_v32, %v7475_v22  ;;  %v7846_v44 = vrot.slane %v7188_v33, %v7475_v22  ;;  %v7217_v16 = vld [vmem:[#allocation2 + $0x42c] ss:$14 sps:$4 sm:$0xff]  }
  0xf8   :  { %v3153_v59 = vpack.c.bf16 %v2277_v48, %v2206_v47  ;;  %v3152_v20 = vpack.c.bf16 %v2276_v8, %v2205_v62  ;;  %v7205_v62 = vld [vmem:[#allocation2 + $0x6d0] ss:$14 sps:$4 sm:$0xff]   ;;  %v7857_v8 = vrot.slane %v7199_v2, %v7475_v22  ;;  %v1728_v13 = vrot.slane %v7211_v3, %v7475_v22 }
  0xf9   :  { %v3170_v30 = vpack.c.bf16 %v2667_v0, %v2596_v18  ;;  %v3169_v31 = vpack.c.bf16 %v2666_v23, %v2595_v19  ;;  %v7218_v18 = vld [vmem:[#allocation2 + $0x448] ss:$14 sps:$4 sm:$0xff]   ;;  %v7219_v19 = vld [vmem:[#allocation2 + $0x464] ss:$14 sps:$4 sm:$0xff]   ;;  %v1941_v29 = vrot.slane %v7217_v16, %v7475_v22 }
  0xfa   :  { %v6945_v16 = vld [vmem:[#allocation2 + $0x7c] ss:$14 sps:$4 sm:$0x33]  }
  0xfb   :  { %4331 = vmatmul.mubr.bf16.gmra.mrb[32].mxu0 %v3131_v56  ;;  %3985 = vmatmul.mubr.bf16.gmra.mrb[48].mxu1 %v3155_v39  ;;  %v7819_v56 = vrot.slane %v7145_v40, %v7475_v22  ;;  %v7193_v39 = vld [vmem:[#allocation2 + $0x6ac] ss:$14 sps:$4 sm:$0xff]   ;;  %v7195_v40 = vld [vmem:[#allocation2 + $0x6c8] ss:$14 sps:$4 sm:$0xff]  }
  0xfc   :  { %4340 = vmatprep.mubr.bf16.mxu0 %v3139_v4  ;;  %v7165_v4 = vld [vmem:[#allocation2 + $0x5f0] ss:$14 sps:$4 sm:$0xff]   ;;  %3994 = vmatprep.mubr.bf16.mxu1 %v3163_v60  ;;  %v2729_v47 = vrot.slane %v7193_v39, %v7475_v22  ;;  %v2786_v48 = vrot.slane %v7195_v40, %v7475_v22  ;;  %v2026_v40 = vrot.slane %v7220_v24, %v7475_v22  ;;  %v6951_v24 = vld [vmem:[#allocation2 + $0xb4] ss:$14 sps:$4 sm:$0x33]  }
  0xfd   :  { %v2419_v10 = vcombine.high %v7819_v56, %v2410_v57  ;;  %v2418_v35 = vcombine.low %v7819_v56, %v2410_v57  ;;  %v2703_v56 = vcombine.high %v7843_v43, %v7846_v44 }
  0xfe   :  { %v2738_v53 = vcombine.high %v2715_v46, %v2729_v47  ;;  %v2737_v54 = vcombine.low %v2715_v46, %v2729_v47  ;;  %v7223_v46 = vld [vmem:[#allocation2 + $0x4d4] ss:$14 sps:$4 sm:$0xff]   ;;  %v7224_v47 = vld [vmem:[#allocation2 + $0x4f0] ss:$14 sps:$4 sm:$0xff]  }
  0xff   :  { %v3160_v21 = vpack.c.bf16 %v2419_v10, %v2348_v9  ;;  %v3159_v49 = vpack.c.bf16 %v2418_v35, %v2347_v34  ;;  %v3174_v7 = vpack.c.bf16 %v2703_v56, %v2632_v55  ;;  %v7214_v9 = vld [vmem:[#allocation2 + $0x3d8] ss:$14 sps:$4 sm:$0xff]   ;;  %v7215_v10 = vld [vmem:[#allocation2 + $0x3f4] ss:$14 sps:$4 sm:$0xff]   ;;  %v2702_v34 = vcombine.low %v7843_v43, %v7846_v44 }
 0x100   :  { %v1813_v0 = vrot.slane %v7214_v9, %v7475_v22  ;;  %v1870_v23 = vrot.slane %v7215_v10, %v7475_v22  ;;  %v7896_v3 = vrot.slane %v7224_v47, %v7475_v22  ;;  %v7228_v9 = vld [vmem:[#allocation2 + $0x560] ss:$14 sps:$4 sm:$0xff]   ;;  %v7229_v10 = vld [vmem:[#allocation2 + $0x57c] ss:$14 sps:$4 sm:$0xff]  }
 0x101   :  { %v7233_v47 = vld [vmem:[#allocation2 + $0x5ec] ss:$14 sps:$4 sm:$0xff]  }
 0x102   :  { %v1888_v35 = vcombine.high %v1870_v23, %v1884_v28 }
 0x103   :  { %4341 = vmatmul.mubr.bf16.gmra.mrb[36].mxu0 %v3138_v26  ;;  %3995 = vmatmul.mubr.bf16.gmra.mrb[52].mxu1 %v3162_v61  ;;  %v2538_v26 = vrot.slane %v7165_v4, %v7475_v22  ;;  %v7212_v4 = vld [vmem:[#allocation2 + $0x3a0] ss:$14 sps:$4 sm:$0xff]  }
 0x104   :  { %4350 = vmatprep.mubr.bf16.mxu0 %v3146_v27  ;;  %v2552_v27 = vrot.slane %v7168_v5, %v7475_v22  ;;  %4004 = vmatprep.mubr.bf16.mxu1 %v3170_v30  ;;  %v7213_v5 = vld [vmem:[#allocation2 + $0x3bc] ss:$14 sps:$4 sm:$0xff]   ;;  %v1742_v14 = vrot.slane %v7212_v4, %v7475_v22  ;;  %v7222_v30 = vld [vmem:[#allocation2 + $0x4b8] ss:$14 sps:$4 sm:$0xff]  }
 0x105   :  { %v1799_v15 = vrot.slane %v7213_v5, %v7475_v22  ;;  %v2097_v44 = vrot.slane %v7222_v30, %v7475_v22  ;;  %v7919_v30 = vrot.slane %v7229_v10, %v7475_v22 }
 0x106   :  { %v2561_v37 = vcombine.high %v2538_v26, %v2552_v27  ;;  %v2560_v52 = vcombine.low %v2538_v26, %v2552_v27  ;;  %v1745_v26 = vcombine.low %v1728_v13, %v1742_v14  ;;  %v1746_v27 = vcombine.high %v1728_v13, %v1742_v14 }
 0x107   :  { %v1816_v32 = vcombine.low %v1799_v15, %v1813_v0  ;;  %v1817_v33 = vcombine.high %v1799_v15, %v1813_v0 }
 0x108   :  { %v3167_v51 = vpack.c.bf16 %v2561_v37, %v2490_v36  ;;  %v3166_v6 = vpack.c.bf16 %v2560_v52, %v2489_v50  ;;  %v1955_v36 = vrot.slane %v7218_v18, %v7475_v22  ;;  %v2012_v37 = vrot.slane %v7219_v19, %v7475_v22  ;;  %v6926_v52 = vld [vmem:[#allocation2 + $0xc] ss:$14 sps:$4 sm:$0x33]  }
 0x109   :  { %v3130_v38 = vpack.c.bf16 %v1817_v33, %v1746_v27  ;;  %v3129_v39 = vpack.c.bf16 %v1816_v32, %v1745_v26  ;;  %v7243_v32 = vld [vmem:[#allocation7 + $0x40] sm:$0xff]  }
 0x10a   :  { %v1959_v43 = vcombine.high %v1941_v29, %v1955_v36  ;;  %v1958_v50 = vcombine.low %v1941_v29, %v1955_v36  ;;  %v2030_v55 = vcombine.high %v2012_v37, %v2026_v40  ;;  %v2029_v14 = vcombine.low %v2012_v37, %v2026_v40  ;;  %v7244_v33 = vld [vmem:[#allocation7] sm:$0xff]   ;;  %6297 = vmatprep.subr.bf16.mxu1 %v7243_v32 }
 0x10b   :  { %4351 = vmatmul.mubr.bf16.gmra.mrb[40].mxu0 %v3145_v1  ;;  %4005 = vmatmul.mubr.bf16.gmra.mrb[56].mxu1 %v3169_v31  ;;  %v2800_v1 = vrot.slane %v7197_v45, %v7475_v22  ;;  %v2631_v31 = vcombine.low %v7837_v41, %v7840_v42  ;;  %v2083_v45 = vrot.slane %v7221_v25, %v7475_v22  ;;  %v6954_v25 = vld [vmem:[#allocation2 + $0xd0] ss:$14 sps:$4 sm:$0x33]  }
 0x10c   :  { %4360 = vmatprep.mubr.bf16.mxu0 %v3153_v59  ;;  %v7202_v59 = vld [vmem:[#allocation2 + $0x6b4] ss:$14 sps:$4 sm:$0xff]   ;;  %v7916_v29 = vrot.slane %v7228_v9, %v7475_v22  ;;  %v770_v36 = vrot.slane %v6945_v16, %v7475_v22 }
 0x10d   :  { %v2809_v57 = vcombine.high %v2786_v48, %v2800_v1  ;;  %v2808_v58 = vcombine.low %v2786_v48, %v2800_v1  ;;  %v7860_v12 = vrot.slane %v7202_v59, %v7475_v22  ;;  %v3137_v48 = vpack.c.bf16 %v1959_v43, %v1888_v35  ;;  %v7225_v1 = vld [vmem:[#allocation2 + $0x50c] ss:$14 sps:$4 sm:$0xff]   ;;  %v7251_v16 = vld [vmem:[#allocation7 + $0x60] sm:$0xff]  }
 0x10e   :  { %v2101_v56 = vcombine.high %v2083_v45, %v2097_v44  ;;  %v7899_v4 = vrot.slane %v7225_v1, %v7475_v22  ;;  %v2100_v15 = vcombine.low %v2083_v45, %v2097_v44  ;;  %v7245_v35 = vld [vmem:[#allocation7 + $0x48] sm:$0xff]   ;;  %v7236_v9 = vld [vmem:[#allocation2 + $0x640] ss:$14 sps:$4 sm:$0xff]  }
 0x10f   :  { %v3177_v60 = vpack.c.bf16 %v2809_v57, %v2738_v53  ;;  %v3176_v61 = vpack.c.bf16 %v2808_v58, %v2737_v54  ;;  %v2774_v41 = vcombine.high %v7857_v8, %v7860_v12  ;;  %v6929_v53 = vld [vmem:[#allocation2 + $0x28] ss:$14 sps:$4 sm:$0x33]   ;;  %v3173_v54 = vpack.c.bf16 %v2702_v34, %v2631_v31  ;;  %v6932_v57 = vld [vmem:[#allocation2 + $0x44] ss:$14 sps:$4 sm:$0x33]  }
 0x110   :  { %v6935_v58 = vld [vmem:[#allocation2 + $0x60] ss:$14 sps:$4 sm:$0x33]   ;;  %v2773_v59 = vcombine.low %v7857_v8, %v7860_v12  ;;  %v642_v8 = vrot.slane %v6929_v53, %v7475_v22  ;;  %v699_v12 = vrot.slane %v6932_v57, %v7475_v22  ;;  %v3143_v26 = vpack.c.bf16 %v2100_v15, %v2029_v14  ;;  %v6961_v1 = vld [vmem:[#allocation2 + $0xec] ss:$14 sps:$4 sm:$0x33]  }
 0x111   :  { %4014 = vmatprep.mubr.bf16.mxu1 %v3177_v60  ;;  %v713_v13 = vrot.slane %v6935_v58, %v7475_v22  ;;  %v7922_v31 = vrot.slane %v7230_v11, %v7475_v22  ;;  %v7392_v34 = vmov 0   ;;  %v6967_v53 = vld [vmem:[#allocation2 + $0x124] ss:$14 sps:$4 sm:$0x33]   ;;  %v7238_v14 = vld [vmem:[#allocation2 + $0x678] ss:$14 sps:$4 sm:$0xff]  }
 0x112   :  { %v7250_v15 = vld [vmem:[#allocation7 + $0x18] sm:$0xff]  }
 0x113   :  { %4361 = vmatmul.mubr.bf16.gmra.mrb[44].mxu0 %v3152_v20  ;;  %4015 = vmatmul.mubr.bf16.gmra.mrb[60].mxu1 %v3176_v61  ;;  %v7866_v20 = vrot.slane %v7205_v62, %v7475_v22  ;;  %v7893_v62 = vrot.slane %v7223_v46, %v7475_v22  ;;  %v2385_v46 = vcombine.high %v7919_v30, %v7922_v31 }
 0x114   :  { %4370 = vmatprep.mubr.bf16.mxu0 %v3160_v21  ;;  %v7869_v21 = vrot.slane %v7208_v63, %v7475_v22  ;;  %4137 = vmatprep.mubr.bf16.mxu1 %v3130_v38  ;;  %v3144_v63 = vpack.c.bf16 %v2101_v56, %v2030_v55  ;;  %v841_v38 = vrot.slane %v6951_v24, %v7475_v22 }
 0x115   :  { %v2172_v19 = vcombine.high %v7893_v62, %v7896_v3  ;;  %v2171_v40 = vcombine.low %v7893_v62, %v7896_v3  ;;  %v7249_v62 = vld [vmem:[#allocation7 + $0x58] sm:$0xff]  }
 0x116   :  { %v2845_v42 = vcombine.high %v7866_v20, %v7869_v21  ;;  %v2844_v60 = vcombine.low %v7866_v20, %v7869_v21  ;;  %v6948_v21 = vld [vmem:[#allocation2 + $0x98] ss:$14 sps:$4 sm:$0x33]  }
 0x117   :  { %v784_v37 = vrot.slane %v6948_v21, %v7475_v22  ;;  %v6983_v21 = vld [vmem:[#allocation2 + $0x194] ss:$14 sps:$4 sm:$0x33]  }
 0x118   :  { %v3181_v2 = vpack.c.bf16 %v2845_v42, %v2774_v41  ;;  %v3180_v18 = vpack.c.bf16 %v2844_v60, %v2773_v59  ;;  %v7231_v41 = vld [vmem:[#allocation2 + $0x5b4] ss:$14 sps:$4 sm:$0xff]   ;;  %v7232_v42 = vld [vmem:[#allocation2 + $0x5d0] ss:$14 sps:$4 sm:$0xff]   ;;  %v7945_v59 = vrot.slane %v7233_v47, %v7475_v22 }
 0x119   :  { %v7938_v57 = vrot.slane %v7231_v41, %v7475_v22  ;;  %v7941_v58 = vrot.slane %v7232_v42, %v7475_v22  ;;  %v7255_v47 = vld [vmem:[#allocation7 + $0x70] sm:$0xff]  }
 0x11b   :  { %4371 = vmatmul.mubr.bf16.gmra.mrb[48].mxu0 %v3159_v49  ;;  %4138 = vmatmul.mubr.bf16.vlgmr.msra.gmra.mrb[32].mxu1 %v3129_v39  ;;  %v1887_v49 = vcombine.low %v1870_v23, %v1884_v28  ;;  %v716_v23 = vcombine.low %v699_v12, %v713_v13  ;;  %v855_v39 = vrot.slane %v6954_v25, %v7475_v22  ;;  %v7237_v13 = vld [vmem:[#allocation2 + $0x65c] ss:$14 sps:$4 sm:$0xff]  }
 0x11c   :  { %4380 = vmatprep.mubr.bf16.mxu0 %v3167_v51  ;;  %v7226_v51 = vld [vmem:[#allocation2 + $0x528] ss:$14 sps:$4 sm:$0xff]   ;;  %4147 = vmatprep.mubr.bf16.mxu1 %v3137_v48  ;;  %v2456_v11 = vcombine.high %v7938_v57, %v7941_v58 }
 0x11d   :  { %v3136_v61 = vpack.c.bf16 %v1958_v50, %v1887_v49  ;;  %v7902_v5 = vrot.slane %v7226_v51, %v7475_v22  ;;  %v7234_v48 = vld [vmem:[#allocation2 + $0x608] ss:$14 sps:$4 sm:$0xff]   ;;  %6298 = vmatpush3.bf16.msra.mxu1 %v7244_v33  ;;  %v7247_v50 = vld [vmem:[#allocation7 + $0x50] sm:$0xff]   ;;  %v858_v55 = vcombine.low %v841_v38, %v855_v39 }
 0x11e   :  { %v7246_v49 = vld [vmem:[#allocation7 + $0x8] sm:$0xff]   ;;  %6299 = vmatprep.subr.bf16.mxu1 %v7245_v35  ;;  %v6964_v51 = vld [vmem:[#allocation2 + $0x108] ss:$14 sps:$4 sm:$0x33]   ;;  %v7948_v60 = vrot.slane %v7234_v48, %v7475_v22  ;;  %v1125_v35 = vrot.slane %v6983_v21, %v7475_v22 }
 0x11f   :  { %v2243_v20 = vcombine.high %v7899_v4, %v7902_v5  ;;  %v2242_v45 = vcombine.low %v7899_v4, %v7902_v5  ;;  %v926_v3 = vrot.slane %v6964_v51, %v7475_v22  ;;  %v983_v4 = vrot.slane %v6967_v53, %v7475_v22  ;;  %v7239_v39 = vld [vmem:[#allocation2 + $0x694] ss:$14 sps:$4 sm:$0xff]   ;;  %v6993_v48 = vld [vmem:[#allocation2 + $0x1cc] ss:$14 sps:$4 sm:$0x33]  }
 0x120   :  { %v2527_v12 = vcombine.high %v7945_v59, %v7948_v60  ;;  %v2526_v38 = vcombine.low %v7945_v59, %v7948_v60  ;;  %v7002_v51 = vld [vmem:[#allocation2 + $0x220] ss:$14 sps:$4 sm:$0x33]  }
 0x121   :  { %v3151_v28 = vpack.c.bf16 %v2243_v20, %v2172_v19  ;;  %v3150_v56 = vpack.c.bf16 %v2242_v45, %v2171_v40  ;;  %6300 = vmatpush3.bf16.msra.mxu1 %v7246_v49  ;;  %v6980_v19 = vld [vmem:[#allocation2 + $0x178] ss:$14 sps:$4 sm:$0x33]   ;;  %v7240_v40 = vld [vmem:[#allocation2 + $0x6b0] ss:$14 sps:$4 sm:$0xff]  }
 0x122   :  { %6301 = vmatprep.subr.bf16.mxu1 %v7247_v50  ;;  %v1068_v33 = vrot.slane %v6980_v19, %v7475_v22  ;;  %v6996_v49 = vld [vmem:[#allocation2 + $0x1e8] ss:$14 sps:$4 sm:$0x33]  }
 0x123   :  { %4381 = vmatmul.mubr.bf16.gmra.mrb[52].mxu0 %v3166_v6  ;;  %v7227_v6 = vld [vmem:[#allocation2 + $0x544] ss:$14 sps:$4 sm:$0xff]   ;;  %4148 = vmatmul.mubr.bf16.gmra.mrb[36].mxu1 %v3136_v61  ;;  %v1210_v59 = vrot.slane %v6996_v49, %v7475_v22  ;;  %v7070_v49 = vld [vmem:[#allocation2 + $0x3e0] ss:$14 sps:$4 sm:$0x33]  }
 0x124   :  { %4390 = vmatprep.mubr.bf16.mxu0 %v3174_v7  ;;  %v628_v7 = vrot.slane %v6926_v52, %v7475_v22  ;;  %4157 = vmatprep.mubr.bf16.mxu1 %v3144_v63  ;;  %v7913_v27 = vrot.slane %v7227_v6, %v7475_v22  ;;  %v787_v52 = vcombine.low %v770_v36, %v784_v37  ;;  %v7248_v61 = vld [vmem:[#allocation7 + $0x10] sm:$0xff]  }
 0x125   :  { %v912_v63 = vrot.slane %v6961_v1, %v7475_v22  ;;  %6302 = vmatpush3.bf16.msra.mxu1 %v7248_v61  ;;  %v2455_v37 = vcombine.low %v7938_v57, %v7941_v58  ;;  %v6999_v1 = vld [vmem:[#allocation2 + $0x204] ss:$14 sps:$4 sm:$0x33]   ;;  %v1281_v61 = vrot.slane %v7002_v51, %v7475_v22 }
 0x126   :  { %v645_v0 = vcombine.low %v628_v7, %v642_v8  ;;  %v2314_v44 = vcombine.high %v7913_v27, %v7916_v29  ;;  %v2313_v6 = vcombine.low %v7913_v27, %v7916_v29  ;;  %v2384_v7 = vcombine.low %v7919_v30, %v7922_v31  ;;  %v7235_v8 = vld [vmem:[#allocation2 + $0x624] ss:$14 sps:$4 sm:$0xff]   ;;  %6303 = vmatprep.subr.bf16.mxu1 %v7249_v62  ;;  %v7253_v31 = vld [vmem:[#allocation7 + $0x68] sm:$0xff]  }
 0x127   :  { %v3084_v10 = vpack.c.bf16 %v858_v55, %v787_v52  ;;  %v929_v20 = vcombine.low %v912_v63, %v926_v3  ;;  %v2580_v25 = vrot.slane %v7235_v8, %v7475_v22  ;;  %v3165_v27 = vpack.c.bf16 %v2527_v12, %v2456_v11  ;;  %v7252_v30 = vld [vmem:[#allocation7 + $0x20] sm:$0xff]  }
 0x128   :  { %v3077_v43 = vpack.c.bf16 %v716_v23, %v645_v0  ;;  %v6986_v0 = vld [vmem:[#allocation2 + $0x1b0] ss:$14 sps:$4 sm:$0x33]   ;;  %v3157_v24 = vpack.c.bf16 %v2384_v7, %v2313_v6  ;;  %v2665_v29 = vrot.slane %v7238_v14, %v7475_v22  ;;  %v3164_v53 = vpack.c.bf16 %v2526_v38, %v2455_v37  ;;  %v7009_v6 = vld [vmem:[#allocation2 + $0x23c] ss:$14 sps:$4 sm:$0x33]  }
 0x129   :  { %6304 = vmatpush3.bf16.msra.mxu1 %v7250_v15  ;;  %v1139_v36 = vrot.slane %v6986_v0, %v7475_v22  ;;  %v2736_v55 = vrot.slane %v7240_v40, %v7475_v22  ;;  %v1267_v60 = vrot.slane %v6999_v1, %v7475_v22  ;;  %v7012_v7 = vld [vmem:[#allocation2 + $0x258] ss:$14 sps:$4 sm:$0x33]   ;;  %v7015_v11 = vld [vmem:[#allocation2 + $0x274] ss:$14 sps:$4 sm:$0x33]  }
 0x12a   :  { %6305 = vmatprep.subr.bf16.mxu1 %v7251_v16  ;;  %v7018_v12 = vld [vmem:[#allocation2 + $0x290] ss:$14 sps:$4 sm:$0x33]   ;;  %v1352_v19 = vrot.slane %v7012_v7, %v7475_v22  ;;  %v7025_v0 = vld [vmem:[#allocation2 + $0x2ac] ss:$14 sps:$4 sm:$0x33]  }
 0x12b   :  { %4391 = vmatmul.mubr.bf16.gmra.mrb[56].mxu0 %v3173_v54  ;;  %4158 = vmatmul.mubr.bf16.gmra.mrb[40].mxu1 %v3143_v26  ;;  %v6970_v54 = vld [vmem:[#allocation2 + $0x140] ss:$14 sps:$4 sm:$0x33]   ;;  %v2594_v26 = vrot.slane %v7236_v9, %v7475_v22  ;;  %v1142_v52 = vcombine.low %v1125_v35, %v1139_v36  ;;  %v1284_v9 = vcombine.low %v1267_v60, %v1281_v61  ;;  %v7041_v35 = vld [vmem:[#allocation2 + $0x31c] ss:$14 sps:$4 sm:$0x33]  }
 0x12c   :  { %4400 = vmatprep.mubr.bf16.mxu0 %v3181_v2  ;;  %4167 = vmatprep.mubr.bf16.mxu1 %v3151_v28  ;;  %v3158_v2 = vpack.c.bf16 %v2385_v46, %v2314_v44  ;;  %v997_v5 = vrot.slane %v6970_v54, %v7475_v22  ;;  %v2651_v28 = vrot.slane %v7237_v13, %v7475_v22  ;;  %v7242_v44 = vld [vmem:[#allocation2 + $0x6e8] ss:$14 sps:$4 sm:$0xff]   ;;  %v7050_v40 = vld [vmem:[#allocation2 + $0x370] ss:$14 sps:$4 sm:$0x33]  }
 0x12d   :  { %v2598_v41 = vcombine.high %v2580_v25, %v2594_v26  ;;  %6306 = vmatpush3.bf16.msra.mxu1 %v7252_v30  ;;  %v7254_v46 = vld [vmem:[#allocation7 + $0x28] sm:$0xff]   ;;  %v2722_v54 = vrot.slane %v7239_v39, %v7475_v22  ;;  %v2807_v58 = vrot.slane %v7242_v44, %v7475_v22  ;;  %v2597_v62 = vcombine.low %v2580_v25, %v2594_v26  ;;  %v7034_v25 = vld [vmem:[#allocation2 + $0x300] ss:$14 sps:$4 sm:$0x33]  }
 0x12e   :  { %v1000_v23 = vcombine.low %v983_v4, %v997_v5  ;;  %v2669_v42 = vcombine.high %v2651_v28, %v2665_v29  ;;  %6307 = vmatprep.subr.bf16.mxu1 %v7253_v31  ;;  %v2668_v63 = vcombine.low %v2651_v28, %v2665_v29  ;;  %v1423_v21 = vrot.slane %v7018_v12, %v7475_v22  ;;  %v7044_v36 = vld [vmem:[#allocation2 + $0x338] ss:$14 sps:$4 sm:$0x33]   ;;  %v7047_v39 = vld [vmem:[#allocation2 + $0x354] ss:$14 sps:$4 sm:$0x33]  }
 0x12f   :  { %v2740_v4 = vcombine.high %v2722_v54, %v2736_v55  ;;  %v2739_v15 = vcombine.low %v2722_v54, %v2736_v55  ;;  %v1480_v29 = vrot.slane %v7025_v0, %v7475_v22  ;;  %v1707_v44 = vrot.slane %v7050_v40, %v7475_v22  ;;  %v7090_v60 = vld [vmem:[#allocation2 + $0x450] ss:$14 sps:$4 sm:$0x33]   ;;  %v7110_v12 = vld [vmem:[#allocation2 + $0x4c0] ss:$14 sps:$4 sm:$0x33]  }
 0x130   :  { %v3091_v45 = vpack.c.bf16 %v1000_v23, %v929_v20  ;;  %v1409_v20 = vrot.slane %v7015_v11, %v7475_v22  ;;  %v7028_v23 = vld [vmem:[#allocation2 + $0x2c8] ss:$14 sps:$4 sm:$0x33]   ;;  %v1849_v54 = vrot.slane %v7070_v49, %v7475_v22  ;;  %v7107_v11 = vld [vmem:[#allocation2 + $0x4a4] ss:$14 sps:$4 sm:$0x33]  }
 0x131   :  { %6308 = vmatpush3.bf16.msra.mxu1 %v7254_v46  ;;  %v1494_v30 = vrot.slane %v7028_v23, %v7475_v22  ;;  %v7061_v46 = vld [vmem:[#allocation2 + $0x38c] ss:$14 sps:$4 sm:$0x33]   ;;  %v7121_v23 = vld [vmem:[#allocation2 + $0x4dc] ss:$14 sps:$4 sm:$0x33]  }
 0x132   :  { %6309 = vmatprep.subr.bf16.mxu1 %v7255_v47  ;;  %v1426_v28 = vcombine.low %v1409_v20, %v1423_v21  ;;  %v7064_v47 = vld [vmem:[#allocation2 + $0x3a8] ss:$14 sps:$4 sm:$0x33]   ;;  %v1764_v51 = vrot.slane %v7061_v46, %v7475_v22  ;;  %v2133_v20 = vrot.slane %v7110_v12, %v7475_v22 }
 0x133   :  { %4401 = vmatmul.mubr.bf16.gmra.mrb[60].mxu0 %v3180_v18  ;;  %4168 = vmatmul.mubr.bf16.gmra.mrb[44].mxu1 %v3150_v56  ;;  %v6977_v18 = vld [vmem:[#allocation2 + $0x15c] ss:$14 sps:$4 sm:$0x33]   ;;  %v3172_v56 = vpack.c.bf16 %v2669_v42, %v2598_v41  ;;  %v1497_v37 = vcombine.low %v1480_v29, %v1494_v30  ;;  %v1622_v41 = vrot.slane %v7041_v35, %v7475_v22  ;;  %v7130_v30 = vld [vmem:[#allocation2 + $0x530] ss:$14 sps:$4 sm:$0x33]  }
 0x134   :  { %4443 = vmatprep.mubr.bf16.mxu0 %v7392_v34  ;;  %4177 = vmatprep.mubr.bf16.mxu1 %v3158_v2  ;;  %v1054_v32 = vrot.slane %v6977_v18, %v7475_v22  ;;  %v1196_v2 = vrot.slane %v6993_v48, %v7475_v22  ;;  %v1338_v18 = vrot.slane %v7009_v6, %v7475_v22  ;;  %v7067_v48 = vld [vmem:[#allocation2 + $0x3c4] ss:$14 sps:$4 sm:$0x33]  }
 0x135   :  { %v1636_v42 = vrot.slane %v7044_v36, %v7475_v22  ;;  %v1991_v6 = vrot.slane %v7090_v60, %v7475_v22 }
 0x136   :  { %v1071_v50 = vcombine.low %v1054_v32, %v1068_v33  ;;  %v1213_v8 = vcombine.low %v1196_v2, %v1210_v59  ;;  %v1565_v32 = vrot.slane %v7034_v25, %v7475_v22  ;;  %v7087_v59 = vld [vmem:[#allocation2 + $0x434] ss:$14 sps:$4 sm:$0x33]  }
 0x138   :  { %v3098_v3 = vpack.c.bf16 %v1142_v52, %v1071_v50  ;;  %v3105_v14 = vpack.c.bf16 %v1284_v9, %v1213_v8  ;;  %v1639_v50 = vcombine.low %v1622_v41, %v1636_v42  ;;  %v1778_v52 = vrot.slane %v7064_v47, %v7475_v22  ;;  %v7101_v8 = vld [vmem:[#allocation2 + $0x46c] ss:$14 sps:$4 sm:$0x33]   ;;  %v7150_v42 = vld [vmem:[#allocation2 + $0x5a0] ss:$14 sps:$4 sm:$0x33]  }
 0x13b   :  { %6184 = vmatmul.mubr.msk.bf16.vlgmr.msra.gmra.mrb[0].mxu0 %vm3783_vm0, %v3077_v43  ;;  %4178 = vmatmul.mubr.bf16.gmra.mrb[48].mxu1 %v3157_v24  ;;  %v7241_v43 = vld [vmem:[#allocation2 + $0x6cc] ss:$14 sps:$4 sm:$0xff]   ;;  %v7031_v24 = vld [vmem:[#allocation2 + $0x2e4] ss:$14 sps:$4 sm:$0x33]  }
 0x13c   :  { %4453 = vmatprep.mubr.bf16.mxu0 %v7392_v34  ;;  %4187 = vmatprep.mubr.bf16.mxu1 %v3165_v27  ;;  %v2793_v57 = vrot.slane %v7241_v43, %v7475_v22  ;;  %v1355_v27 = vcombine.low %v1338_v18, %v1352_v19  ;;  %v1551_v31 = vrot.slane %v7031_v24, %v7475_v22  ;;  %v7124_v24 = vld [vmem:[#allocation2 + $0x4f8] ss:$14 sps:$4 sm:$0x33]  }
 0x13d   :  { %v1693_v43 = vrot.slane %v7047_v39, %v7475_v22  ;;  %v2119_v19 = vrot.slane %v7107_v11, %v7475_v22  ;;  %v2204_v35 = vrot.slane %v7124_v24, %v7475_v22  ;;  %v7144_v39 = vld [vmem:[#allocation2 + $0x568] ss:$14 sps:$4 sm:$0x33]   ;;  %v7181_v11 = vld [vmem:[#allocation2 + $0x62c] ss:$14 sps:$4 sm:$0x33]  }
 0x13e   :  { %v2811_v5 = vcombine.high %v2793_v57, %v2807_v58  ;;  %v2810_v16 = vcombine.low %v2793_v57, %v2807_v58  ;;  %v3112_v33 = vpack.c.bf16 %v1426_v28, %v1355_v27  ;;  %v1568_v38 = vcombine.low %v1551_v31, %v1565_v32  ;;  %v7084_v57 = vld [vmem:[#allocation2 + $0x418] ss:$14 sps:$4 sm:$0x33]  }
 0x13f   :  { %v1710_v1 = vcombine.low %v1693_v43, %v1707_v44  ;;  %v1781_v58 = vcombine.low %v1764_v51, %v1778_v52  ;;  %v2136_v28 = vcombine.low %v2119_v19, %v2133_v20  ;;  %v2346_v49 = vrot.slane %v7144_v39, %v7475_v22 }
 0x140   :  { %v3179_v13 = vpack.c.bf16 %v2811_v5, %v2740_v4  ;;  %v3178_v26 = vpack.c.bf16 %v2810_v16, %v2739_v15  ;;  %v1920_v4 = vrot.slane %v7084_v57, %v7475_v22  ;;  %v1977_v5 = vrot.slane %v7087_v59, %v7475_v22  ;;  %v7170_v59 = vld [vmem:[#allocation2 + $0x610] ss:$14 sps:$4 sm:$0x33]  }
 0x141   :  { %v3126_v55 = vpack.c.bf16 %v1710_v1, %v1639_v50  ;;  %v2048_v16 = vrot.slane %v7101_v8, %v7475_v22  ;;  %v2417_v1 = vrot.slane %v7150_v42, %v7475_v22 }
 0x142   :  { %v1994_v15 = vcombine.low %v1977_v5, %v1991_v6 }
 0x143   :  { %6185 = vmatmul.mubr.msk.bf16.gmra.mrb[4].mxu0 %vm3783_vm0, %v3084_v10  ;;  %4188 = vmatmul.mubr.bf16.gmra.mrb[52].mxu1 %v3164_v53  ;;  %v3171_v10 = vpack.c.bf16 %v2668_v63, %v2597_v62  ;;  %v1835_v53 = vrot.slane %v7067_v48, %v7475_v22 }
 0x144   :  { %4463 = vmatprep.mubr.bf16.mxu0 %v7392_v34  ;;  %4197 = vmatprep.mubr.bf16.mxu1 %v3172_v56  ;;  %v7081_v56 = vld [vmem:[#allocation2 + $0x3fc] ss:$14 sps:$4 sm:$0x33]  }
 0x145   :  { %v1852_v2 = vcombine.low %v1835_v53, %v1849_v54  ;;  %v7161_v53 = vld [vmem:[#allocation2 + $0x5bc] ss:$14 sps:$4 sm:$0x33]   ;;  %v7164_v54 = vld [vmem:[#allocation2 + $0x5d8] ss:$14 sps:$4 sm:$0x33]  }
 0x146   :  { %v2474_v5 = vrot.slane %v7161_v53, %v7475_v22  ;;  %v2488_v6 = vrot.slane %v7164_v54, %v7475_v22 }
 0x147   :  { %v3133_v62 = vpack.c.bf16 %v1852_v2, %v1781_v58 }
 0x148   :  { %v2491_v19 = vcombine.low %v2474_v5, %v2488_v6 }
 0x14b   :  { %6186 = vmatmul.mubr.msk.bf16.gmra.mrb[8].mxu0 %vm3783_vm0, %v3091_v45  ;;  %4198 = vmatmul.mubr.bf16.gmra.mrb[56].mxu1 %v3171_v10  ;;  %v3119_v45 = vpack.c.bf16 %v1568_v38, %v1497_v37  ;;  %v7104_v10 = vld [vmem:[#allocation2 + $0x488] ss:$14 sps:$4 sm:$0x33]   ;;  %v2275_v37 = vrot.slane %v7130_v30, %v7475_v22  ;;  %v7141_v38 = vld [vmem:[#allocation2 + $0x54c] ss:$14 sps:$4 sm:$0x33]  }
 0x14c   :  { %4473 = vmatprep.mubr.bf16.mxu0 %v7392_v34  ;;  %4207 = vmatprep.mubr.bf16.mxu1 %v3179_v13  ;;  %v7256_v13 = vld [vmem:[#allocation7 + $0x30] sm:$0xff]   ;;  %v2062_v18 = vrot.slane %v7104_v10, %v7475_v22  ;;  %v2332_v48 = vrot.slane %v7141_v38, %v7475_v22  ;;  %v2559_v10 = vrot.slane %v7170_v59, %v7475_v22  ;;  %v7201_v30 = vld [vmem:[#allocation2 + $0x69c] ss:$14 sps:$4 sm:$0x33]  }
 0x14d   :  { %6310 = vmatpush3.bf16.msra.mxu1 %v7256_v13  ;;  %v7184_v13 = vld [vmem:[#allocation2 + $0x648] ss:$14 sps:$4 sm:$0x33]   ;;  %v7210_v38 = vld [vmem:[#allocation2 + $0x6f0] ss:$14 sps:$4 sm:$0x33]  }
 0x14e   :  { %v2065_v27 = vcombine.low %v2048_v16, %v2062_v18  ;;  %v2349_v57 = vcombine.low %v2332_v48, %v2346_v49  ;;  %v7190_v18 = vld [vmem:[#allocation2 + $0x680] ss:$14 sps:$4 sm:$0x33]  }
 0x150   :  { %v3147_v32 = vpack.c.bf16 %v2136_v28, %v2065_v27  ;;  %v2701_v28 = vrot.slane %v7190_v18, %v7475_v22  ;;  %v3281_v18 = vld [vmem:[%s8471_s2] sm:$0x3] }
 0x153   :  { %6187 = vmatmul.mubr.msk.bf16.gmra.mrb[12].mxu0 %vm3783_vm0, %v3098_v3  ;;  %4208 = vmatmul.mubr.bf16.gmra.mrb[60].mxu1 %v3178_v26  ;;  %v1906_v3 = vrot.slane %v7081_v56, %v7475_v22  ;;  %v7127_v26 = vld [vmem:[#allocation2 + $0x514] ss:$14 sps:$4 sm:$0x33]  }
 0x154   :  { %4483 = vmatprep.mubr.bf16.mxu0 %v7392_v34  ;;  %v2261_v36 = vrot.slane %v7127_v26, %v7475_v22  ;;  %v7167_v56 = vld [vmem:[#allocation2 + $0x5f4] ss:$14 sps:$4 sm:$0x33]   ;;  %v2630_v26 = vrot.slane %v7184_v13, %v7475_v22 }
 0x155   :  { %v2545_v8 = vrot.slane %v7167_v56, %v7475_v22 }
 0x156   :  { %v2278_v46 = vcombine.low %v2261_v36, %v2275_v37  ;;  %v7207_v36 = vld [vmem:[#allocation2 + $0x6d4] ss:$14 sps:$4 sm:$0x33]  }
 0x157   :  { %v2562_v20 = vcombine.low %v2545_v8, %v2559_v10  ;;  %v2829_v49 = vrot.slane %v7207_v36, %v7475_v22 }
 0x159   :  { %v3168_v24 = vpack.c.bf16 %v2562_v20, %v2491_v19  ;;  %v3289_v19 = vsub.s32 1, %v7472_v17 }
 0x15b   :  { %6188 = vmatmul.mubr.msk.bf16.gmra.mrb[16].mxu0 %vm3783_vm0, %v3105_v14  ;;  %v1923_v14 = vcombine.low %v1906_v3, %v1920_v4  ;;  %v7258_v3 = vld [vmem:[#allocation7 + $0x38] sm:$0xff]  }
 0x15c   :  { %4493 = vmatprep.mubr.bf16.mxu0 %v7392_v34 }
 0x15d   :  { %v3140_v21 = vpack.c.bf16 %v1994_v15, %v1923_v14  ;;  %v7187_v15 = vld [vmem:[#allocation2 + $0x664] ss:$14 sps:$4 sm:$0x33]  }
 0x15e   :  { %v2687_v27 = vrot.slane %v7187_v15, %v7475_v22  ;;  %v3285_v15 = vsub.s32 0, %v7472_v17 }
 0x160   :  { %v8141_v20 = vrot.slane %v3281_v18, %v3285_v15 }
 0x163   :  { %6189 = vmatmul.mubr.msk.bf16.gmra.mrb[20].mxu0 %vm3783_vm0, %v3112_v33  ;;  %v2190_v33 = vrot.slane %v7121_v23, %v7475_v22  ;;  %v2616_v23 = vrot.slane %v7181_v11, %v7475_v22 }
 0x164   :  { %4503 = vmatprep.mubr.bf16.mxu0 %v7392_v34 }
 0x165   :  { %v2207_v44 = vcombine.low %v2190_v33, %v2204_v35  ;;  %v7204_v33 = vld [vmem:[#allocation2 + $0x6b8] ss:$14 sps:$4 sm:$0x33]   ;;  %v2633_v39 = vcombine.low %v2616_v23, %v2630_v26 }
 0x166   :  { %v2772_v48 = vrot.slane %v7204_v33, %v7475_v22 }
 0x167   :  { %v3154_v51 = vpack.c.bf16 %v2278_v46, %v2207_v44  ;;  %v2758_v44 = vrot.slane %v7201_v30, %v7475_v22 }
 0x169   :  { %v8013_v61 = vpop.f32.mrb[0].mxu1  ;;  %v2775_v54 = vcombine.low %v2758_v44, %v2772_v48 }
 0x16a   :  { %v8015_v63 = vpop.f32.mrb[1].mxu1  ;;  %v3867_v30 = vadd.f32 %v8013_v61, %v8141_v20 }
 0x16b   :  { %6190 = vmatmul.mubr.msk.bf16.gmra.mrb[24].mxu0 %vm3783_vm0, %v3119_v45  ;;  %v8021_v7 = vpop.f32.mrb[2].mxu1  ;;  %v7147_v45 = vld [vmem:[#allocation2 + $0x584] ss:$14 sps:$4 sm:$0x33]  }
 0x16c   :  { %4513 = vmatprep.mubr.bf16.mxu0 %v7392_v34  ;;  %v8023_v9 = vpop.f32.mrb[3].mxu1  ;;  %v2403_v50 = vrot.slane %v7147_v45, %v7475_v22  ;;  %v2704_v45 = vcombine.low %v2687_v27, %v2701_v28 }
 0x16e   :  { %v2420_v58 = vcombine.low %v2403_v50, %v2417_v1  ;;  %v3175_v46 = vpack.c.bf16 %v2704_v45, %v2633_v39  ;;  %v2843_v50 = vrot.slane %v7210_v38, %v7475_v22  ;;  %v3871_v38 = vadd.f32 %v8021_v7, %v8141_v20 }
 0x170   :  { %v3161_v4 = vpack.c.bf16 %v2420_v58, %v2349_v57  ;;  %v2846_v56 = vcombine.low %v2829_v49, %v2843_v50 }
 0x172   :  { %v3182_v58 = vpack.c.bf16 %v2846_v56, %v2775_v54 }
 0x173   :  { %6191 = vmatmul.mubr.msk.bf16.gmra.mrb[28].mxu0 %vm3783_vm0, %v3126_v55 }
 0x174   :  { %4523 = vmatprep.mubr.bf16.mxu0 %v7392_v34  ;;  %v8031_v0 = vpop.f32.mrb[4].mxu1 }
 0x175   :  { %v8033_v25 = vpop.f32.mrb[5].mxu1 }
 0x176   :  { %v8035_v29 = vpop.f32.mrb[6].mxu1 }
 0x177   :  { %v8038_v31 = vpop.f32.mrb[7].mxu1 }
 0x17b   :  { %6192 = vmatmul.mubr.msk.bf16.gmra.mrb[32].mxu0 %vm3783_vm0, %v3133_v62  ;;  %v7257_v62 = vld [vmem:[#allocation7 + $0x78] sm:$0xff]  }
 0x17c   :  { %4533 = vmatprep.mubr.bf16.mxu0 %v7392_v34  ;;  %v8045_v40 = vpop.f32.mrb[8].mxu1  ;;  %6311 = vmatprep.subr.bf16.mxu1 %v7257_v62 }
 0x17d   :  { %v8047_v41 = vpop.f32.mrb[9].mxu1  ;;  %6312 = vmatpush3.bf16.msra.mxu1 %v7258_v3 }
 0x17e   :  { %v8049_v43 = vpop.f32.mrb[10].mxu1 }
 0x17f   :  { %v8052_v47 = vpop.f32.mrb[11].mxu1 }
 0x183   :  { %6193 = vmatmul.mubr.msk.bf16.gmra.mrb[36].mxu0 %vm3783_vm0, %v3140_v21 }
 0x184   :  { %4543 = vmatprep.mubr.bf16.mxu0 %v7392_v34 }
 0x186   :  { %v8059_v52 = vpop.f32.mrb[12].mxu1 }
 0x187   :  { %v8061_v55 = vpop.f32.mrb[13].mxu1 }
 0x188   :  { %v8063_v2 = vpop.f32.mrb[14].mxu1 }
 0x189   :  { %v8066_v60 = vpop.f32.mrb[15].mxu1 }
 0x18b   :  { %6194 = vmatmul.mubr.msk.bf16.gmra.mrb[40].mxu0 %vm3783_vm0, %v3147_v32 }
 0x18c   :  { %4553 = vmatprep.mubr.bf16.mxu0 %v7392_v34 }
 0x18e   :  { %v8073_v12 = vpop.f32.mrb[16].mxu1 }
 0x18f   :  { %v8075_v14 = vpop.f32.mrb[17].mxu1 }
 0x190   :  { %v8077_v16 = vpop.f32.mrb[18].mxu1 }
 0x191   :  { %v8080_v21 = vpop.f32.mrb[19].mxu1 }
 0x193   :  { %6195 = vmatmul.mubr.msk.bf16.gmra.mrb[44].mxu0 %vm3783_vm0, %v3154_v51 }
 0x194   :  { %4563 = vmatprep.mubr.bf16.mxu0 %v7392_v34 }
 0x196   :  { %v8087_v32 = vpop.f32.mrb[20].mxu1 }
 0x197   :  { %v8089_v35 = vpop.f32.mrb[21].mxu1 }
 0x198   :  { %v8091_v37 = vpop.f32.mrb[22].mxu1 }
 0x199   :  { %v8094_v42 = vpop.f32.mrb[23].mxu1 }
 0x19b   :  { %6196 = vmatmul.mubr.msk.bf16.gmra.mrb[48].mxu0 %vm3783_vm0, %v3161_v4 }
 0x19c   :  { %4573 = vmatprep.mubr.bf16.mxu0 %v7392_v34 }
 0x19e   :  { %v8101_v1 = vpop.f32.mrb[24].mxu1 }
 0x19f   :  { %v8103_v51 = vpop.f32.mrb[25].mxu1 }
 0x1a0   :  { %v8105_v53 = vpop.f32.mrb[26].mxu1 }
 0x1a1   :  { %v8108_v57 = vpop.f32.mrb[27].mxu1 }
 0x1a3   :  { %6197 = vmatmul.mubr.msk.bf16.gmra.mrb[52].mxu0 %vm3783_vm0, %v3168_v24  ;;  %v8145_v24 = vrot.slane %v3281_v18, %v3289_v19 }
 0x1a4   :  { %4583 = vmatprep.mubr.bf16.mxu0 %v7392_v34 }
 0x1a5   :  { %v3869_v33 = vadd.f32 %v8015_v63, %v8145_v24  ;;  %v3873_v44 = vadd.f32 %v8023_v9, %v8145_v24  ;;  %v3877_v9 = vadd.f32 %v8031_v0, %v8141_v20 }
 0x1a6   :  { %v8111_v59 = vpop.f32.mrb[28].mxu1 }
 0x1a7   :  { %v8113_v62 = vpop.f32.mrb[29].mxu1 }
 0x1a8   :  { %v8115_v22 = vpop.f32.mrb[30].mxu1 }
 0x1a9   :  { %v8118_v3 = vpop.f32.mrb[31].mxu1 }
 0x1ab   :  { %6198 = vmatmul.mubr.msk.bf16.gmra.mrb[56].mxu0 %vm3783_vm0, %v3175_v46 }
 0x1ac   :  { %4593 = vmatprep.mubr.bf16.mxu0 %v7392_v34 }
 0x1b3   :  { %6199 = vmatmul.mubr.msk.bf16.gmra.mrb[60].mxu0 %vm3783_vm0, %v3182_v58 }
 0x1ee   :  { %v8120_v4 = vpop.f32.mrb[32].mxu1 }
 0x1ef   :  { %v8122_v5 = vpop.f32.mrb[33].mxu1 }
 0x1f0   :  { %v8124_v6 = vpop.f32.mrb[34].mxu1 }
 0x1f1   :  { %v8126_v8 = vpop.f32.mrb[35].mxu1 }
 0x1f6   :  { %v8128_v34 = vpop.f32.mrb[36].mxu1 }
 0x1f7   :  { %v8130_v10 = vpop.f32.mrb[37].mxu1 }
 0x1f8   :  { %v8132_v11 = vpop.f32.mrb[38].mxu1 }
 0x1f9   :  { %v8134_v13 = vpop.f32.mrb[39].mxu1 }
 0x1fe   :  { %v8143_v23 = vpop.f32.mrb[40].mxu1 }
 0x1ff   :  { %v8147_v26 = vpop.f32.mrb[41].mxu1 }
 0x200   :  { %v8149_v27 = vpop.f32.mrb[42].mxu1 }
 0x201   :  { %v8151_v28 = vpop.f32.mrb[43].mxu1 }
 0x206   :  { %v8161_v54 = vpop.f32.mrb[44].mxu1 }
 0x207   :  { %v8163_v61 = vpop.f32.mrb[45].mxu1 }
 0x208   :  { %v8165_v15 = vpop.f32.mrb[46].mxu1 }
 0x209   :  { %v8167_v19 = vpop.f32.mrb[47].mxu1 }
 0x20e   :  { %v4445_v36 = vpop.f32.mrb[0].mxu0  ;;  %v8177_v0 = vpop.f32.mrb[48].mxu1 }
 0x20f   :  { %v6442_v39 = vadd.f32 %v4445_v36, %v3867_v30  ;;  %v4447_v45 = vpop.f32.mrb[1].mxu0 }
 0x210   :  { %v6444_v46 = vadd.f32 %v4447_v45, %v3869_v33  ;;  %v4449_v48 = vpop.f32.mrb[2].mxu0  ;;  %v3879_v33 = vadd.f32 %v8033_v25, %v8145_v24  ;;  %v3881_v45 = vadd.f32 %v8035_v29, %v8141_v20  ;;  %v8179_v25 = vpop.f32.mrb[49].mxu1 }
 0x211   :  { %v6446_v49 = vadd.f32 %v4449_v48, %v3871_v38  ;;  %v4451_v50 = vpop.f32.mrb[3].mxu0  ;;  %v4604_v58 = vmax.f32 %v6442_v39, 0.0 }
 0x212   :  { %v6448_v56 = vadd.f32 %v4451_v50, %v3873_v44  ;;  %v4605_v18 = vmax.f32 %v6444_v46, 0.0  ;;  %v3883_v46 = vadd.f32 %v8038_v31, %v8145_v24  ;;  %v3887_v31 = vadd.f32 %v8045_v40, %v8141_v20 }
 0x213   :  { %v4606_v63 = vmax.f32 %v6446_v49, 0.0 }
 0x214   :  { %v4607_v7 = vmax.f32 %v6448_v56, 0.0 }
 0x215   :  { %v4668_v30 = vpack.c.bf16 %v4606_v63, %v4604_v58 }
 0x216   :  { %v4669_v36 = vpack.c.bf16 %v4607_v7, %v4605_v18  ;;  %v4455_v38 = vpop.f32.mrb[4].mxu0  ;;  %v8181_v7 = vpop.f32.mrb[50].mxu1 }
 0x217   :  { %v6450_v39 = vadd.f32 %v4455_v38, %v3877_v9  ;;  %v4457_v44 = vpop.f32.mrb[5].mxu0  ;;  %v8183_v38 = vpop.f32.mrb[51].mxu1 }
 0x218   :  { %v6452_v48 = vadd.f32 %v4457_v44, %v3879_v33  ;;  %v4459_v49 = vpop.f32.mrb[6].mxu0  ;;  %4867 = vmatprep.mubr.bf16.mxu1 %v4669_v36  ;;  %v3891_v44 = vadd.f32 %v8049_v43, %v8141_v20  ;;  %v8193_v40 = vpop.f32.mrb[52].mxu1 }
 0x219   :  { %v6454_v50 = vadd.f32 %v4459_v49, %v3881_v45  ;;  %v4461_v56 = vpop.f32.mrb[7].mxu0  ;;  %4868 = vmatmul.mubr.bf16.vlgmr.msra.gmra.mrb[64].mxu1 %v4668_v30  ;;  %v4608_v63 = vmax.f32 %v6450_v39, 0.0  ;;  %v3889_v30 = vadd.f32 %v8047_v41, %v8145_v24  ;;  %v8195_v41 = vpop.f32.mrb[53].mxu1 }
 0x21a   :  { %v6456_v58 = vadd.f32 %v4461_v56, %v3883_v46  ;;  %v4609_v29 = vmax.f32 %v6452_v48, 0.0  ;;  %v3893_v48 = vadd.f32 %v8052_v47, %v8145_v24  ;;  %v3897_v47 = vadd.f32 %v8059_v52, %v8141_v20 }
 0x21b   :  { %v4610_v18 = vmax.f32 %v6454_v50, 0.0 }
 0x21c   :  { %v4611_v9 = vmax.f32 %v6456_v58, 0.0 }
 0x21d   :  { %v4670_v33 = vpack.c.bf16 %v4610_v18, %v4608_v63 }
 0x21e   :  { %v4671_v36 = vpack.c.bf16 %v4611_v9, %v4609_v29  ;;  %v4465_v45 = vpop.f32.mrb[8].mxu0  ;;  %v8197_v9 = vpop.f32.mrb[54].mxu1 }
 0x21f   :  { %v6458_v39 = vadd.f32 %v4465_v45, %v3887_v31  ;;  %v4467_v46 = vpop.f32.mrb[9].mxu0  ;;  %v8199_v45 = vpop.f32.mrb[55].mxu1 }
 0x220   :  { %v6460_v49 = vadd.f32 %v4467_v46, %v3889_v30  ;;  %v4469_v50 = vpop.f32.mrb[10].mxu0  ;;  %4875 = vmatprep.mubr.bf16.mxu1 %v4671_v36  ;;  %v3901_v46 = vadd.f32 %v8063_v2, %v8141_v20  ;;  %v8209_v52 = vpop.f32.mrb[56].mxu1 }
 0x221   :  { %v6462_v56 = vadd.f32 %v4469_v50, %v3891_v44  ;;  %v4471_v58 = vpop.f32.mrb[11].mxu0  ;;  %4876 = vmatmul.mubr.bf16.gmra.mrb[68].mxu1 %v4670_v33  ;;  %v4612_v18 = vmax.f32 %v6458_v39, 0.0  ;;  %v3899_v33 = vadd.f32 %v8061_v55, %v8145_v24  ;;  %v8211_v55 = vpop.f32.mrb[57].mxu1 }
 0x222   :  { %v6464_v63 = vadd.f32 %v4471_v58, %v3893_v48  ;;  %v4613_v43 = vmax.f32 %v6460_v49, 0.0  ;;  %v3903_v49 = vadd.f32 %v8066_v60, %v8145_v24  ;;  %v3907_v60 = vadd.f32 %v8073_v12, %v8141_v20 }
 0x223   :  { %v4614_v29 = vmax.f32 %v6462_v56, 0.0 }
 0x224   :  { %v4615_v31 = vmax.f32 %v6464_v63, 0.0 }
 0x225   :  { %v4672_v30 = vpack.c.bf16 %v4614_v29, %v4612_v18 }
 0x226   :  { %v4673_v36 = vpack.c.bf16 %v4615_v31, %v4613_v43  ;;  %v4475_v44 = vpop.f32.mrb[12].mxu0  ;;  %v8213_v31 = vpop.f32.mrb[58].mxu1 }
 0x227   :  { %v6466_v39 = vadd.f32 %v4475_v44, %v3897_v47  ;;  %v4477_v48 = vpop.f32.mrb[13].mxu0  ;;  %v8215_v44 = vpop.f32.mrb[59].mxu1 }
 0x228   :  { %v6468_v50 = vadd.f32 %v4477_v48, %v3899_v33  ;;  %v4479_v56 = vpop.f32.mrb[14].mxu0  ;;  %4883 = vmatprep.mubr.bf16.mxu1 %v4673_v36  ;;  %v3911_v48 = vadd.f32 %v8077_v16, %v8141_v20  ;;  %v8225_v12 = vpop.f32.mrb[60].mxu1 }
 0x229   :  { %v6470_v58 = vadd.f32 %v4479_v56, %v3901_v46  ;;  %v4481_v63 = vpop.f32.mrb[15].mxu0  ;;  %4884 = vmatmul.mubr.bf16.gmra.mrb[72].mxu1 %v4672_v30  ;;  %v4616_v29 = vmax.f32 %v6466_v39, 0.0  ;;  %v3909_v30 = vadd.f32 %v8075_v14, %v8145_v24  ;;  %v8227_v14 = vpop.f32.mrb[61].mxu1 }
 0x22a   :  { %v6472_v18 = vadd.f32 %v4481_v63, %v3903_v49  ;;  %v4617_v2 = vmax.f32 %v6468_v50, 0.0  ;;  %v3913_v50 = vadd.f32 %v8080_v21, %v8145_v24  ;;  %v3917_v21 = vadd.f32 %v8087_v32, %v8141_v20 }
 0x22b   :  { %v4618_v43 = vmax.f32 %v6470_v58, 0.0 }
 0x22c   :  { %v4619_v47 = vmax.f32 %v6472_v18, 0.0 }
 0x22d   :  { %v4674_v33 = vpack.c.bf16 %v4618_v43, %v4616_v29 }
 0x22e   :  { %v4675_v36 = vpack.c.bf16 %v4619_v47, %v4617_v2  ;;  %v4485_v46 = vpop.f32.mrb[16].mxu0  ;;  %v8229_v47 = vpop.f32.mrb[62].mxu1 }
 0x22f   :  { %v6474_v39 = vadd.f32 %v4485_v46, %v3907_v60  ;;  %v4487_v49 = vpop.f32.mrb[17].mxu0  ;;  %v8231_v46 = vpop.f32.mrb[63].mxu1 }
 0x230   :  { %v6476_v56 = vadd.f32 %v4487_v49, %v3909_v30  ;;  %v4489_v58 = vpop.f32.mrb[18].mxu0  ;;  %4891 = vmatprep.mubr.bf16.mxu1 %v4675_v36  ;;  %v3921_v49 = vadd.f32 %v8091_v37, %v8141_v20 }
 0x231   :  { %v6478_v63 = vadd.f32 %v4489_v58, %v3911_v48  ;;  %v4491_v18 = vpop.f32.mrb[19].mxu0  ;;  %4892 = vmatmul.mubr.bf16.gmra.mrb[76].mxu1 %v4674_v33  ;;  %v4620_v43 = vmax.f32 %v6474_v39, 0.0  ;;  %v3919_v33 = vadd.f32 %v8089_v35, %v8145_v24 }
 0x232   :  { %v6480_v29 = vadd.f32 %v4491_v18, %v3913_v50  ;;  %v4621_v16 = vmax.f32 %v6476_v56, 0.0  ;;  %v3923_v56 = vadd.f32 %v8094_v42, %v8145_v24 }
 0x233   :  { %v4622_v2 = vmax.f32 %v6478_v63, 0.0 }
 0x234   :  { %v4623_v60 = vmax.f32 %v6480_v29, 0.0 }
 0x235   :  { %v4676_v30 = vpack.c.bf16 %v4622_v2, %v4620_v43 }
 0x236   :  { %v4677_v36 = vpack.c.bf16 %v4623_v60, %v4621_v16  ;;  %v4495_v48 = vpop.f32.mrb[20].mxu0  ;;  %v3927_v60 = vadd.f32 %v8101_v1, %v8141_v20 }
 0x237   :  { %v6482_v39 = vadd.f32 %v4495_v48, %v3917_v21  ;;  %v4497_v50 = vpop.f32.mrb[21].mxu0  ;;  %v3929_v21 = vadd.f32 %v8103_v51, %v8145_v24 }
 0x238   :  { %v6484_v58 = vadd.f32 %v4497_v50, %v3919_v33  ;;  %v4499_v63 = vpop.f32.mrb[22].mxu0  ;;  %4899 = vmatprep.mubr.bf16.mxu1 %v4677_v36  ;;  %v3931_v33 = vadd.f32 %v8105_v53, %v8141_v20 }
 0x239   :  { %v6486_v18 = vadd.f32 %v4499_v63, %v3921_v49  ;;  %v4501_v29 = vpop.f32.mrb[23].mxu0  ;;  %4900 = vmatmul.mubr.bf16.gmra.mrb[80].mxu1 %v4676_v30  ;;  %v4624_v43 = vmax.f32 %v6482_v39, 0.0  ;;  %v3933_v30 = vadd.f32 %v8108_v57, %v8145_v24 }
 0x23a   :  { %v6488_v32 = vadd.f32 %v4501_v29, %v3923_v56  ;;  %v4625_v35 = vmax.f32 %v6484_v58, 0.0 }
 0x23b   :  { %v4626_v2 = vmax.f32 %v6486_v18, 0.0 }
 0x23c   :  { %v4627_v16 = vmax.f32 %v6488_v32, 0.0  ;;  %v3937_v32 = vadd.f32 %v8111_v59, %v8141_v20 }
 0x23d   :  { %v4678_v37 = vpack.c.bf16 %v4626_v2, %v4624_v43  ;;  %v3939_v43 = vadd.f32 %v8113_v62, %v8145_v24 }
 0x23e   :  { %v4679_v48 = vpack.c.bf16 %v4627_v16, %v4625_v35  ;;  %v4505_v42 = vpop.f32.mrb[24].mxu0  ;;  %v3941_v35 = vadd.f32 %v8115_v22, %v8141_v20 }
 0x23f   :  { %v6490_v36 = vadd.f32 %v4505_v42, %v3927_v60  ;;  %v4507_v49 = vpop.f32.mrb[25].mxu0 }
 0x240   :  { %v6492_v39 = vadd.f32 %v4507_v49, %v3929_v21  ;;  %v4509_v50 = vpop.f32.mrb[26].mxu0  ;;  %4907 = vmatprep.mubr.bf16.mxu1 %v4679_v48 }
 0x241   :  { %v6494_v56 = vadd.f32 %v4509_v50, %v3931_v33  ;;  %v4511_v58 = vpop.f32.mrb[27].mxu0  ;;  %4908 = vmatmul.mubr.bf16.gmra.mrb[84].mxu1 %v4678_v37  ;;  %v4628_v63 = vmax.f32 %v6490_v36, 0.0  ;;  %v3943_v37 = vadd.f32 %v8118_v3, %v8145_v24  ;;  %v6507_v50 = vadd.f32 %v8122_v5, %v8145_v24 }
 0x242   :  { %v6496_v1 = vadd.f32 %v4511_v58, %v3933_v30  ;;  %v4629_v51 = vmax.f32 %v6492_v39, 0.0  ;;  %v6505_v39 = vadd.f32 %v8120_v4, %v8141_v20  ;;  %v6509_v58 = vadd.f32 %v8124_v6, %v8141_v20 }
 0x243   :  { %v4630_v18 = vmax.f32 %v6494_v56, 0.0 }
 0x244   :  { %v4631_v29 = vmax.f32 %v6496_v1, 0.0 }
 0x245   :  { %v4680_v53 = vpack.c.bf16 %v4630_v18, %v4628_v63  ;;  %v6511_v18 = vadd.f32 %v8126_v8, %v8145_v24 }
 0x246   :  { %v4681_v2 = vpack.c.bf16 %v4631_v29, %v4629_v51  ;;  %v4515_v57 = vpop.f32.mrb[28].mxu0 }
 0x247   :  { %v6498_v16 = vadd.f32 %v4515_v57, %v3937_v32  ;;  %v4517_v60 = vpop.f32.mrb[29].mxu0 }
 0x248   :  { %v6500_v21 = vadd.f32 %v4517_v60, %v3939_v43  ;;  %v4519_v48 = vpop.f32.mrb[30].mxu0  ;;  %4915 = vmatprep.mubr.bf16.mxu1 %v4681_v2 }
 0x249   :  { %v6502_v42 = vadd.f32 %v4519_v48, %v3941_v35  ;;  %v4521_v33 = vpop.f32.mrb[31].mxu0  ;;  %4916 = vmatmul.mubr.bf16.gmra.mrb[88].mxu1 %v4680_v53  ;;  %v4632_v36 = vmax.f32 %v6498_v16, 0.0  ;;  %v6513_v35 = vadd.f32 %v8128_v34, %v8141_v20  ;;  %v6515_v16 = vadd.f32 %v8130_v10, %v8145_v24 }
 0x24a   :  { %v6504_v59 = vadd.f32 %v4521_v33, %v3943_v37  ;;  %v4633_v62 = vmax.f32 %v6500_v21, 0.0  ;;  %v6517_v37 = vadd.f32 %v8132_v11, %v8141_v20 }
 0x24b   :  { %v4634_v49 = vmax.f32 %v6502_v42, 0.0  ;;  %v6519_v42 = vadd.f32 %v8134_v13, %v8145_v24 }
 0x24c   :  { %v4635_v30 = vmax.f32 %v6504_v59, 0.0 }
 0x24d   :  { %v4682_v22 = vpack.c.bf16 %v4634_v49, %v4632_v36 }
 0x24e   :  { %v4683_v56 = vpack.c.bf16 %v4635_v30, %v4633_v62  ;;  %v4525_v3 = vpop.f32.mrb[32].mxu0 }
 0x24f   :  { %v6506_v1 = vadd.f32 %v6505_v39, %v4525_v3  ;;  %v4527_v63 = vpop.f32.mrb[33].mxu0  ;;  %v6525_v3 = vadd.f32 %v8149_v27, %v8141_v20 }
 0x250   :  { %v6508_v51 = vadd.f32 %v6507_v50, %v4527_v63  ;;  %v4529_v29 = vpop.f32.mrb[34].mxu0  ;;  %4923 = vmatprep.mubr.bf16.mxu1 %v4683_v56  ;;  %v6523_v50 = vadd.f32 %v8147_v26, %v8145_v24  ;;  %v6527_v63 = vadd.f32 %v8151_v28, %v8145_v24 }
 0x251   :  { %v6510_v32 = vadd.f32 %v6509_v58, %v4529_v29  ;;  %v4531_v53 = vpop.f32.mrb[35].mxu0  ;;  %4924 = vmatmul.mubr.bf16.gmra.mrb[92].mxu1 %v4682_v22  ;;  %v4636_v43 = vmax.f32 %v6506_v1, 0.0  ;;  %v6521_v22 = vadd.f32 %v8143_v23, %v8141_v20 }
 0x252   :  { %v6512_v4 = vadd.f32 %v6511_v18, %v4531_v53  ;;  %v4637_v5 = vmax.f32 %v6508_v51, 0.0 }
 0x253   :  { %v4638_v2 = vmax.f32 %v6510_v32, 0.0 }
 0x254   :  { %v4639_v57 = vmax.f32 %v6512_v4, 0.0 }
 0x255   :  { %v4684_v6 = vpack.c.bf16 %v4638_v2, %v4636_v43  ;;  %v6529_v2 = vadd.f32 %v8161_v54, %v8141_v20 }
 0x256   :  { %v4685_v60 = vpack.c.bf16 %v4639_v57, %v4637_v5  ;;  %v4535_v8 = vpop.f32.mrb[36].mxu0  ;;  %v6531_v5 = vadd.f32 %v8163_v61, %v8145_v24 }
 0x257   :  { %v6514_v21 = vadd.f32 %v6513_v35, %v4535_v8  ;;  %v4537_v48 = vpop.f32.mrb[37].mxu0  ;;  %v6533_v35 = vadd.f32 %v8165_v15, %v8141_v20 }
 0x258   :  { %v6516_v33 = vadd.f32 %v6515_v16, %v4537_v48  ;;  %v4539_v59 = vpop.f32.mrb[38].mxu0  ;;  %4931 = vmatprep.mubr.bf16.mxu1 %v4685_v60  ;;  %v6535_v60 = vadd.f32 %v8167_v19, %v8145_v24 }
 0x259   :  { %v6518_v36 = vadd.f32 %v6517_v37, %v4539_v59  ;;  %v4541_v49 = vpop.f32.mrb[39].mxu0  ;;  %4932 = vmatmul.mubr.bf16.gmra.mrb[96].mxu1 %v4684_v6  ;;  %v4640_v62 = vmax.f32 %v6514_v21, 0.0 }
 0x25a   :  { %v6520_v34 = vadd.f32 %v6519_v42, %v4541_v49  ;;  %v4641_v10 = vmax.f32 %v6516_v33, 0.0  ;;  %v6539_v49 = vadd.f32 %v8179_v25, %v8145_v24 }
 0x25b   :  { %v4642_v30 = vmax.f32 %v6518_v36, 0.0  ;;  %v6537_v36 = vadd.f32 %v8177_v0, %v8141_v20 }
 0x25c   :  { %v4643_v39 = vmax.f32 %v6520_v34, 0.0 }
 0x25d   :  { %v4686_v11 = vpack.c.bf16 %v4642_v30, %v4640_v62  ;;  %v6541_v62 = vadd.f32 %v8181_v7, %v8141_v20 }
 0x25e   :  { %v4687_v56 = vpack.c.bf16 %v4643_v39, %v4641_v10  ;;  %v4545_v13 = vpop.f32.mrb[40].mxu0  ;;  %v6543_v39 = vadd.f32 %v8183_v38, %v8145_v24 }
 0x25f   :  { %v6522_v58 = vadd.f32 %v6521_v22, %v4545_v13  ;;  %v4547_v1 = vpop.f32.mrb[41].mxu0 }
 0x260   :  { %v6524_v18 = vadd.f32 %v6523_v50, %v4547_v1  ;;  %v4549_v51 = vpop.f32.mrb[42].mxu0  ;;  %4939 = vmatprep.mubr.bf16.mxu1 %v4687_v56  ;;  %v6545_v1 = vadd.f32 %v8193_v40, %v8141_v20 }
 0x261   :  { %v6526_v29 = vadd.f32 %v6525_v3, %v4549_v51  ;;  %v4551_v32 = vpop.f32.mrb[43].mxu0  ;;  %4940 = vmatmul.mubr.bf16.gmra.mrb[100].mxu1 %v4686_v11  ;;  %v4644_v53 = vmax.f32 %v6522_v58, 0.0  ;;  %v6549_v51 = vadd.f32 %v8197_v9, %v8141_v20 }
 0x262   :  { %v6528_v23 = vadd.f32 %v6527_v63, %v4551_v32  ;;  %v4645_v26 = vmax.f32 %v6524_v18, 0.0  ;;  %v6547_v63 = vadd.f32 %v8195_v41, %v8145_v24 }
 0x263   :  { %v4646_v4 = vmax.f32 %v6526_v29, 0.0 }
 0x264   :  { %v4647_v43 = vmax.f32 %v6528_v23, 0.0  ;;  %v6551_v23 = vadd.f32 %v8199_v45, %v8145_v24 }
 0x265   :  { %v4688_v27 = vpack.c.bf16 %v4646_v4, %v4644_v53 }
 0x266   :  { %v4689_v57 = vpack.c.bf16 %v4647_v43, %v4645_v26  ;;  %v4555_v28 = vpop.f32.mrb[44].mxu0 }
 0x267   :  { %v6530_v6 = vadd.f32 %v6529_v2, %v4555_v28  ;;  %v4557_v16 = vpop.f32.mrb[45].mxu0  ;;  %v6555_v28 = vadd.f32 %v8211_v55, %v8145_v24 }
 0x268   :  { %v6532_v8 = vadd.f32 %v6531_v5, %v4557_v16  ;;  %v4559_v37 = vpop.f32.mrb[46].mxu0  ;;  %4947 = vmatprep.mubr.bf16.mxu1 %v4689_v57  ;;  %v6553_v57 = vadd.f32 %v8209_v52, %v8141_v20 }
 0x269   :  { %v6534_v21 = vadd.f32 %v6533_v35, %v4559_v37  ;;  %v4561_v48 = vpop.f32.mrb[47].mxu0  ;;  %4948 = vmatmul.mubr.bf16.gmra.mrb[104].mxu1 %v4688_v27  ;;  %v4648_v42 = vmax.f32 %v6530_v6, 0.0  ;;  %v6557_v6 = vadd.f32 %v8213_v31, %v8141_v20 }
 0x26a   :  { %v6536_v54 = vadd.f32 %v6535_v60, %v4561_v48  ;;  %v4649_v61 = vmax.f32 %v6532_v8, 0.0  ;;  %v6559_v8 = vadd.f32 %v8215_v44, %v8145_v24 }
 0x26b   :  { %v4650_v33 = vmax.f32 %v6534_v21, 0.0 }
 0x26c   :  { %v4651_v59 = vmax.f32 %v6536_v54, 0.0 }
 0x26d   :  { %v4690_v15 = vpack.c.bf16 %v4650_v33, %v4648_v42 }
 0x26e   :  { %v4691_v34 = vpack.c.bf16 %v4651_v59, %v4649_v61  ;;  %v4565_v19 = vpop.f32.mrb[48].mxu0  ;;  %v6561_v59 = vadd.f32 %v8225_v12, %v8141_v20 }
 0x26f   :  { %v6538_v30 = vadd.f32 %v6537_v36, %v4565_v19  ;;  %v4567_v10 = vpop.f32.mrb[49].mxu0  ;;  %v6563_v36 = vadd.f32 %v8227_v14, %v8145_v24 }
 0x270   :  { %v6540_v22 = vadd.f32 %v6539_v49, %v4567_v10  ;;  %v4569_v11 = vpop.f32.mrb[50].mxu0  ;;  %4955 = vmatprep.mubr.bf16.mxu1 %v4691_v34  ;;  %v6565_v49 = vadd.f32 %v8229_v47, %v8141_v20  ;;  %v7393_v20 = vmov 1966171168  }
 0x271   :  { %v6542_v50 = vadd.f32 %v6541_v62, %v4569_v11  ;;  %v4571_v56 = vpop.f32.mrb[51].mxu0  ;;  %4956 = vmatmul.mubr.bf16.gmra.mrb[108].mxu1 %v4690_v15  ;;  %v4652_v13 = vmax.f32 %v6538_v30, 0.0  ;;  %v6567_v62 = vadd.f32 %v8231_v46, %v8145_v24  ;;  %v5030_v47 = vunpack.c.l.s4 %v7393_v20 }
 0x272   :  { %v6544_v0 = vadd.f32 %v6543_v39, %v4571_v56  ;;  %v4653_v25 = vmax.f32 %v6540_v22, 0.0 }
 0x273   :  { %v4654_v3 = vmax.f32 %v6542_v50, 0.0 }
 0x274   :  { %v4655_v58 = vmax.f32 %v6544_v0, 0.0 }
 0x275   :  { %v4692_v7 = vpack.c.bf16 %v4654_v3, %v4652_v13 }
 0x276   :  { %v4693_v18 = vpack.c.bf16 %v4655_v58, %v4653_v25  ;;  %v4575_v38 = vpop.f32.mrb[52].mxu0  ;;  %v5031_v58 = vunpack.c.0.s8 %v5030_v47 }
 0x277   :  { %v6546_v29 = vadd.f32 %v6545_v1, %v4575_v38  ;;  %v4577_v32 = vpop.f32.mrb[53].mxu0  ;;  %v8324_v1 = vld [vmem:[%s8473_s4] ss:$0 sm:$0xff] }
 0x278   :  { %v6548_v53 = vadd.f32 %v6547_v63, %v4577_v32  ;;  %v4579_v4 = vpop.f32.mrb[54].mxu0  ;;  %4963 = vmatprep.mubr.bf16.mxu1 %v4693_v18 }
 0x279   :  { %v6550_v26 = vadd.f32 %v6549_v51, %v4579_v4  ;;  %v4581_v43 = vpop.f32.mrb[55].mxu0  ;;  %4964 = vmatmul.mubr.bf16.gmra.mrb[112].mxu1 %v4692_v7  ;;  %v4656_v2 = vmax.f32 %v6546_v29, 0.0  ;;  %v8329_v51 = vsub.s32 %v5031_v58, %v7472_v17 }
 0x27a   :  { %v6552_v40 = vadd.f32 %v6551_v23, %v4581_v43  ;;  %v4657_v41 = vmax.f32 %v6548_v53, 0.0 }
 0x27b   :  { %v4658_v27 = vmax.f32 %v6550_v26, 0.0 }
 0x27c   :  { %v4659_v5 = vmax.f32 %v6552_v40, 0.0 }
 0x27d   :  { %v4694_v9 = vpack.c.bf16 %v4658_v27, %v4656_v2 }
 0x27e   :  { %v4695_v35 = vpack.c.bf16 %v4659_v5, %v4657_v41  ;;  %v4585_v45 = vpop.f32.mrb[56].mxu0 }
 0x27f   :  { %v6554_v16 = vadd.f32 %v6553_v57, %v4585_v45  ;;  %v4587_v60 = vpop.f32.mrb[57].mxu0 }
 0x280   :  { %v6556_v37 = vadd.f32 %v6555_v28, %v4587_v60  ;;  %v4589_v21 = vpop.f32.mrb[58].mxu0  ;;  %4971 = vmatprep.mubr.bf16.mxu1 %v4695_v35 }
 0x281   :  { %v6558_v48 = vadd.f32 %v6557_v6, %v4589_v21  ;;  %v4591_v54 = vpop.f32.mrb[59].mxu0  ;;  %4972 = vmatmul.mubr.bf16.gmra.mrb[116].mxu1 %v4694_v9  ;;  %v4660_v42 = vmax.f32 %v6554_v16, 0.0 }
 0x282   :  { %v6560_v52 = vadd.f32 %v6559_v8, %v4591_v54  ;;  %v4661_v55 = vmax.f32 %v6556_v37, 0.0 }
 0x283   :  { %v4662_v33 = vmax.f32 %v6558_v48, 0.0 }
 0x284   :  { %v4663_v61 = vmax.f32 %v6560_v52, 0.0 }
 0x285   :  { %v4696_v31 = vpack.c.bf16 %v4662_v33, %v4660_v42 }
 0x286   :  { %v4697_v15 = vpack.c.bf16 %v4663_v61, %v4661_v55  ;;  %v4595_v44 = vpop.f32.mrb[60].mxu0 }
 0x287   :  { %v6562_v34 = vadd.f32 %v6561_v59, %v4595_v44  ;;  %v4597_v19 = vpop.f32.mrb[61].mxu0 }
 0x288   :  { %v6564_v30 = vadd.f32 %v6563_v36, %v4597_v19  ;;  %v4599_v10 = vpop.f32.mrb[62].mxu0  ;;  %4979 = vmatprep.mubr.bf16.mxu1 %v4697_v15 }
 0x289   :  { %v6566_v39 = vadd.f32 %v6565_v49, %v4599_v10  ;;  %v4601_v22 = vpop.f32.mrb[63].mxu0  ;;  %4980 = vmatmul.mubr.bf16.gmra.mrb[120].mxu1 %v4696_v31  ;;  %v4664_v11 = vmax.f32 %v6562_v34, 0.0 }
 0x28a   :  { %v6568_v12 = vadd.f32 %v6567_v62, %v4601_v22  ;;  %v4665_v14 = vmax.f32 %v6564_v30, 0.0 }
 0x28b   :  { %v4666_v50 = vmax.f32 %v6566_v39, 0.0 }
 0x28c   :  { %v4667_v56 = vmax.f32 %v6568_v12, 0.0 }
 0x28d   :  { %v4698_v0 = vpack.c.bf16 %v4666_v50, %v4664_v11 }
 0x28e   :  { %v4699_v13 = vpack.c.bf16 %v4667_v56, %v4665_v14 }
 0x290   :  { %4987 = vmatprep.mubr.bf16.mxu1 %v4699_v13 }
 0x291   :  { %4988 = vmatmul.mubr.bf16.gmra.mrb[124].mxu1 %v4698_v0 }
 0x2ec   :  { %v6313_v3 = vpop.f32.mrb[64].mxu1 }
 0x2ed   :  { %v6314_v25 = vpop.f32.mrb[65].mxu1 }
 0x2ee   :  { %v6315_v24 = vadd.f32 %v6314_v25, %v6313_v3  ;;  %v6316_v46 = vpop.f32.mrb[66].mxu1 }
 0x2ef   :  { %v6317_v7 = vpop.f32.mrb[67].mxu1 }
 0x2f0   :  { %v6318_v63 = vadd.f32 %v6317_v7, %v6316_v46  ;;  %v4870_v18 = vadd.f32 %v6315_v24, %v8324_v1 }
 0x2f2   :  { %v4873_v38 = vadd.f32 %v6318_v63, %v8324_v1 }
 0x2f4   :  { %v4996_v29 = vpack.c.bf16 %v4873_v38, %v4870_v18  ;;  %v6217_v32 = vpack.c.bf16 %v4873_v38, %v4873_v38  ;;  %v6319_v23 = vpop.f32.mrb[68].mxu1 }
 0x2f5   :  { %v6320_v53 = vpop.f32.mrb[69].mxu1 }
 0x2f6   :  { %v5035_v4 = vrot.slane %v4996_v29, %v8329_v51  ;;  %v5042_v26 = vrot.slane %v6217_v32, %v8329_v51  ;;  %v6321_v43 = vadd.f32 %v6320_v53, %v6319_v23  ;;  %v6322_v40 = vpop.f32.mrb[70].mxu1 }
 0x2f7   :  { %v6323_v2 = vpop.f32.mrb[71].mxu1 }
 0x2f8   :  { %v5043_v27 = vcombine.high %v5035_v4, %v5035_v4  ;;  %v5044_v41 = vcombine.high %v5042_v26, %v5042_v26  ;;  %v5051_v5 = vrot.slane %v5035_v4, %v8329_v51  ;;  %v5058_v57 = vrot.slane %v5042_v26, %v8329_v51  ;;  %6233 = vst.sshfl [vmem:[#allocation8] sm:$0x1 pattern:$0x73625140] %v5035_v4 }
 0x2f9   :  { %6235 = vst.sshfl [vmem:[#allocation8 + $0x4] sm:$0x1 pattern:$0x73625140] %v5042_v26  ;;  %v6324_v17 = vadd.f32 %v6323_v2, %v6322_v40  ;;  %v4878_v6 = vadd.f32 %v6321_v43, %v8324_v1 }
 0x2fa   :  { %v5065_v9 = vrot.slane %v5043_v27, %v8329_v51  ;;  %v5072_v28 = vrot.slane %v5044_v41, %v8329_v51  ;;  %v5073_v35 = vcombine.high %v5051_v5, %v5051_v5  ;;  %v5074_v45 = vcombine.high %v5058_v57, %v5058_v57  ;;  %6234 = vst.sshfl [vmem:[#allocation8 + $0x1] sm:$0x1 pattern:$0x73625140] %v5043_v27 }
 0x2fb   :  { %6236 = vst.sshfl [vmem:[#allocation8 + $0x5] sm:$0x1 pattern:$0x73625140] %v5044_v41  ;;  %v4881_v16 = vadd.f32 %v6324_v17, %v8324_v1 }
 0x2fc   :  { %v5075_v60 = vcombine.high %v5065_v9, %v5065_v9  ;;  %v5076_v8 = vcombine.high %v5072_v28, %v5072_v28  ;;  %5942 = vst [vmem:[#allocation8 + $0x2] sm:$0x1] %v5073_v35  ;;  %5946 = vst [vmem:[#allocation8 + $0x6] sm:$0x1] %v5074_v45  ;;  %v6325_v37 = vpop.f32.mrb[72].mxu1 }
 0x2fd   :  { %v4997_v21 = vpack.c.bf16 %v4881_v16, %v4878_v6  ;;  %v6218_v48 = vpack.c.bf16 %v4881_v16, %v4881_v16  ;;  %v6326_v54 = vpop.f32.mrb[73].mxu1 }
 0x2fe   :  { %5943 = vst [vmem:[#allocation8 + $0x3] sm:$0x1] %v5075_v60  ;;  %5947 = vst [vmem:[#allocation8 + $0x7] sm:$0x1] %v5076_v8  ;;  %v6327_v52 = vadd.f32 %v6326_v54, %v6325_v37  ;;  %v6328_v42 = vpop.f32.mrb[74].mxu1 }
 0x2ff   :  { %v5084_v33 = vrot.slane %v4997_v21, %v8329_v51  ;;  %v5091_v55 = vrot.slane %v6218_v48, %v8329_v51  ;;  %v6329_v61 = vpop.f32.mrb[75].mxu1 }
 0x300   :  { %v6330_v59 = vadd.f32 %v6329_v61, %v6328_v42  ;;  %v4886_v49 = vadd.f32 %v6327_v52, %v8324_v1 }
 0x301   :  { %v5092_v31 = vcombine.high %v5084_v33, %v5084_v33  ;;  %v5093_v36 = vcombine.high %v5091_v55, %v5091_v55  ;;  %v5100_v15 = vrot.slane %v5084_v33, %v8329_v51  ;;  %v5107_v44 = vrot.slane %v5091_v55, %v8329_v51  ;;  %6237 = vst.sshfl [vmem:[#allocation8 + $0x8] sm:$0x1 pattern:$0x73625140] %v5084_v33 }
 0x302   :  { %6239 = vst.sshfl [vmem:[#allocation8 + $0xc] sm:$0x1 pattern:$0x73625140] %v5091_v55  ;;  %v4889_v34 = vadd.f32 %v6330_v59, %v8324_v1 }
 0x303   :  { %v5114_v19 = vrot.slane %v5092_v31, %v8329_v51  ;;  %v5121_v62 = vrot.slane %v5093_v36, %v8329_v51  ;;  %v5122_v30 = vcombine.high %v5100_v15, %v5100_v15  ;;  %v5123_v10 = vcombine.high %v5107_v44, %v5107_v44  ;;  %6238 = vst.sshfl [vmem:[#allocation8 + $0x9] sm:$0x1 pattern:$0x73625140] %v5092_v31 }
 0x304   :  { %6240 = vst.sshfl [vmem:[#allocation8 + $0xd] sm:$0x1 pattern:$0x73625140] %v5093_v36  ;;  %v4998_v39 = vpack.c.bf16 %v4889_v34, %v4886_v49  ;;  %v6219_v22 = vpack.c.bf16 %v4889_v34, %v4889_v34  ;;  %v6331_v12 = vpop.f32.mrb[76].mxu1 }
 0x305   :  { %v5124_v11 = vcombine.high %v5114_v19, %v5114_v19  ;;  %v5125_v50 = vcombine.high %v5121_v62, %v5121_v62  ;;  %5950 = vst [vmem:[#allocation8 + $0xa] sm:$0x1] %v5122_v30  ;;  %5954 = vst [vmem:[#allocation8 + $0xe] sm:$0x1] %v5123_v10  ;;  %v6332_v14 = vpop.f32.mrb[77].mxu1 }
 0x306   :  { %v5133_v56 = vrot.slane %v4998_v39, %v8329_v51  ;;  %v5140_v0 = vrot.slane %v6219_v22, %v8329_v51  ;;  %v6333_v13 = vadd.f32 %v6332_v14, %v6331_v12  ;;  %v6334_v20 = vpop.f32.mrb[78].mxu1 }
 0x307   :  { %5951 = vst [vmem:[#allocation8 + $0xb] sm:$0x1] %v5124_v11  ;;  %5955 = vst [vmem:[#allocation8 + $0xf] sm:$0x1] %v5125_v50  ;;  %v6335_v47 = vpop.f32.mrb[79].mxu1 }
 0x308   :  { %v5141_v3 = vcombine.high %v5133_v56, %v5133_v56  ;;  %v5142_v25 = vcombine.high %v5140_v0, %v5140_v0  ;;  %v5149_v24 = vrot.slane %v5133_v56, %v8329_v51  ;;  %v5156_v46 = vrot.slane %v5140_v0, %v8329_v51  ;;  %6241 = vst.sshfl [vmem:[#allocation8 + $0x10] sm:$0x1 pattern:$0x73625140] %v5133_v56 }
 0x309   :  { %6243 = vst.sshfl [vmem:[#allocation8 + $0x14] sm:$0x1 pattern:$0x73625140] %v5140_v0  ;;  %v6336_v58 = vadd.f32 %v6335_v47, %v6334_v20  ;;  %v4894_v29 = vadd.f32 %v6333_v13, %v8324_v1 }
 0x30a   :  { %v5163_v7 = vrot.slane %v5141_v3, %v8329_v51  ;;  %v5170_v63 = vrot.slane %v5142_v25, %v8329_v51  ;;  %v5171_v18 = vcombine.high %v5149_v24, %v5149_v24  ;;  %v5172_v38 = vcombine.high %v5156_v46, %v5156_v46  ;;  %6242 = vst.sshfl [vmem:[#allocation8 + $0x11] sm:$0x1 pattern:$0x73625140] %v5141_v3 }
 0x30b   :  { %6244 = vst.sshfl [vmem:[#allocation8 + $0x15] sm:$0x1 pattern:$0x73625140] %v5142_v25  ;;  %v4897_v32 = vadd.f32 %v6336_v58, %v8324_v1 }
 0x30c   :  { %v5173_v23 = vcombine.high %v5163_v7, %v5163_v7  ;;  %v5174_v53 = vcombine.high %v5170_v63, %v5170_v63  ;;  %5958 = vst [vmem:[#allocation8 + $0x12] sm:$0x1] %v5171_v18  ;;  %5962 = vst [vmem:[#allocation8 + $0x16] sm:$0x1] %v5172_v38  ;;  %v6337_v4 = vpop.f32.mrb[80].mxu1 }
 0x30d   :  { %v4999_v26 = vpack.c.bf16 %v4897_v32, %v4894_v29  ;;  %v6220_v43 = vpack.c.bf16 %v4897_v32, %v4897_v32  ;;  %v6338_v40 = vpop.f32.mrb[81].mxu1 }
 0x30e   :  { %5959 = vst [vmem:[#allocation8 + $0x13] sm:$0x1] %v5173_v23  ;;  %5963 = vst [vmem:[#allocation8 + $0x17] sm:$0x1] %v5174_v53  ;;  %v6339_v2 = vadd.f32 %v6338_v40, %v6337_v4  ;;  %v6340_v27 = vpop.f32.mrb[82].mxu1 }
 0x30f   :  { %v5182_v41 = vrot.slane %v4999_v26, %v8329_v51  ;;  %v5189_v5 = vrot.slane %v6220_v43, %v8329_v51  ;;  %v6341_v57 = vpop.f32.mrb[83].mxu1 }
 0x310   :  { %v6342_v17 = vadd.f32 %v6341_v57, %v6340_v27  ;;  %v4902_v6 = vadd.f32 %v6339_v2, %v8324_v1 }
 0x311   :  { %v5190_v9 = vcombine.high %v5182_v41, %v5182_v41  ;;  %v5191_v28 = vcombine.high %v5189_v5, %v5189_v5  ;;  %v5198_v35 = vrot.slane %v5182_v41, %v8329_v51  ;;  %v5205_v45 = vrot.slane %v5189_v5, %v8329_v51  ;;  %6245 = vst.sshfl [vmem:[#allocation8 + $0x18] sm:$0x1 pattern:$0x73625140] %v5182_v41 }
 0x312   :  { %6247 = vst.sshfl [vmem:[#allocation8 + $0x1c] sm:$0x1 pattern:$0x73625140] %v5189_v5  ;;  %v4905_v16 = vadd.f32 %v6342_v17, %v8324_v1 }
 0x313   :  { %v5212_v60 = vrot.slane %v5190_v9, %v8329_v51  ;;  %v5219_v8 = vrot.slane %v5191_v28, %v8329_v51  ;;  %v5220_v37 = vcombine.high %v5198_v35, %v5198_v35  ;;  %v5221_v21 = vcombine.high %v5205_v45, %v5205_v45  ;;  %6246 = vst.sshfl [vmem:[#allocation8 + $0x19] sm:$0x1 pattern:$0x73625140] %v5190_v9 }
 0x314   :  { %6248 = vst.sshfl [vmem:[#allocation8 + $0x1d] sm:$0x1 pattern:$0x73625140] %v5191_v28  ;;  %v5000_v48 = vpack.c.bf16 %v4905_v16, %v4902_v6  ;;  %v6221_v54 = vpack.c.bf16 %v4905_v16, %v4905_v16  ;;  %v6343_v52 = vpop.f32.mrb[84].mxu1 }
 0x315   :  { %v5222_v42 = vcombine.high %v5212_v60, %v5212_v60  ;;  %v5223_v33 = vcombine.high %v5219_v8, %v5219_v8  ;;  %5966 = vst [vmem:[#allocation8 + $0x1a] sm:$0x1] %v5220_v37  ;;  %5970 = vst [vmem:[#allocation8 + $0x1e] sm:$0x1] %v5221_v21  ;;  %v6344_v55 = vpop.f32.mrb[85].mxu1 }
 0x316   :  { %v5231_v61 = vrot.slane %v5000_v48, %v8329_v51  ;;  %v5238_v59 = vrot.slane %v6221_v54, %v8329_v51  ;;  %v6345_v31 = vadd.f32 %v6344_v55, %v6343_v52  ;;  %v6346_v36 = vpop.f32.mrb[86].mxu1 }
 0x317   :  { %5967 = vst [vmem:[#allocation8 + $0x1b] sm:$0x1] %v5222_v42  ;;  %5971 = vst [vmem:[#allocation8 + $0x1f] sm:$0x1] %v5223_v33  ;;  %v6347_v15 = vpop.f32.mrb[87].mxu1 }
 0x318   :  { %v5239_v44 = vcombine.high %v5231_v61, %v5231_v61  ;;  %v5240_v49 = vcombine.high %v5238_v59, %v5238_v59  ;;  %v5247_v34 = vrot.slane %v5231_v61, %v8329_v51  ;;  %v5254_v19 = vrot.slane %v5238_v59, %v8329_v51  ;;  %6249 = vst.sshfl [vmem:[#allocation8 + $0x20] sm:$0x1 pattern:$0x73625140] %v5231_v61 }
 0x319   :  { %6251 = vst.sshfl [vmem:[#allocation8 + $0x24] sm:$0x1 pattern:$0x73625140] %v5238_v59  ;;  %v6348_v62 = vadd.f32 %v6347_v15, %v6346_v36  ;;  %v4910_v12 = vadd.f32 %v6345_v31, %v8324_v1 }
 0x31a   :  { %v5261_v30 = vrot.slane %v5239_v44, %v8329_v51  ;;  %v5268_v10 = vrot.slane %v5240_v49, %v8329_v51  ;;  %v5269_v39 = vcombine.high %v5247_v34, %v5247_v34  ;;  %v5270_v22 = vcombine.high %v5254_v19, %v5254_v19  ;;  %6250 = vst.sshfl [vmem:[#allocation8 + $0x21] sm:$0x1 pattern:$0x73625140] %v5239_v44 }
 0x31b   :  { %6252 = vst.sshfl [vmem:[#allocation8 + $0x25] sm:$0x1 pattern:$0x73625140] %v5240_v49  ;;  %v4913_v11 = vadd.f32 %v6348_v62, %v8324_v1 }
 0x31c   :  { %v5271_v50 = vcombine.high %v5261_v30, %v5261_v30  ;;  %v5272_v14 = vcombine.high %v5268_v10, %v5268_v10  ;;  %5974 = vst [vmem:[#allocation8 + $0x22] sm:$0x1] %v5269_v39  ;;  %5978 = vst [vmem:[#allocation8 + $0x26] sm:$0x1] %v5270_v22  ;;  %v6349_v56 = vpop.f32.mrb[88].mxu1 }
 0x31d   :  { %v5001_v0 = vpack.c.bf16 %v4913_v11, %v4910_v12  ;;  %v6222_v13 = vpack.c.bf16 %v4913_v11, %v4913_v11  ;;  %v6350_v20 = vpop.f32.mrb[89].mxu1 }
 0x31e   :  { %5975 = vst [vmem:[#allocation8 + $0x23] sm:$0x1] %v5271_v50  ;;  %5979 = vst [vmem:[#allocation8 + $0x27] sm:$0x1] %v5272_v14  ;;  %v6351_v47 = vadd.f32 %v6350_v20, %v6349_v56  ;;  %v6352_v3 = vpop.f32.mrb[90].mxu1 }
 0x31f   :  { %v5280_v25 = vrot.slane %v5001_v0, %v8329_v51  ;;  %v5287_v24 = vrot.slane %v6222_v13, %v8329_v51  ;;  %v6353_v46 = vpop.f32.mrb[91].mxu1 }
 0x320   :  { %v6354_v58 = vadd.f32 %v6353_v46, %v6352_v3  ;;  %v4918_v29 = vadd.f32 %v6351_v47, %v8324_v1 }
 0x321   :  { %v5288_v7 = vcombine.high %v5280_v25, %v5280_v25  ;;  %v5289_v63 = vcombine.high %v5287_v24, %v5287_v24  ;;  %v5296_v18 = vrot.slane %v5280_v25, %v8329_v51  ;;  %v5303_v38 = vrot.slane %v5287_v24, %v8329_v51  ;;  %6253 = vst.sshfl [vmem:[#allocation8 + $0x28] sm:$0x1 pattern:$0x73625140] %v5280_v25 }
 0x322   :  { %6255 = vst.sshfl [vmem:[#allocation8 + $0x2c] sm:$0x1 pattern:$0x73625140] %v5287_v24  ;;  %v4921_v32 = vadd.f32 %v6354_v58, %v8324_v1 }
 0x323   :  { %v5310_v23 = vrot.slane %v5288_v7, %v8329_v51  ;;  %v5317_v53 = vrot.slane %v5289_v63, %v8329_v51  ;;  %v5318_v4 = vcombine.high %v5296_v18, %v5296_v18  ;;  %v5319_v26 = vcombine.high %v5303_v38, %v5303_v38  ;;  %6254 = vst.sshfl [vmem:[#allocation8 + $0x29] sm:$0x1 pattern:$0x73625140] %v5288_v7 }
 0x324   :  { %6256 = vst.sshfl [vmem:[#allocation8 + $0x2d] sm:$0x1 pattern:$0x73625140] %v5289_v63  ;;  %v5002_v43 = vpack.c.bf16 %v4921_v32, %v4918_v29  ;;  %v6223_v40 = vpack.c.bf16 %v4921_v32, %v4921_v32  ;;  %v6355_v2 = vpop.f32.mrb[92].mxu1 }
 0x325   :  { %v5320_v27 = vcombine.high %v5310_v23, %v5310_v23  ;;  %v5321_v41 = vcombine.high %v5317_v53, %v5317_v53  ;;  %5982 = vst [vmem:[#allocation8 + $0x2a] sm:$0x1] %v5318_v4  ;;  %5986 = vst [vmem:[#allocation8 + $0x2e] sm:$0x1] %v5319_v26  ;;  %v6356_v5 = vpop.f32.mrb[93].mxu1 }
 0x326   :  { %v5329_v57 = vrot.slane %v5002_v43, %v8329_v51  ;;  %v5336_v17 = vrot.slane %v6223_v40, %v8329_v51  ;;  %v6357_v9 = vadd.f32 %v6356_v5, %v6355_v2  ;;  %v6358_v28 = vpop.f32.mrb[94].mxu1 }
 0x327   :  { %5983 = vst [vmem:[#allocation8 + $0x2b] sm:$0x1] %v5320_v27  ;;  %5987 = vst [vmem:[#allocation8 + $0x2f] sm:$0x1] %v5321_v41  ;;  %v6359_v35 = vpop.f32.mrb[95].mxu1 }
 0x328   :  { %v5337_v45 = vcombine.high %v5329_v57, %v5329_v57  ;;  %v5338_v6 = vcombine.high %v5336_v17, %v5336_v17  ;;  %v5345_v16 = vrot.slane %v5329_v57, %v8329_v51  ;;  %v5352_v60 = vrot.slane %v5336_v17, %v8329_v51  ;;  %6257 = vst.sshfl [vmem:[#allocation8 + $0x30] sm:$0x1 pattern:$0x73625140] %v5329_v57 }
 0x329   :  { %6259 = vst.sshfl [vmem:[#allocation8 + $0x34] sm:$0x1 pattern:$0x73625140] %v5336_v17  ;;  %v6360_v8 = vadd.f32 %v6359_v35, %v6358_v28  ;;  %v4926_v52 = vadd.f32 %v6357_v9, %v8324_v1 }
 0x32a   :  { %v5359_v37 = vrot.slane %v5337_v45, %v8329_v51  ;;  %v5366_v21 = vrot.slane %v5338_v6, %v8329_v51  ;;  %v5367_v48 = vcombine.high %v5345_v16, %v5345_v16  ;;  %v5368_v54 = vcombine.high %v5352_v60, %v5352_v60  ;;  %6258 = vst.sshfl [vmem:[#allocation8 + $0x31] sm:$0x1 pattern:$0x73625140] %v5337_v45 }
 0x32b   :  { %6260 = vst.sshfl [vmem:[#allocation8 + $0x35] sm:$0x1 pattern:$0x73625140] %v5338_v6  ;;  %v4929_v42 = vadd.f32 %v6360_v8, %v8324_v1 }
 0x32c   :  { %v5369_v33 = vcombine.high %v5359_v37, %v5359_v37  ;;  %v5370_v55 = vcombine.high %v5366_v21, %v5366_v21  ;;  %5990 = vst [vmem:[#allocation8 + $0x32] sm:$0x1] %v5367_v48  ;;  %5994 = vst [vmem:[#allocation8 + $0x36] sm:$0x1] %v5368_v54  ;;  %v6361_v61 = vpop.f32.mrb[96].mxu1 }
 0x32d   :  { %v5003_v59 = vpack.c.bf16 %v4929_v42, %v4926_v52  ;;  %v6224_v31 = vpack.c.bf16 %v4929_v42, %v4929_v42  ;;  %v6362_v36 = vpop.f32.mrb[97].mxu1 }
 0x32e   :  { %5991 = vst [vmem:[#allocation8 + $0x33] sm:$0x1] %v5369_v33  ;;  %5995 = vst [vmem:[#allocation8 + $0x37] sm:$0x1] %v5370_v55  ;;  %v6363_v15 = vadd.f32 %v6362_v36, %v6361_v61  ;;  %v6364_v44 = vpop.f32.mrb[98].mxu1 }
 0x32f   :  { %v5378_v49 = vrot.slane %v5003_v59, %v8329_v51  ;;  %v5385_v34 = vrot.slane %v6224_v31, %v8329_v51  ;;  %v6365_v19 = vpop.f32.mrb[99].mxu1 }
 0x330   :  { %v6366_v62 = vadd.f32 %v6365_v19, %v6364_v44  ;;  %v4934_v12 = vadd.f32 %v6363_v15, %v8324_v1 }
 0x331   :  { %v5386_v30 = vcombine.high %v5378_v49, %v5378_v49  ;;  %v5387_v10 = vcombine.high %v5385_v34, %v5385_v34  ;;  %v5394_v39 = vrot.slane %v5378_v49, %v8329_v51  ;;  %v5401_v22 = vrot.slane %v5385_v34, %v8329_v51  ;;  %6261 = vst.sshfl [vmem:[#allocation8 + $0x38] sm:$0x1 pattern:$0x73625140] %v5378_v49 }
 0x332   :  { %6263 = vst.sshfl [vmem:[#allocation8 + $0x3c] sm:$0x1 pattern:$0x73625140] %v5385_v34  ;;  %v4937_v11 = vadd.f32 %v6366_v62, %v8324_v1 }
 0x333   :  { %v5408_v50 = vrot.slane %v5386_v30, %v8329_v51  ;;  %v5415_v14 = vrot.slane %v5387_v10, %v8329_v51  ;;  %v5416_v56 = vcombine.high %v5394_v39, %v5394_v39  ;;  %v5417_v0 = vcombine.high %v5401_v22, %v5401_v22  ;;  %6262 = vst.sshfl [vmem:[#allocation8 + $0x39] sm:$0x1 pattern:$0x73625140] %v5386_v30 }
 0x334   :  { %6264 = vst.sshfl [vmem:[#allocation8 + $0x3d] sm:$0x1 pattern:$0x73625140] %v5387_v10  ;;  %v5004_v13 = vpack.c.bf16 %v4937_v11, %v4934_v12  ;;  %v6225_v20 = vpack.c.bf16 %v4937_v11, %v4937_v11  ;;  %v6367_v47 = vpop.f32.mrb[100].mxu1 }
 0x335   :  { %v5418_v3 = vcombine.high %v5408_v50, %v5408_v50  ;;  %v5419_v25 = vcombine.high %v5415_v14, %v5415_v14  ;;  %5998 = vst [vmem:[#allocation8 + $0x3a] sm:$0x1] %v5416_v56  ;;  %6002 = vst [vmem:[#allocation8 + $0x3e] sm:$0x1] %v5417_v0  ;;  %v6368_v24 = vpop.f32.mrb[101].mxu1 }
 0x336   :  { %v5427_v46 = vrot.slane %v5004_v13, %v8329_v51  ;;  %v5434_v58 = vrot.slane %v6225_v20, %v8329_v51  ;;  %v6369_v7 = vadd.f32 %v6368_v24, %v6367_v47  ;;  %v6370_v63 = vpop.f32.mrb[102].mxu1 }
 0x337   :  { %5999 = vst [vmem:[#allocation8 + $0x3b] sm:$0x1] %v5418_v3  ;;  %6003 = vst [vmem:[#allocation8 + $0x3f] sm:$0x1] %v5419_v25  ;;  %v6371_v18 = vpop.f32.mrb[103].mxu1 }
 0x338   :  { %v5435_v38 = vcombine.high %v5427_v46, %v5427_v46  ;;  %v5436_v29 = vcombine.high %v5434_v58, %v5434_v58  ;;  %v5443_v32 = vrot.slane %v5427_v46, %v8329_v51  ;;  %v5450_v23 = vrot.slane %v5434_v58, %v8329_v51  ;;  %6265 = vst.sshfl [vmem:[#allocation8 + $0x40] sm:$0x1 pattern:$0x73625140] %v5427_v46 }
 0x339   :  { %6267 = vst.sshfl [vmem:[#allocation8 + $0x44] sm:$0x1 pattern:$0x73625140] %v5434_v58  ;;  %v6372_v53 = vadd.f32 %v6371_v18, %v6370_v63  ;;  %v4942_v2 = vadd.f32 %v6369_v7, %v8324_v1 }
 0x33a   :  { %v5457_v4 = vrot.slane %v5435_v38, %v8329_v51  ;;  %v5464_v26 = vrot.slane %v5436_v29, %v8329_v51  ;;  %v5465_v43 = vcombine.high %v5443_v32, %v5443_v32  ;;  %v5466_v40 = vcombine.high %v5450_v23, %v5450_v23  ;;  %6266 = vst.sshfl [vmem:[#allocation8 + $0x41] sm:$0x1 pattern:$0x73625140] %v5435_v38 }
 0x33b   :  { %6268 = vst.sshfl [vmem:[#allocation8 + $0x45] sm:$0x1 pattern:$0x73625140] %v5436_v29  ;;  %v4945_v27 = vadd.f32 %v6372_v53, %v8324_v1 }
 0x33c   :  { %v5467_v41 = vcombine.high %v5457_v4, %v5457_v4  ;;  %v5468_v5 = vcombine.high %v5464_v26, %v5464_v26  ;;  %6006 = vst [vmem:[#allocation8 + $0x42] sm:$0x1] %v5465_v43  ;;  %6010 = vst [vmem:[#allocation8 + $0x46] sm:$0x1] %v5466_v40  ;;  %v6373_v57 = vpop.f32.mrb[104].mxu1 }
 0x33d   :  { %v5005_v17 = vpack.c.bf16 %v4945_v27, %v4942_v2  ;;  %v6226_v9 = vpack.c.bf16 %v4945_v27, %v4945_v27  ;;  %v6374_v28 = vpop.f32.mrb[105].mxu1 }
 0x33e   :  { %6007 = vst [vmem:[#allocation8 + $0x43] sm:$0x1] %v5467_v41  ;;  %6011 = vst [vmem:[#allocation8 + $0x47] sm:$0x1] %v5468_v5  ;;  %v6375_v35 = vadd.f32 %v6374_v28, %v6373_v57  ;;  %v6376_v45 = vpop.f32.mrb[106].mxu1 }
 0x33f   :  { %v5476_v6 = vrot.slane %v5005_v17, %v8329_v51  ;;  %v5483_v16 = vrot.slane %v6226_v9, %v8329_v51  ;;  %v6377_v60 = vpop.f32.mrb[107].mxu1 }
 0x340   :  { %v6378_v8 = vadd.f32 %v6377_v60, %v6376_v45  ;;  %v4950_v52 = vadd.f32 %v6375_v35, %v8324_v1 }
 0x341   :  { %v5484_v37 = vcombine.high %v5476_v6, %v5476_v6  ;;  %v5485_v21 = vcombine.high %v5483_v16, %v5483_v16  ;;  %v5492_v48 = vrot.slane %v5476_v6, %v8329_v51  ;;  %v5499_v54 = vrot.slane %v5483_v16, %v8329_v51  ;;  %6269 = vst.sshfl [vmem:[#allocation8 + $0x48] sm:$0x1 pattern:$0x73625140] %v5476_v6 }
 0x342   :  { %6271 = vst.sshfl [vmem:[#allocation8 + $0x4c] sm:$0x1 pattern:$0x73625140] %v5483_v16  ;;  %v4953_v42 = vadd.f32 %v6378_v8, %v8324_v1 }
 0x343   :  { %v5506_v33 = vrot.slane %v5484_v37, %v8329_v51  ;;  %v5513_v55 = vrot.slane %v5485_v21, %v8329_v51  ;;  %v5514_v61 = vcombine.high %v5492_v48, %v5492_v48  ;;  %v5515_v59 = vcombine.high %v5499_v54, %v5499_v54  ;;  %6270 = vst.sshfl [vmem:[#allocation8 + $0x49] sm:$0x1 pattern:$0x73625140] %v5484_v37 }
 0x344   :  { %6272 = vst.sshfl [vmem:[#allocation8 + $0x4d] sm:$0x1 pattern:$0x73625140] %v5485_v21  ;;  %v5006_v31 = vpack.c.bf16 %v4953_v42, %v4950_v52  ;;  %v6227_v36 = vpack.c.bf16 %v4953_v42, %v4953_v42  ;;  %v6379_v15 = vpop.f32.mrb[108].mxu1 }
 0x345   :  { %v5516_v44 = vcombine.high %v5506_v33, %v5506_v33  ;;  %v5517_v49 = vcombine.high %v5513_v55, %v5513_v55  ;;  %6014 = vst [vmem:[#allocation8 + $0x4a] sm:$0x1] %v5514_v61  ;;  %6018 = vst [vmem:[#allocation8 + $0x4e] sm:$0x1] %v5515_v59  ;;  %v6380_v34 = vpop.f32.mrb[109].mxu1 }
 0x346   :  { %v5525_v19 = vrot.slane %v5006_v31, %v8329_v51  ;;  %v5532_v62 = vrot.slane %v6227_v36, %v8329_v51  ;;  %v6381_v30 = vadd.f32 %v6380_v34, %v6379_v15  ;;  %v6382_v10 = vpop.f32.mrb[110].mxu1 }
 0x347   :  { %6015 = vst [vmem:[#allocation8 + $0x4b] sm:$0x1] %v5516_v44  ;;  %6019 = vst [vmem:[#allocation8 + $0x4f] sm:$0x1] %v5517_v49  ;;  %v6383_v39 = vpop.f32.mrb[111].mxu1 }
 0x348   :  { %v5533_v22 = vcombine.high %v5525_v19, %v5525_v19  ;;  %v5534_v12 = vcombine.high %v5532_v62, %v5532_v62  ;;  %v5541_v11 = vrot.slane %v5525_v19, %v8329_v51  ;;  %v5548_v50 = vrot.slane %v5532_v62, %v8329_v51  ;;  %6273 = vst.sshfl [vmem:[#allocation8 + $0x50] sm:$0x1 pattern:$0x73625140] %v5525_v19 }
 0x349   :  { %6275 = vst.sshfl [vmem:[#allocation8 + $0x54] sm:$0x1 pattern:$0x73625140] %v5532_v62  ;;  %v6384_v14 = vadd.f32 %v6383_v39, %v6382_v10  ;;  %v4958_v47 = vadd.f32 %v6381_v30, %v8324_v1 }
 0x34a   :  { %v5555_v56 = vrot.slane %v5533_v22, %v8329_v51  ;;  %v5562_v0 = vrot.slane %v5534_v12, %v8329_v51  ;;  %v5563_v13 = vcombine.high %v5541_v11, %v5541_v11  ;;  %v5564_v20 = vcombine.high %v5548_v50, %v5548_v50  ;;  %6274 = vst.sshfl [vmem:[#allocation8 + $0x51] sm:$0x1 pattern:$0x73625140] %v5533_v22 }
 0x34b   :  { %6276 = vst.sshfl [vmem:[#allocation8 + $0x55] sm:$0x1 pattern:$0x73625140] %v5534_v12  ;;  %v4961_v3 = vadd.f32 %v6384_v14, %v8324_v1 }
 0x34c   :  { %v5565_v25 = vcombine.high %v5555_v56, %v5555_v56  ;;  %v5566_v24 = vcombine.high %v5562_v0, %v5562_v0  ;;  %6022 = vst [vmem:[#allocation8 + $0x52] sm:$0x1] %v5563_v13  ;;  %6026 = vst [vmem:[#allocation8 + $0x56] sm:$0x1] %v5564_v20  ;;  %v6385_v46 = vpop.f32.mrb[112].mxu1 }
 0x34d   :  { %v5007_v58 = vpack.c.bf16 %v4961_v3, %v4958_v47  ;;  %v6228_v7 = vpack.c.bf16 %v4961_v3, %v4961_v3  ;;  %v6386_v63 = vpop.f32.mrb[113].mxu1 }
 0x34e   :  { %6023 = vst [vmem:[#allocation8 + $0x53] sm:$0x1] %v5565_v25  ;;  %6027 = vst [vmem:[#allocation8 + $0x57] sm:$0x1] %v5566_v24  ;;  %v6387_v18 = vadd.f32 %v6386_v63, %v6385_v46  ;;  %v6388_v38 = vpop.f32.mrb[114].mxu1 }
 0x34f   :  { %v5574_v29 = vrot.slane %v5007_v58, %v8329_v51  ;;  %v5581_v32 = vrot.slane %v6228_v7, %v8329_v51  ;;  %v6389_v23 = vpop.f32.mrb[115].mxu1 }
 0x350   :  { %v6390_v53 = vadd.f32 %v6389_v23, %v6388_v38  ;;  %v4966_v2 = vadd.f32 %v6387_v18, %v8324_v1 }
 0x351   :  { %v5582_v4 = vcombine.high %v5574_v29, %v5574_v29  ;;  %v5583_v26 = vcombine.high %v5581_v32, %v5581_v32  ;;  %v5590_v43 = vrot.slane %v5574_v29, %v8329_v51  ;;  %v5597_v40 = vrot.slane %v5581_v32, %v8329_v51  ;;  %6277 = vst.sshfl [vmem:[#allocation8 + $0x58] sm:$0x1 pattern:$0x73625140] %v5574_v29 }
 0x352   :  { %6279 = vst.sshfl [vmem:[#allocation8 + $0x5c] sm:$0x1 pattern:$0x73625140] %v5581_v32  ;;  %v4969_v27 = vadd.f32 %v6390_v53, %v8324_v1 }
 0x353   :  { %v5604_v41 = vrot.slane %v5582_v4, %v8329_v51  ;;  %v5611_v5 = vrot.slane %v5583_v26, %v8329_v51  ;;  %v5612_v57 = vcombine.high %v5590_v43, %v5590_v43  ;;  %v5613_v17 = vcombine.high %v5597_v40, %v5597_v40  ;;  %6278 = vst.sshfl [vmem:[#allocation8 + $0x59] sm:$0x1 pattern:$0x73625140] %v5582_v4 }
 0x354   :  { %6280 = vst.sshfl [vmem:[#allocation8 + $0x5d] sm:$0x1 pattern:$0x73625140] %v5583_v26  ;;  %v5008_v9 = vpack.c.bf16 %v4969_v27, %v4966_v2  ;;  %v6229_v28 = vpack.c.bf16 %v4969_v27, %v4969_v27  ;;  %v6391_v35 = vpop.f32.mrb[116].mxu1 }
 0x355   :  { %v5614_v45 = vcombine.high %v5604_v41, %v5604_v41  ;;  %v5615_v6 = vcombine.high %v5611_v5, %v5611_v5  ;;  %6030 = vst [vmem:[#allocation8 + $0x5a] sm:$0x1] %v5612_v57  ;;  %6034 = vst [vmem:[#allocation8 + $0x5e] sm:$0x1] %v5613_v17  ;;  %v6392_v16 = vpop.f32.mrb[117].mxu1 }
 0x356   :  { %v5623_v60 = vrot.slane %v5008_v9, %v8329_v51  ;;  %v5630_v8 = vrot.slane %v6229_v28, %v8329_v51  ;;  %v6393_v37 = vadd.f32 %v6392_v16, %v6391_v35  ;;  %v6394_v21 = vpop.f32.mrb[118].mxu1 }
 0x357   :  { %6031 = vst [vmem:[#allocation8 + $0x5b] sm:$0x1] %v5614_v45  ;;  %6035 = vst [vmem:[#allocation8 + $0x5f] sm:$0x1] %v5615_v6  ;;  %v6395_v48 = vpop.f32.mrb[119].mxu1 }
 0x358   :  { %v5631_v54 = vcombine.high %v5623_v60, %v5623_v60  ;;  %v5632_v52 = vcombine.high %v5630_v8, %v5630_v8  ;;  %v5639_v42 = vrot.slane %v5623_v60, %v8329_v51  ;;  %v5646_v33 = vrot.slane %v5630_v8, %v8329_v51  ;;  %6281 = vst.sshfl [vmem:[#allocation8 + $0x60] sm:$0x1 pattern:$0x73625140] %v5623_v60 }
 0x359   :  { %6283 = vst.sshfl [vmem:[#allocation8 + $0x64] sm:$0x1 pattern:$0x73625140] %v5630_v8  ;;  %v6396_v55 = vadd.f32 %v6395_v48, %v6394_v21  ;;  %v4974_v15 = vadd.f32 %v6393_v37, %v8324_v1 }
 0x35a   :  { %v5653_v61 = vrot.slane %v5631_v54, %v8329_v51  ;;  %v5660_v59 = vrot.slane %v5632_v52, %v8329_v51  ;;  %v5661_v31 = vcombine.high %v5639_v42, %v5639_v42  ;;  %v5662_v36 = vcombine.high %v5646_v33, %v5646_v33  ;;  %6282 = vst.sshfl [vmem:[#allocation8 + $0x61] sm:$0x1 pattern:$0x73625140] %v5631_v54 }
 0x35b   :  { %6284 = vst.sshfl [vmem:[#allocation8 + $0x65] sm:$0x1 pattern:$0x73625140] %v5632_v52  ;;  %v4977_v44 = vadd.f32 %v6396_v55, %v8324_v1 }
 0x35c   :  { %v5663_v49 = vcombine.high %v5653_v61, %v5653_v61  ;;  %v5664_v34 = vcombine.high %v5660_v59, %v5660_v59  ;;  %6038 = vst [vmem:[#allocation8 + $0x62] sm:$0x1] %v5661_v31  ;;  %6042 = vst [vmem:[#allocation8 + $0x66] sm:$0x1] %v5662_v36  ;;  %v6397_v19 = vpop.f32.mrb[120].mxu1 }
 0x35d   :  { %v5009_v62 = vpack.c.bf16 %v4977_v44, %v4974_v15  ;;  %v6230_v30 = vpack.c.bf16 %v4977_v44, %v4977_v44  ;;  %v6398_v10 = vpop.f32.mrb[121].mxu1 }
 0x35e   :  { %6039 = vst [vmem:[#allocation8 + $0x63] sm:$0x1] %v5663_v49  ;;  %6043 = vst [vmem:[#allocation8 + $0x67] sm:$0x1] %v5664_v34  ;;  %v6399_v39 = vadd.f32 %v6398_v10, %v6397_v19  ;;  %v6400_v22 = vpop.f32.mrb[122].mxu1 }
 0x35f   :  { %v5672_v12 = vrot.slane %v5009_v62, %v8329_v51  ;;  %v5679_v11 = vrot.slane %v6230_v30, %v8329_v51  ;;  %v6401_v50 = vpop.f32.mrb[123].mxu1 }
 0x360   :  { %v6402_v14 = vadd.f32 %v6401_v50, %v6400_v22  ;;  %v4982_v47 = vadd.f32 %v6399_v39, %v8324_v1 }
 0x361   :  { %v5680_v56 = vcombine.high %v5672_v12, %v5672_v12  ;;  %v5681_v0 = vcombine.high %v5679_v11, %v5679_v11  ;;  %v5688_v13 = vrot.slane %v5672_v12, %v8329_v51  ;;  %v5695_v20 = vrot.slane %v5679_v11, %v8329_v51  ;;  %6285 = vst.sshfl [vmem:[#allocation8 + $0x68] sm:$0x1 pattern:$0x73625140] %v5672_v12 }
 0x362   :  { %6287 = vst.sshfl [vmem:[#allocation8 + $0x6c] sm:$0x1 pattern:$0x73625140] %v5679_v11  ;;  %v4985_v3 = vadd.f32 %v6402_v14, %v8324_v1 }
 0x363   :  { %v5702_v25 = vrot.slane %v5680_v56, %v8329_v51  ;;  %v5709_v24 = vrot.slane %v5681_v0, %v8329_v51  ;;  %v5710_v46 = vcombine.high %v5688_v13, %v5688_v13  ;;  %v5711_v58 = vcombine.high %v5695_v20, %v5695_v20  ;;  %6286 = vst.sshfl [vmem:[#allocation8 + $0x69] sm:$0x1 pattern:$0x73625140] %v5680_v56 }
 0x364   :  { %6288 = vst.sshfl [vmem:[#allocation8 + $0x6d] sm:$0x1 pattern:$0x73625140] %v5681_v0  ;;  %v5010_v7 = vpack.c.bf16 %v4985_v3, %v4982_v47  ;;  %v6231_v63 = vpack.c.bf16 %v4985_v3, %v4985_v3  ;;  %v6403_v18 = vpop.f32.mrb[124].mxu1 }
 0x365   :  { %v5712_v38 = vcombine.high %v5702_v25, %v5702_v25  ;;  %v5713_v29 = vcombine.high %v5709_v24, %v5709_v24  ;;  %6046 = vst [vmem:[#allocation8 + $0x6a] sm:$0x1] %v5710_v46  ;;  %6050 = vst [vmem:[#allocation8 + $0x6e] sm:$0x1] %v5711_v58  ;;  %v6404_v32 = vpop.f32.mrb[125].mxu1 }
 0x366   :  { %v5721_v23 = vrot.slane %v5010_v7, %v8329_v51  ;;  %v5728_v53 = vrot.slane %v6231_v63, %v8329_v51  ;;  %v6405_v4 = vadd.f32 %v6404_v32, %v6403_v18  ;;  %v6406_v26 = vpop.f32.mrb[126].mxu1 }
 0x367   :  { %6047 = vst [vmem:[#allocation8 + $0x6b] sm:$0x1] %v5712_v38  ;;  %6051 = vst [vmem:[#allocation8 + $0x6f] sm:$0x1] %v5713_v29  ;;  %v6407_v43 = vpop.f32.mrb[127].mxu1 }
 0x368   :  { %v5729_v40 = vcombine.high %v5721_v23, %v5721_v23  ;;  %v5730_v2 = vcombine.high %v5728_v53, %v5728_v53  ;;  %v5737_v27 = vrot.slane %v5721_v23, %v8329_v51  ;;  %v5744_v41 = vrot.slane %v5728_v53, %v8329_v51  ;;  %6289 = vst.sshfl [vmem:[#allocation8 + $0x70] sm:$0x1 pattern:$0x73625140] %v5721_v23 }
 0x369   :  { %6291 = vst.sshfl [vmem:[#allocation8 + $0x74] sm:$0x1 pattern:$0x73625140] %v5728_v53  ;;  %v6408_v5 = vadd.f32 %v6407_v43, %v6406_v26  ;;  %v4990_v35 = vadd.f32 %v6405_v4, %v8324_v1 }
 0x36a   :  { %v5751_v57 = vrot.slane %v5729_v40, %v8329_v51  ;;  %v5758_v17 = vrot.slane %v5730_v2, %v8329_v51  ;;  %v5759_v9 = vcombine.high %v5737_v27, %v5737_v27  ;;  %v5760_v28 = vcombine.high %v5744_v41, %v5744_v41  ;;  %6290 = vst.sshfl [vmem:[#allocation8 + $0x71] sm:$0x1 pattern:$0x73625140] %v5729_v40 }
 0x36b   :  { %6292 = vst.sshfl [vmem:[#allocation8 + $0x75] sm:$0x1 pattern:$0x73625140] %v5730_v2  ;;  %v4993_v45 = vadd.f32 %v6408_v5, %v8324_v1 }
 0x36c   :  { %v5761_v6 = vcombine.high %v5751_v57, %v5751_v57  ;;  %v5762_v16 = vcombine.high %v5758_v17, %v5758_v17  ;;  %6054 = vst [vmem:[#allocation8 + $0x72] sm:$0x1] %v5759_v9  ;;  %6058 = vst [vmem:[#allocation8 + $0x76] sm:$0x1] %v5760_v28 }
 0x36d   :  { %v5011_v60 = vpack.c.bf16 %v4993_v45, %v4990_v35  ;;  %v6232_v8 = vpack.c.bf16 %v4993_v45, %v4993_v45 }
 0x36e   :  { %6055 = vst [vmem:[#allocation8 + $0x73] sm:$0x1] %v5761_v6  ;;  %6059 = vst [vmem:[#allocation8 + $0x77] sm:$0x1] %v5762_v16 }
 0x36f   :  { %v5770_v37 = vrot.slane %v5011_v60, %v8329_v51  ;;  %v5777_v21 = vrot.slane %v6232_v8, %v8329_v51 }
 0x371   :  { %v5778_v48 = vcombine.high %v5770_v37, %v5770_v37  ;;  %v5779_v54 = vcombine.high %v5777_v21, %v5777_v21  ;;  %v5786_v52 = vrot.slane %v5770_v37, %v8329_v51  ;;  %v5793_v42 = vrot.slane %v5777_v21, %v8329_v51  ;;  %6293 = vst.sshfl [vmem:[#allocation8 + $0x78] sm:$0x1 pattern:$0x73625140] %v5770_v37 }
 0x372   :  { %6295 = vst.sshfl [vmem:[#allocation8 + $0x7c] sm:$0x1 pattern:$0x73625140] %v5777_v21 }
 0x373   :  { %v5800_v1 = vrot.slane %v5778_v48, %v8329_v51  ;;  %v5807_v33 = vrot.slane %v5779_v54, %v8329_v51  ;;  %v5808_v55 = vcombine.high %v5786_v52, %v5786_v52  ;;  %v5809_v61 = vcombine.high %v5793_v42, %v5793_v42  ;;  %6294 = vst.sshfl [vmem:[#allocation8 + $0x79] sm:$0x1 pattern:$0x73625140] %v5778_v48 }
 0x374   :  { %6296 = vst.sshfl [vmem:[#allocation8 + $0x7d] sm:$0x1 pattern:$0x73625140] %v5779_v54 }
 0x375   :  { %v5810_v59 = vcombine.high %v5800_v1, %v5800_v1  ;;  %v5811_v31 = vcombine.high %v5807_v33, %v5807_v33  ;;  %6062 = vst [vmem:[#allocation8 + $0x7a] sm:$0x1] %v5808_v55  ;;  %6066 = vst [vmem:[#allocation8 + $0x7e] sm:$0x1] %v5809_v61 }
 0x377   :  { %6063 = vst [vmem:[#allocation8 + $0x7b] sm:$0x1] %v5810_v59  ;;  %6067 = vst [vmem:[#allocation8 + $0x7f] sm:$0x1] %v5811_v31 }
 0x378   :  { %6072 = vsyncadd [#allocation4], 2032  ;;  %s7394_s4 = smov [#allocation8]  }
 0x379   :  { %s6073_s11 = sshll.u32 %s7394_s4, 4  ;;  %s6074_s11 = int_to_ptr.vmem [resolvable:$true] %s6073_s11 }
 0x37a   :  { %s7354_s12 = scalar_lea.vmem %s6074_s11, 16  ;;  %s7358_s13 = scalar_lea.vmem %s6074_s11, 2048 }
 0x37b   :  { %p7355_p10 = scmp.ne.s32.totalorder %s6074_s11, %s7354_s12  ;;  %p7359_p11 = scmp.lt.s32.totalorder %s6074_s11, %s6074_s11 }
 0x37c   :  { %p7360_p12 = scmp.lt.s32.totalorder %s7358_s13, %s7354_s12 }
 0x37e   :  { %p7361_p13 = por %p7360_p12, %p7359_p11 }
 0x380   :  { %p7362_p0 = pnand %p7361_p13, %p7355_p10 }
 0x382   :  { %7365 = shalt.err (!%p7362_p0)
}
 0x383   :  { %s7366_s16 = scalar_lea.hbm %s8474_s5, 16 }
 0x384   :  { %p7367_p1 = scmp.ne.s32.totalorder %s8474_s5, %s7366_s16  ;;  %p7370_p2 = scmp.lt.u32.totalorder %s7366_s16, %s8474_s5 }
 0x386   :  { %p7372_p3 = pnand %p7370_p2, %p7367_p1 }
 0x388   :  { %7375 = shalt.err (!%p7372_p3)
}
 0x389   :  { %s7395_s20 = smov 16   ;;  %s7396_s21 = smov 1  }
 0x38a   :  { %6079 = dma.vmem_to_hbm [thread:$0]  %s6074_s11, 16, %s8474_s5, [#allocation4], %s7395_s20, %s7395_s20, %s7396_s21  }
 0x38b   :  { %7380 = dma.done.wait [#allocation4], 2048  }
 0x38c   :  { %7381 = vsyncadd [#allocation4], 4294965248 }
 0x38d   :  { %6083 = vsyncpa [#allocation3], 1 }
 0x38e   :  { %6084 = vsyncpa [#allocation6], 1 }
 0x38f   :  { %6085 = vsyncpa [#allocation4], 1 }

</bundles_post_ra>
